<compile_context>
chip_gen: v7x
topology: tpu7x:2x2x1
jax: 0.10.0
libtpu: 0.0.40
codegen_flags: <defaults>
</compile_context>

<pallas_src>
import functools

import jax
import jax.numpy as jnp
from jax.experimental import pallas as pl
from jax.experimental.pallas import tpu as pltpu

_VMEM_LIMIT = 32 * 1024 * 1024  # explicit scoped-VMEM request (safe on v5e/v6e/v7x)


# ---------------------------------------------------------------------------
# Pallas kernels
# ---------------------------------------------------------------------------
def _conv_kernel(x_ref, w_ref, out_ref, *stat_refs, kh, kw, tho, wo, cout,
                 compute_stats):
    """One (batch, output-row-block) step of a unit-stride kh x kw conv.

    x_ref   : (1, Hs, Ws, Cp)   padded (+ space-to-depth'ed) image, bf16,
                                resident across all row blocks of this image.
    w_ref   : (kh*kw*Cp, Cout)  tap-folded weights, bf16        (Cout > 1)
              (1, kh*kw*Cp)     flat head weights, f32          (Cout == 1)
    out_ref : (1, tho*Wo, Cout) conv output block, row-major over (row, col).
    stat_refs (only when compute_stats): two (1, 8, Cout) per-block partial
              sum / sum-of-squares blocks (row 0 is the payload; the 8-row
              broadcast keeps the block shape TPU-legal).
    """
    row0 = pl.program_id(1) * tho

    # kh row bands of the resident image, each (tho, Ws, Cp), loaded once.
    bands = [x_ref[0, pl.ds(row0 + dy, tho), :, :] for dy in range(kh)]

    # In-VMEM im2col of the block: taps folded into K (= kh*kw*Cp, 64..512),
    # rows folded into M (= tho*Wo) -> one fat MXU matmul per block.
    rows = []
    for r in range(tho):
        taps = []
        for dy in range(kh):
            row = bands[dy][r]                       # (Ws, Cp)
            for dx in range(kw):
                taps.append(row[dx:dx + wo, :])      # (Wo, Cp)
        rows.append(jnp.concatenate(taps, axis=-1))  # (Wo, K)
    patches = jnp.concatenate(rows, axis=0) if tho > 1 else rows[0]  # (M, K)

    if cout == 1:
        # Cout==1 head: VPU multiply + ONE lane reduction per block instead of
        # a skinny (K, 1) MXU matmul.  f32 VPU math (v5e has no bf16 VPU).
        prod = patches.astype(jnp.float32) * w_ref[...]          # (M, K)
        res = jnp.sum(prod, axis=-1, keepdims=True)              # (M, 1)
    else:
        res = jnp.dot(patches, w_ref[...],
                      preferred_element_type=jnp.float32)        # (M, Cout)

    out_ref[0] = res.astype(out_ref.dtype)                       # single store

    if compute_stats:
        sum_ref, ssq_ref = stat_refs
        s = jnp.sum(res, axis=0, keepdims=True)                  # (1, Cout)
        q = jnp.sum(res * res, axis=0, keepdims=True)
        sum_ref[0] = jnp.broadcast_to(s, (8, cout))
        ssq_ref[0] = jnp.broadcast_to(q, (8, cout))


def _bn_lrelu_kernel(x_ref, sc_ref, sh_ref, o_ref, *, slope):
    """Lane-dense (rows, Wo*Cout) BatchNorm affine + LeakyReLU (f32 math)."""
    y = x_ref[...].astype(jnp.float32) * sc_ref[...] + sh_ref[...]
    o_ref[...] = jnp.where(y >= 0, y, slope * y).astype(o_ref.dtype)


# ---------------------------------------------------------------------------
# Host glue: padding, space-to-depth, tap-folded weight layouts (layout only).
# ---------------------------------------------------------------------------
def _pad_cin_to(x, w, multiple):
    """Zero-pad input channels (and weight Cin) to a sublane-friendly size."""
    cin = x.shape[-1]
    pad = (-cin) % multiple
    if pad:
        x = jnp.pad(x, ((0, 0), (0, 0), (0, 0), (0, pad)))
        w = jnp.pad(w, ((0, 0), (0, pad), (0, 0), (0, 0)))
    return x, w


def _pad_hw(x):
    return jnp.pad(x, ((0, 0), (1, 1), (1, 1), (0, 0)))


def _space_to_depth2(x):
    # (N, Hp, Wp, C) -> (N, Hp/2, Wp/2, 4*C);  channel = (py*2+px)*C + c
    n, hp, wp, c = x.shape
    x = x.reshape(n, hp // 2, 2, wp // 2, 2, c)
    x = jnp.transpose(x, (0, 1, 3, 2, 4, 5))
    return x.reshape(n, hp // 2, wp // 2, 4 * c)


def _weight_folded_s1(w):
    # PyTorch (Cout, Cin, kh, kw) -> (kh*kw*Cin, Cout); K = (dy*kw+dx)*Cin + c.
    cout, cin, kh, kw = w.shape
    return jnp.transpose(w, (2, 3, 1, 0)).reshape(kh * kw * cin, cout)


def _weight_folded_s2(w):
    # Stride-2 4x4 conv == stride-1 2x2 conv on space-to-depth(2) input.
    # (Cout, Cin, 4, 4) -> (4*4*Cin, Cout); K = (a*2+b)*4*Cin + (py*2+px)*Cin + c.
    cout, cin, kh, kw = w.shape
    assert kh == 4 and kw == 4
    w_r = w.reshape(cout, cin, 2, 2, 2, 2)           # (co, c, a, py, b, px)
    w_t = jnp.transpose(w_r, (2, 4, 3, 5, 1, 0))      # (a, b, py, px, c, co)
    return w_t.reshape(16 * cin, cout)


def _pick_row_tile(rows, max_rows=8):
    """Largest multiple-of-8 divisor of `rows` that is <= max_rows, else rows.

    max_rows=8 keeps the toy demo multi-block; raise it for production image
    sizes (and lower it again on v7x's 64 MiB VMEM).
    """
    best = rows
    d = 8
    while d <= min(rows, max_rows):
        if rows % d == 0:
            best = d
        d += 8
    return best


# ---------------------------------------------------------------------------
# pallas_call wrappers
# ---------------------------------------------------------------------------
def _conv_pallas(xs, wk, kh, kw, cout, *, compute_stats, out_dtype):
    """Tap/row-folded conv on a padded unit-stride input xs (bf16 NHWC)."""
    n, hs, ws, cp = xs.shape
    ho, wo = hs - kh + 1, ws - kw + 1
    tho = _pick_row_tile(ho, max_rows=8)
    n_hb = ho // tho

    kern = functools.partial(_conv_kernel, kh=kh, kw=kw, tho=tho, wo=wo,
                             cout=cout, compute_stats=compute_stats)

    conv_spec = pl.BlockSpec((1, tho * wo, cout), lambda b, r: (b, r, 0))
    conv_shape = jax.ShapeDtypeStruct((n, ho * wo, cout), out_dtype)
    if compute_stats:
        stat_shape = jax.ShapeDtypeStruct((n * n_hb, 8, cout), jnp.float32)
        out_specs = (
            conv_spec,
            pl.BlockSpec((1, 8, cout), lambda b, r: (b * n_hb + r, 0, 0)),
            pl.BlockSpec((1, 8, cout), lambda b, r: (b * n_hb + r, 0, 0)),
        )
        out_shape = (conv_shape, stat_shape, stat_shape)
    else:
        out_specs = conv_spec
        out_shape = conv_shape

    res = pl.pallas_call(
        kern,
        grid=(n, n_hb),
        in_specs=[
            # Full padded image per batch index: DMA'd once, resident across
            # all of its row blocks (block index depends only on `b`).
            pl.BlockSpec((1, hs, ws, cp), lambda b, r: (b, 0, 0, 0)),
            # Tap-folded weights: resident across the whole grid.
            pl.BlockSpec(wk.shape, lambda b, r: (0, 0)),
        ],
        out_specs=out_specs,
        out_shape=out_shape,
        compiler_params=pltpu.CompilerParams(
            dimension_semantics=("parallel", "parallel"),
            vmem_limit_bytes=_VMEM_LIMIT),
    )(xs, wk)

    if compute_stats:
        conv, psum, pssq = res
        return conv, psum[:, 0, :], pssq[:, 0, :], (ho, wo, tho)
    return res, None, None, (ho, wo, tho)


def _bn_lrelu_pallas(conv3d, scale, shift, ho, wo, slope):
    """Phase-2 BN affine + LeakyReLU on a lane-dense (N*Ho, Wo*Cout) view."""
    n, _, cout = conv3d.shape
    wc = wo * cout
    x2d = conv3d.reshape(n * ho, wc)                  # free contiguous reshape
    sc = jnp.tile(scale.astype(jnp.float32), wo).reshape(1, wc)
    sh = jnp.tile(shift.astype(jnp.float32), wo).reshape(1, wc)
    rows = n * ho
    tr = _pick_row_tile(rows, max_rows=512)

    y = pl.pallas_call(
        functools.partial(_bn_lrelu_kernel, slope=slope),
        grid=(rows // tr,),
        in_specs=[
            pl.BlockSpec((tr, wc), lambda i: (i, 0)),
            pl.BlockSpec((1, wc), lambda i: (0, 0)),
            pl.BlockSpec((1, wc), lambda i: (0, 0)),
        ],
        out_specs=pl.BlockSpec((tr, wc), lambda i: (i, 0)),
        out_shape=jax.ShapeDtypeStruct((rows, wc), jnp.bfloat16),
        compiler_params=pltpu.CompilerParams(
            dimension_semantics=("parallel",),
            vmem_limit_bytes=_VMEM_LIMIT),
    )(x2d, sc, sh)
    return y.reshape(n, ho, wo, cout)


# ---------------------------------------------------------------------------
# Layers
# ---------------------------------------------------------------------------
def conv_bn_lrelu(x, w, gamma, beta, *, stride, eps=1e-5, slope=0.2):
    """Conv2d(k=4, pad=1, bias=False) -> train-mode BatchNorm2d -> LeakyReLU."""
    n = x.shape[0]
    cout = w.shape[0]
    x, w = _pad_cin_to(x, w, 4 if stride == 2 else 8)
    xp = _pad_hw(x)
    if stride == 2:
        # TODO(synk): odd spatial sizes would need the plain stride-2 path.
        assert xp.shape[1] % 2 == 0 and xp.shape[2] % 2 == 0
        xs = _space_to_depth2(xp)
        wk = _weight_folded_s2(w).astype(jnp.bfloat16)
        kh = kw = 2
    else:
        xs = xp
        wk = _weight_folded_s1(w).astype(jnp.bfloat16)
        kh = kw = 4

    conv, psum, pssq, (ho, wo, _) = _conv_pallas(
        xs, wk, kh, kw, cout, compute_stats=True, out_dtype=jnp.bfloat16)

    # Phase 1.5: O(Cout)-sized reduction of the per-block partial stats.
    m = n * ho * wo
    mean = jnp.sum(psum, axis=0) / m
    var = jnp.maximum(jnp.sum(pssq, axis=0) / m - mean * mean, 0.0)
    scale = gamma * jax.lax.rsqrt(var + eps)
    shift = beta - mean * scale

    # Phase 2: lane-dense affine + LeakyReLU, bf16 output for the next layer.
    return _bn_lrelu_pallas(conv, scale, shift, ho, wo, slope)


def conv_head(x, w, b):
    """Final Conv2d(out_dims, 1, k=4, stride=1, pad=1) with bias."""
    x, w = _pad_cin_to(x, w, 8)
    xp = _pad_hw(x)
    # (1, K) f32 flat weights -> in-kernel VPU multiply + lane reduction.
    w_vec = jnp.transpose(_weight_folded_s1(w), (1, 0)).astype(jnp.float32)
    conv, _, _, (ho, wo, _) = _conv_pallas(
        xp, w_vec, 4, 4, 1, compute_stats=False, out_dtype=jnp.float32)
    y = conv.reshape(x.shape[0], ho, wo, 1)
    return y + b.reshape(1, 1, 1, 1)   # scalar bias add: trivial XLA glue


# ---------------------------------------------------------------------------
# Full discriminator
# ---------------------------------------------------------------------------
def init_params(key, input_channels=3, init_channels=8, num_layers=3):
    """Deterministic synthetic parameters matching NLayerDiscriminator.__init__."""
    kw = 4
    dims = [input_channels, init_channels]
    nf_mult = 1
    for n in range(1, num_layers):
        nf_mult = min(2 ** n, 8)
        dims.append(init_channels * nf_mult)
    nf_mult = min(2 ** num_layers, 8)
    dims.append(init_channels * nf_mult)                 # stride-1 layer output
    strides = [2] * num_layers + [1]

    params = []
    for li in range(len(strides)):  # ConvNormAct blocks (conv bias=False for BN)
        cin, cout = dims[li], dims[li + 1]
        key, k1, k2, k3 = jax.random.split(key, 4)
        w = 0.05 * jax.random.normal(k1, (cout, cin, kw, kw), jnp.float32)
        gamma = 1.0 + 0.1 * jax.random.normal(k2, (cout,), jnp.float32)
        beta = 0.1 * jax.random.normal(k3, (cout,), jnp.float32)
        params.append(dict(w=w, gamma=gamma, beta=beta, stride=strides[li]))

    # Final Conv2d(out_dims, 1, kernel_size=4, stride=1, padding=1) with bias.
    key, k1, k2 = jax.random.split(key, 3)
    w_last = 0.05 * jax.random.normal(k1, (1, dims[-1], kw, kw), jnp.float32)
    b_last = 0.1 * jax.random.normal(k2, (1,), jnp.float32)
    params.append(dict(w=w_last, b=b_last, stride=1))
    return params


def nlayer_discriminator_forward(x_nchw, params):
    # NCHW (PyTorch convention) -> NHWC bf16 for the kernels.
    x = jnp.transpose(x_nchw, (0, 2, 3, 1)).astype(jnp.bfloat16)
    for layer in params[:-1]:
        x = conv_bn_lrelu(x, layer["w"], layer["gamma"], layer["beta"],
                          stride=layer["stride"])
    last = params[-1]
    y = conv_head(x, last["w"], last["b"])                # (N, Ho, Wo, 1) f32
    # Back to NCHW to match PyTorch output layout.
    return jnp.transpose(y, (0, 3, 1, 2)).astype(jnp.float32)


if __name__ == "__main__":
    key = jax.random.PRNGKey(0)
    key, kx = jax.random.split(key)

    # Small example consistent with the module: batch=2, 3 input channels,
    # 32x32 spatial (3 stride-2 convs + 2 stride-1 k=4 convs -> 2x2 patch map).
    x = jax.random.normal(kx, (2, 3, 32, 32), jnp.float32)

    params = init_params(key, input_channels=3, init_channels=8, num_layers=3)

    fwd = jax.jit(lambda inp: nlayer_discriminator_forward(inp, params))
    out = fwd(x)
    jax.block_until_ready(out)

    assert out.shape == (2, 1, 2, 2), out.shape
    assert bool(jnp.all(jnp.isfinite(out)))
    print("KERNEL_OK")
</pallas_src>

<mosaic_0001>
module attributes {stable_mosaic.version = 11 : i64} {
  func.func @_conv_kernel(%arg0: i32, %arg1: i32, %arg2: memref<1x17x17x16xbf16, #tpu.memory_space<vmem>>, %arg3: memref<64x8xbf16, #tpu.memory_space<vmem>>, %arg4: memref<1x128x8xbf16, #tpu.memory_space<vmem>>, %arg5: memref<1x8x8xf32, #tpu.memory_space<vmem>>, %arg6: memref<1x8x8xf32, #tpu.memory_space<vmem>>) attributes {dimension_semantics = [#tpu.dimension_semantics<parallel>, #tpu.dimension_semantics<parallel>], iteration_bounds = array<i64: 2, 2>, scalar_prefetch = 0 : i64, scratch_operands = 0 : i64, tpu.core_type = #tpu.core_type<tc>, window_params = [{transform_indices = @transform_0, window_bounds = array<i64: 1, 17, 17, 16>}, {pipeline_mode = #tpu.pipeline_mode<synchronous>, transform_indices = @transform_1, window_bounds = array<i64: 64, 8>}, {transform_indices = @transform_2, window_bounds = array<i64: 1, 128, 8>}, {transform_indices = @transform_3, window_bounds = array<i64: 1, 8, 8>}, {transform_indices = @transform_4, window_bounds = array<i64: 1, 8, 8>}]} {
    %c8_i32 = arith.constant 8 : i32
    %0 = arith.muli %arg1, %c8_i32 : i32
    %c0_i32 = arith.constant 0 : i32
    %1 = arith.addi %0, %c0_i32 : i32
    %c0 = arith.constant 0 : index
    %2 = arith.index_cast %1 : i32 to index
    %c0_0 = arith.constant 0 : index
    %c0_1 = arith.constant 0 : index
    %3 = vector.load %arg2[%c0, %2, %c0_0, %c0_1] : memref<1x17x17x16xbf16, #tpu.memory_space<vmem>>, vector<1x8x17x16xbf16>
    %4 = vector.shape_cast %3 : vector<1x8x17x16xbf16> to vector<8x17x16xbf16>
    %c1_i32 = arith.constant 1 : i32
    %5 = arith.addi %0, %c1_i32 : i32
    %c0_2 = arith.constant 0 : index
    %6 = arith.index_cast %5 : i32 to index
    %c0_3 = arith.constant 0 : index
    %c0_4 = arith.constant 0 : index
    %7 = vector.load %arg2[%c0_2, %6, %c0_3, %c0_4] : memref<1x17x17x16xbf16, #tpu.memory_space<vmem>>, vector<1x8x17x16xbf16>
    %8 = vector.shape_cast %7 : vector<1x8x17x16xbf16> to vector<8x17x16xbf16>
    %9 = vector.extract_strided_slice %4 {offsets = [0, 0, 0], sizes = [1, 17, 16], strides = [1, 1, 1]} : vector<8x17x16xbf16> to vector<1x17x16xbf16>
    %10 = vector.shape_cast %9 : vector<1x17x16xbf16> to vector<17x16xbf16>
    %11 = vector.extract_strided_slice %10 {offsets = [0, 0], sizes = [16, 16], strides = [1, 1]} : vector<17x16xbf16> to vector<16x16xbf16>
    %12 = vector.extract_strided_slice %10 {offsets = [1, 0], sizes = [16, 16], strides = [1, 1]} : vector<17x16xbf16> to vector<16x16xbf16>
    %13 = vector.extract_strided_slice %8 {offsets = [0, 0, 0], sizes = [1, 17, 16], strides = [1, 1, 1]} : vector<8x17x16xbf16> to vector<1x17x16xbf16>
    %14 = vector.shape_cast %13 : vector<1x17x16xbf16> to vector<17x16xbf16>
    %15 = vector.extract_strided_slice %14 {offsets = [0, 0], sizes = [16, 16], strides = [1, 1]} : vector<17x16xbf16> to vector<16x16xbf16>
    %16 = vector.extract_strided_slice %14 {offsets = [1, 0], sizes = [16, 16], strides = [1, 1]} : vector<17x16xbf16> to vector<16x16xbf16>
    %17 = tpu.concatenate %11, %12, %15, %16 in 1 : vector<16x16xbf16>, vector<16x16xbf16>, vector<16x16xbf16>, vector<16x16xbf16> -> vector<16x64xbf16>
    %18 = vector.extract_strided_slice %4 {offsets = [1, 0, 0], sizes = [1, 17, 16], strides = [1, 1, 1]} : vector<8x17x16xbf16> to vector<1x17x16xbf16>
    %19 = vector.shape_cast %18 : vector<1x17x16xbf16> to vector<17x16xbf16>
    %20 = vector.extract_strided_slice %19 {offsets = [0, 0], sizes = [16, 16], strides = [1, 1]} : vector<17x16xbf16> to vector<16x16xbf16>
    %21 = vector.extract_strided_slice %19 {offsets = [1, 0], sizes = [16, 16], strides = [1, 1]} : vector<17x16xbf16> to vector<16x16xbf16>
    %22 = vector.extract_strided_slice %8 {offsets = [1, 0, 0], sizes = [1, 17, 16], strides = [1, 1, 1]} : vector<8x17x16xbf16> to vector<1x17x16xbf16>
    %23 = vector.shape_cast %22 : vector<1x17x16xbf16> to vector<17x16xbf16>
    %24 = vector.extract_strided_slice %23 {offsets = [0, 0], sizes = [16, 16], strides = [1, 1]} : vector<17x16xbf16> to vector<16x16xbf16>
    %25 = vector.extract_strided_slice %23 {offsets = [1, 0], sizes = [16, 16], strides = [1, 1]} : vector<17x16xbf16> to vector<16x16xbf16>
    %26 = tpu.concatenate %20, %21, %24, %25 in 1 : vector<16x16xbf16>, vector<16x16xbf16>, vector<16x16xbf16>, vector<16x16xbf16> -> vector<16x64xbf16>
    %27 = vector.extract_strided_slice %4 {offsets = [2, 0, 0], sizes = [1, 17, 16], strides = [1, 1, 1]} : vector<8x17x16xbf16> to vector<1x17x16xbf16>
    %28 = vector.shape_cast %27 : vector<1x17x16xbf16> to vector<17x16xbf16>
    %29 = vector.extract_strided_slice %28 {offsets = [0, 0], sizes = [16, 16], strides = [1, 1]} : vector<17x16xbf16> to vector<16x16xbf16>
    %30 = vector.extract_strided_slice %28 {offsets = [1, 0], sizes = [16, 16], strides = [1, 1]} : vector<17x16xbf16> to vector<16x16xbf16>
    %31 = vector.extract_strided_slice %8 {offsets = [2, 0, 0], sizes = [1, 17, 16], strides = [1, 1, 1]} : vector<8x17x16xbf16> to vector<1x17x16xbf16>
    %32 = vector.shape_cast %31 : vector<1x17x16xbf16> to vector<17x16xbf16>
    %33 = vector.extract_strided_slice %32 {offsets = [0, 0], sizes = [16, 16], strides = [1, 1]} : vector<17x16xbf16> to vector<16x16xbf16>
    %34 = vector.extract_strided_slice %32 {offsets = [1, 0], sizes = [16, 16], strides = [1, 1]} : vector<17x16xbf16> to vector<16x16xbf16>
    %35 = tpu.concatenate %29, %30, %33, %34 in 1 : vector<16x16xbf16>, vector<16x16xbf16>, vector<16x16xbf16>, vector<16x16xbf16> -> vector<16x64xbf16>
    %36 = vector.extract_strided_slice %4 {offsets = [3, 0, 0], sizes = [1, 17, 16], strides = [1, 1, 1]} : vector<8x17x16xbf16> to vector<1x17x16xbf16>
    %37 = vector.shape_cast %36 : vector<1x17x16xbf16> to vector<17x16xbf16>
    %38 = vector.extract_strided_slice %37 {offsets = [0, 0], sizes = [16, 16], strides = [1, 1]} : vector<17x16xbf16> to vector<16x16xbf16>
    %39 = vector.extract_strided_slice %37 {offsets = [1, 0], sizes = [16, 16], strides = [1, 1]} : vector<17x16xbf16> to vector<16x16xbf16>
    %40 = vector.extract_strided_slice %8 {offsets = [3, 0, 0], sizes = [1, 17, 16], strides = [1, 1, 1]} : vector<8x17x16xbf16> to vector<1x17x16xbf16>
    %41 = vector.shape_cast %40 : vector<1x17x16xbf16> to vector<17x16xbf16>
    %42 = vector.extract_strided_slice %41 {offsets = [0, 0], sizes = [16, 16], strides = [1, 1]} : vector<17x16xbf16> to vector<16x16xbf16>
    %43 = vector.extract_strided_slice %41 {offsets = [1, 0], sizes = [16, 16], strides = [1, 1]} : vector<17x16xbf16> to vector<16x16xbf16>
    %44 = tpu.concatenate %38, %39, %42, %43 in 1 : vector<16x16xbf16>, vector<16x16xbf16>, vector<16x16xbf16>, vector<16x16xbf16> -> vector<16x64xbf16>
    %45 = vector.extract_strided_slice %4 {offsets = [4, 0, 0], sizes = [1, 17, 16], strides = [1, 1, 1]} : vector<8x17x16xbf16> to vector<1x17x16xbf16>
    %46 = vector.shape_cast %45 : vector<1x17x16xbf16> to vector<17x16xbf16>
    %47 = vector.extract_strided_slice %46 {offsets = [0, 0], sizes = [16, 16], strides = [1, 1]} : vector<17x16xbf16> to vector<16x16xbf16>
    %48 = vector.extract_strided_slice %46 {offsets = [1, 0], sizes = [16, 16], strides = [1, 1]} : vector<17x16xbf16> to vector<16x16xbf16>
    %49 = vector.extract_strided_slice %8 {offsets = [4, 0, 0], sizes = [1, 17, 16], strides = [1, 1, 1]} : vector<8x17x16xbf16> to vector<1x17x16xbf16>
    %50 = vector.shape_cast %49 : vector<1x17x16xbf16> to vector<17x16xbf16>
    %51 = vector.extract_strided_slice %50 {offsets = [0, 0], sizes = [16, 16], strides = [1, 1]} : vector<17x16xbf16> to vector<16x16xbf16>
    %52 = vector.extract_strided_slice %50 {offsets = [1, 0], sizes = [16, 16], strides = [1, 1]} : vector<17x16xbf16> to vector<16x16xbf16>
    %53 = tpu.concatenate %47, %48, %51, %52 in 1 : vector<16x16xbf16>, vector<16x16xbf16>, vector<16x16xbf16>, vector<16x16xbf16> -> vector<16x64xbf16>
    %54 = vector.extract_strided_slice %4 {offsets = [5, 0, 0], sizes = [1, 17, 16], strides = [1, 1, 1]} : vector<8x17x16xbf16> to vector<1x17x16xbf16>
    %55 = vector.shape_cast %54 : vector<1x17x16xbf16> to vector<17x16xbf16>
    %56 = vector.extract_strided_slice %55 {offsets = [0, 0], sizes = [16, 16], strides = [1, 1]} : vector<17x16xbf16> to vector<16x16xbf16>
    %57 = vector.extract_strided_slice %55 {offsets = [1, 0], sizes = [16, 16], strides = [1, 1]} : vector<17x16xbf16> to vector<16x16xbf16>
    %58 = vector.extract_strided_slice %8 {offsets = [5, 0, 0], sizes = [1, 17, 16], strides = [1, 1, 1]} : vector<8x17x16xbf16> to vector<1x17x16xbf16>
    %59 = vector.shape_cast %58 : vector<1x17x16xbf16> to vector<17x16xbf16>
    %60 = vector.extract_strided_slice %59 {offsets = [0, 0], sizes = [16, 16], strides = [1, 1]} : vector<17x16xbf16> to vector<16x16xbf16>
    %61 = vector.extract_strided_slice %59 {offsets = [1, 0], sizes = [16, 16], strides = [1, 1]} : vector<17x16xbf16> to vector<16x16xbf16>
    %62 = tpu.concatenate %56, %57, %60, %61 in 1 : vector<16x16xbf16>, vector<16x16xbf16>, vector<16x16xbf16>, vector<16x16xbf16> -> vector<16x64xbf16>
    %63 = vector.extract_strided_slice %4 {offsets = [6, 0, 0], sizes = [1, 17, 16], strides = [1, 1, 1]} : vector<8x17x16xbf16> to vector<1x17x16xbf16>
    %64 = vector.shape_cast %63 : vector<1x17x16xbf16> to vector<17x16xbf16>
    %65 = vector.extract_strided_slice %64 {offsets = [0, 0], sizes = [16, 16], strides = [1, 1]} : vector<17x16xbf16> to vector<16x16xbf16>
    %66 = vector.extract_strided_slice %64 {offsets = [1, 0], sizes = [16, 16], strides = [1, 1]} : vector<17x16xbf16> to vector<16x16xbf16>
    %67 = vector.extract_strided_slice %8 {offsets = [6, 0, 0], sizes = [1, 17, 16], strides = [1, 1, 1]} : vector<8x17x16xbf16> to vector<1x17x16xbf16>
    %68 = vector.shape_cast %67 : vector<1x17x16xbf16> to vector<17x16xbf16>
    %69 = vector.extract_strided_slice %68 {offsets = [0, 0], sizes = [16, 16], strides = [1, 1]} : vector<17x16xbf16> to vector<16x16xbf16>
    %70 = vector.extract_strided_slice %68 {offsets = [1, 0], sizes = [16, 16], strides = [1, 1]} : vector<17x16xbf16> to vector<16x16xbf16>
    %71 = tpu.concatenate %65, %66, %69, %70 in 1 : vector<16x16xbf16>, vector<16x16xbf16>, vector<16x16xbf16>, vector<16x16xbf16> -> vector<16x64xbf16>
    %72 = vector.extract_strided_slice %4 {offsets = [7, 0, 0], sizes = [1, 17, 16], strides = [1, 1, 1]} : vector<8x17x16xbf16> to vector<1x17x16xbf16>
    %73 = vector.shape_cast %72 : vector<1x17x16xbf16> to vector<17x16xbf16>
    %74 = vector.extract_strided_slice %73 {offsets = [0, 0], sizes = [16, 16], strides = [1, 1]} : vector<17x16xbf16> to vector<16x16xbf16>
    %75 = vector.extract_strided_slice %73 {offsets = [1, 0], sizes = [16, 16], strides = [1, 1]} : vector<17x16xbf16> to vector<16x16xbf16>
    %76 = vector.extract_strided_slice %8 {offsets = [7, 0, 0], sizes = [1, 17, 16], strides = [1, 1, 1]} : vector<8x17x16xbf16> to vector<1x17x16xbf16>
    %77 = vector.shape_cast %76 : vector<1x17x16xbf16> to vector<17x16xbf16>
    %78 = vector.extract_strided_slice %77 {offsets = [0, 0], sizes = [16, 16], strides = [1, 1]} : vector<17x16xbf16> to vector<16x16xbf16>
    %79 = vector.extract_strided_slice %77 {offsets = [1, 0], sizes = [16, 16], strides = [1, 1]} : vector<17x16xbf16> to vector<16x16xbf16>
    %80 = tpu.concatenate %74, %75, %78, %79 in 1 : vector<16x16xbf16>, vector<16x16xbf16>, vector<16x16xbf16>, vector<16x16xbf16> -> vector<16x64xbf16>
    %81 = tpu.concatenate %17, %26, %35, %44, %53, %62, %71, %80 in 0 : vector<16x64xbf16>, vector<16x64xbf16>, vector<16x64xbf16>, vector<16x64xbf16>, vector<16x64xbf16>, vector<16x64xbf16>, vector<16x64xbf16>, vector<16x64xbf16> -> vector<128x64xbf16>
    %c0_5 = arith.constant 0 : index
    %c0_6 = arith.constant 0 : index
    %82 = vector.load %arg3[%c0_5, %c0_6] : memref<64x8xbf16, #tpu.memory_space<vmem>>, vector<64x8xbf16>
    %cst = arith.constant dense<0.000000e+00> : vector<128x8xf32>
    %83 = tpu.matmul %81, %82, %cst {dimension_numbers = #tpu.dot_dimension_numbers<[1], [0], [0], [1], [0, 0, 1, 1], [], []>} : vector<128x64xbf16>, vector<64x8xbf16>, vector<128x8xf32> -> vector<128x8xf32>
    %84 = arith.truncf %83 : vector<128x8xf32> to vector<128x8xbf16>
    %c0_7 = arith.constant 0 : index
    %c0_8 = arith.constant 0 : index
    %c0_9 = arith.constant 0 : index
    %85 = vector.load %arg4[%c0_7, %c0_8, %c0_9] : memref<1x128x8xbf16, #tpu.memory_space<vmem>>, vector<1x128x8xbf16>
    %86 = vector.shape_cast %85 : vector<1x128x8xbf16> to vector<128x8xbf16>
    %87 = vector.shape_cast %84 : vector<128x8xbf16> to vector<1x128x8xbf16>
    tpu.vector_store %arg4[%c0_7, %c0_8, %c0_9], %87 {strides = array<i32>} : memref<1x128x8xbf16, #tpu.memory_space<vmem>>, vector<1x128x8xbf16>,
    %cst_10 = arith.constant dense<0.000000e+00> : vector<8xf32>
    %88 = vector.multi_reduction <add>, %83, %cst_10 [0] : vector<128x8xf32> to vector<8xf32>
    %89 = vector.shape_cast %88 : vector<8xf32> to vector<1x8xf32>
    %90 = arith.mulf %83, %83 : vector<128x8xf32>
    %cst_11 = arith.constant dense<0.000000e+00> : vector<8xf32>
    %91 = vector.multi_reduction <add>, %90, %cst_11 [0] : vector<128x8xf32> to vector<8xf32>
    %92 = vector.shape_cast %91 : vector<8xf32> to vector<1x8xf32>
    %93 = vector.shape_cast %89 : vector<1x8xf32> to vector<1x8xf32>
    %94 = vector.broadcast %93 : vector<1x8xf32> to vector<8x8xf32>
    %c0_12 = arith.constant 0 : index
    %c0_13 = arith.constant 0 : index
    %c0_14 = arith.constant 0 : index
    %95 = vector.load %arg5[%c0_12, %c0_13, %c0_14] : memref<1x8x8xf32, #tpu.memory_space<vmem>>, vector<1x8x8xf32>
    %96 = vector.shape_cast %95 : vector<1x8x8xf32> to vector<8x8xf32>
    %97 = vector.shape_cast %94 : vector<8x8xf32> to vector<1x8x8xf32>
    tpu.vector_store %arg5[%c0_12, %c0_13, %c0_14], %97 {strides = array<i32>} : memref<1x8x8xf32, #tpu.memory_space<vmem>>, vector<1x8x8xf32>,
    %98 = vector.shape_cast %92 : vector<1x8xf32> to vector<1x8xf32>
    %99 = vector.broadcast %98 : vector<1x8xf32> to vector<8x8xf32>
    %c0_15 = arith.constant 0 : index
    %c0_16 = arith.constant 0 : index
    %c0_17 = arith.constant 0 : index
    %100 = vector.load %arg6[%c0_15, %c0_16, %c0_17] : memref<1x8x8xf32, #tpu.memory_space<vmem>>, vector<1x8x8xf32>
    %101 = vector.shape_cast %100 : vector<1x8x8xf32> to vector<8x8xf32>
    %102 = vector.shape_cast %99 : vector<8x8xf32> to vector<1x8x8xf32>
    tpu.vector_store %arg6[%c0_15, %c0_16, %c0_17], %102 {strides = array<i32>} : memref<1x8x8xf32, #tpu.memory_space<vmem>>, vector<1x8x8xf32>,
    return
  }
  func.func @transform_0(%arg0: i32, %arg1: i32) -> (i32, i32, i32, i32) {
    %c0_i32 = arith.constant 0 : i32
    %c0_i32_0 = arith.constant 0 : i32
    %c0_i32_1 = arith.constant 0 : i32
    %c0_i32_2 = arith.constant 0 : i32
    return %arg0, %c0_i32, %c0_i32_0, %c0_i32_1 : i32, i32, i32, i32
  }
  func.func @transform_1(%arg0: i32, %arg1: i32) -> (i32, i32) {
    %c0_i32 = arith.constant 0 : i32
    %c0_i32_0 = arith.constant 0 : i32
    %c0_i32_1 = arith.constant 0 : i32
    return %c0_i32, %c0_i32_0 : i32, i32
  }
  func.func @transform_2(%arg0: i32, %arg1: i32) -> (i32, i32, i32) {
    %c0_i32 = arith.constant 0 : i32
    %c0_i32_0 = arith.constant 0 : i32
    return %arg0, %arg1, %c0_i32 : i32, i32, i32
  }
  func.func @transform_3(%arg0: i32, %arg1: i32) -> (i32, i32, i32) {
    %c2_i32 = arith.constant 2 : i32
    %0 = arith.muli %arg0, %c2_i32 : i32
    %1 = arith.addi %0, %arg1 : i32
    %c0_i32 = arith.constant 0 : i32
    %c0_i32_0 = arith.constant 0 : i32
    %c0_i32_1 = arith.constant 0 : i32
    return %1, %c0_i32, %c0_i32_0 : i32, i32, i32
  }
  func.func @transform_4(%arg0: i32, %arg1: i32) -> (i32, i32, i32) {
    %c2_i32 = arith.constant 2 : i32
    %0 = arith.muli %arg0, %c2_i32 : i32
    %1 = arith.addi %0, %arg1 : i32
    %c0_i32 = arith.constant 0 : i32
    %c0_i32_0 = arith.constant 0 : i32
    %c0_i32_1 = arith.constant 0 : i32
    return %1, %c0_i32, %c0_i32_0 : i32, i32, i32
  }
}

module attributes {stable_mosaic.version = 11 : i64} {
  func.func @_bn_lrelu_kernel(%arg0: i32, %arg1: memref<32x128xbf16, #tpu.memory_space<vmem>>, %arg2: memref<1x128xf32, #tpu.memory_space<vmem>>, %arg3: memref<1x128xf32, #tpu.memory_space<vmem>>, %arg4: memref<32x128xbf16, #tpu.memory_space<vmem>>) attributes {dimension_semantics = [#tpu.dimension_semantics<parallel>], iteration_bounds = array<i64: 1>, scalar_prefetch = 0 : i64, scratch_operands = 0 : i64, tpu.core_type = #tpu.core_type<tc>, window_params = [{transform_indices = @transform_0, window_bounds = array<i64: 32, 128>}, {pipeline_mode = #tpu.pipeline_mode<synchronous>, transform_indices = @transform_1, window_bounds = array<i64: 1, 128>}, {pipeline_mode = #tpu.pipeline_mode<synchronous>, transform_indices = @transform_2, window_bounds = array<i64: 1, 128>}, {transform_indices = @transform_3, window_bounds = array<i64: 32, 128>}]} {
    %c0 = arith.constant 0 : index
    %c0_0 = arith.constant 0 : index
    %0 = vector.load %arg1[%c0, %c0_0] : memref<32x128xbf16, #tpu.memory_space<vmem>>, vector<32x128xbf16>
    %1 = arith.extf %0 : vector<32x128xbf16> to vector<32x128xf32>
    %c0_1 = arith.constant 0 : index
    %c0_2 = arith.constant 0 : index
    %2 = vector.load %arg2[%c0_1, %c0_2] : memref<1x128xf32, #tpu.memory_space<vmem>>, vector<1x128xf32>
    %3 = vector.broadcast %2 : vector<1x128xf32> to vector<32x128xf32>
    %4 = arith.mulf %1, %3 : vector<32x128xf32>
    %c0_3 = arith.constant 0 : index
    %c0_4 = arith.constant 0 : index
    %5 = vector.load %arg3[%c0_3, %c0_4] : memref<1x128xf32, #tpu.memory_space<vmem>>, vector<1x128xf32>
    %6 = vector.broadcast %5 : vector<1x128xf32> to vector<32x128xf32>
    %7 = arith.addf %4, %6 : vector<32x128xf32>
    %cst = arith.constant 0.000000e+00 : f32
    %8 = vector.broadcast %cst : f32 to vector<32x128xf32>
    %9 = arith.cmpf oge, %7, %8 : vector<32x128xf32>
    %cst_5 = arith.constant 2.000000e-01 : f32
    %10 = vector.broadcast %cst_5 : f32 to vector<32x128xf32>
    %11 = arith.mulf %10, %7 : vector<32x128xf32>
    %12 = arith.select %9, %7, %11 : vector<32x128xi1>, vector<32x128xf32>
    %13 = arith.truncf %12 : vector<32x128xf32> to vector<32x128xbf16>
    %c0_6 = arith.constant 0 : index
    %c0_7 = arith.constant 0 : index
    %14 = vector.load %arg4[%c0_6, %c0_7] : memref<32x128xbf16, #tpu.memory_space<vmem>>, vector<32x128xbf16>
    tpu.vector_store %arg4[%c0_6, %c0_7], %13 {strides = array<i32>} : memref<32x128xbf16, #tpu.memory_space<vmem>>, vector<32x128xbf16>,
    return
  }
  func.func @transform_0(%arg0: i32) -> (i32, i32) {
    %c0_i32 = arith.constant 0 : i32
    %c0_i32_0 = arith.constant 0 : i32
    return %arg0, %c0_i32 : i32, i32
  }
  func.func @transform_1(%arg0: i32) -> (i32, i32) {
    %c0_i32 = arith.constant 0 : i32
    %c0_i32_0 = arith.constant 0 : i32
    %c0_i32_1 = arith.constant 0 : i32
    return %c0_i32, %c0_i32_0 : i32, i32
  }
  func.func @transform_2(%arg0: i32) -> (i32, i32) {
    %c0_i32 = arith.constant 0 : i32
    %c0_i32_0 = arith.constant 0 : i32
    %c0_i32_1 = arith.constant 0 : i32
    return %c0_i32, %c0_i32_0 : i32, i32
  }
  func.func @transform_3(%arg0: i32) -> (i32, i32) {
    %c0_i32 = arith.constant 0 : i32
    %c0_i32_0 = arith.constant 0 : i32
    return %arg0, %c0_i32 : i32, i32
  }
}

module attributes {stable_mosaic.version = 11 : i64} {
  func.func @_conv_kernel(%arg0: i32, %arg1: i32, %arg2: memref<1x9x9x32xbf16, #tpu.memory_space<vmem>>, %arg3: memref<128x16xbf16, #tpu.memory_space<vmem>>, %arg4: memref<1x64x16xbf16, #tpu.memory_space<vmem>>, %arg5: memref<1x8x16xf32, #tpu.memory_space<vmem>>, %arg6: memref<1x8x16xf32, #tpu.memory_space<vmem>>) attributes {dimension_semantics = [#tpu.dimension_semantics<parallel>, #tpu.dimension_semantics<parallel>], iteration_bounds = array<i64: 2, 1>, scalar_prefetch = 0 : i64, scratch_operands = 0 : i64, tpu.core_type = #tpu.core_type<tc>, window_params = [{transform_indices = @transform_0, window_bounds = array<i64: 1, 9, 9, 32>}, {pipeline_mode = #tpu.pipeline_mode<synchronous>, transform_indices = @transform_1, window_bounds = array<i64: 128, 16>}, {transform_indices = @transform_2, window_bounds = array<i64: 1, 64, 16>}, {transform_indices = @transform_3, window_bounds = array<i64: 1, 8, 16>}, {transform_indices = @transform_4, window_bounds = array<i64: 1, 8, 16>}]} {
    %c8_i32 = arith.constant 8 : i32
    %0 = arith.muli %arg1, %c8_i32 : i32
    %c0_i32 = arith.constant 0 : i32
    %1 = arith.addi %0, %c0_i32 : i32
    %c0 = arith.constant 0 : index
    %2 = arith.index_cast %1 : i32 to index
    %c0_0 = arith.constant 0 : index
    %c0_1 = arith.constant 0 : index
    %3 = vector.load %arg2[%c0, %2, %c0_0, %c0_1] : memref<1x9x9x32xbf16, #tpu.memory_space<vmem>>, vector<1x8x9x32xbf16>
    %4 = vector.shape_cast %3 : vector<1x8x9x32xbf16> to vector<8x9x32xbf16>
    %c1_i32 = arith.constant 1 : i32
    %5 = arith.addi %0, %c1_i32 : i32
    %c0_2 = arith.constant 0 : index
    %6 = arith.index_cast %5 : i32 to index
    %c0_3 = arith.constant 0 : index
    %c0_4 = arith.constant 0 : index
    %7 = vector.load %arg2[%c0_2, %6, %c0_3, %c0_4] : memref<1x9x9x32xbf16, #tpu.memory_space<vmem>>, vector<1x8x9x32xbf16>
    %8 = vector.shape_cast %7 : vector<1x8x9x32xbf16> to vector<8x9x32xbf16>
    %9 = vector.extract_strided_slice %4 {offsets = [0, 0, 0], sizes = [1, 9, 32], strides = [1, 1, 1]} : vector<8x9x32xbf16> to vector<1x9x32xbf16>
    %10 = vector.shape_cast %9 : vector<1x9x32xbf16> to vector<9x32xbf16>
    %11 = vector.extract_strided_slice %10 {offsets = [0, 0], sizes = [8, 32], strides = [1, 1]} : vector<9x32xbf16> to vector<8x32xbf16>
    %12 = vector.extract_strided_slice %10 {offsets = [1, 0], sizes = [8, 32], strides = [1, 1]} : vector<9x32xbf16> to vector<8x32xbf16>
    %13 = vector.extract_strided_slice %8 {offsets = [0, 0, 0], sizes = [1, 9, 32], strides = [1, 1, 1]} : vector<8x9x32xbf16> to vector<1x9x32xbf16>
    %14 = vector.shape_cast %13 : vector<1x9x32xbf16> to vector<9x32xbf16>
    %15 = vector.extract_strided_slice %14 {offsets = [0, 0], sizes = [8, 32], strides = [1, 1]} : vector<9x32xbf16> to vector<8x32xbf16>
    %16 = vector.extract_strided_slice %14 {offsets = [1, 0], sizes = [8, 32], strides = [1, 1]} : vector<9x32xbf16> to vector<8x32xbf16>
    %17 = tpu.concatenate %11, %12, %15, %16 in 1 : vector<8x32xbf16>, vector<8x32xbf16>, vector<8x32xbf16>, vector<8x32xbf16> -> vector<8x128xbf16>
    %18 = vector.extract_strided_slice %4 {offsets = [1, 0, 0], sizes = [1, 9, 32], strides = [1, 1, 1]} : vector<8x9x32xbf16> to vector<1x9x32xbf16>
    %19 = vector.shape_cast %18 : vector<1x9x32xbf16> to vector<9x32xbf16>
    %20 = vector.extract_strided_slice %19 {offsets = [0, 0], sizes = [8, 32], strides = [1, 1]} : vector<9x32xbf16> to vector<8x32xbf16>
    %21 = vector.extract_strided_slice %19 {offsets = [1, 0], sizes = [8, 32], strides = [1, 1]} : vector<9x32xbf16> to vector<8x32xbf16>
    %22 = vector.extract_strided_slice %8 {offsets = [1, 0, 0], sizes = [1, 9, 32], strides = [1, 1, 1]} : vector<8x9x32xbf16> to vector<1x9x32xbf16>
    %23 = vector.shape_cast %22 : vector<1x9x32xbf16> to vector<9x32xbf16>
    %24 = vector.extract_strided_slice %23 {offsets = [0, 0], sizes = [8, 32], strides = [1, 1]} : vector<9x32xbf16> to vector<8x32xbf16>
    %25 = vector.extract_strided_slice %23 {offsets = [1, 0], sizes = [8, 32], strides = [1, 1]} : vector<9x32xbf16> to vector<8x32xbf16>
    %26 = tpu.concatenate %20, %21, %24, %25 in 1 : vector<8x32xbf16>, vector<8x32xbf16>, vector<8x32xbf16>, vector<8x32xbf16> -> vector<8x128xbf16>
    %27 = vector.extract_strided_slice %4 {offsets = [2, 0, 0], sizes = [1, 9, 32], strides = [1, 1, 1]} : vector<8x9x32xbf16> to vector<1x9x32xbf16>
    %28 = vector.shape_cast %27 : vector<1x9x32xbf16> to vector<9x32xbf16>
    %29 = vector.extract_strided_slice %28 {offsets = [0, 0], sizes = [8, 32], strides = [1, 1]} : vector<9x32xbf16> to vector<8x32xbf16>
    %30 = vector.extract_strided_slice %28 {offsets = [1, 0], sizes = [8, 32], strides = [1, 1]} : vector<9x32xbf16> to vector<8x32xbf16>
    %31 = vector.extract_strided_slice %8 {offsets = [2, 0, 0], sizes = [1, 9, 32], strides = [1, 1, 1]} : vector<8x9x32xbf16> to vector<1x9x32xbf16>
    %32 = vector.shape_cast %31 : vector<1x9x32xbf16> to vector<9x32xbf16>
    %33 = vector.extract_strided_slice %32 {offsets = [0, 0], sizes = [8, 32], strides = [1, 1]} : vector<9x32xbf16> to vector<8x32xbf16>
    %34 = vector.extract_strided_slice %32 {offsets = [1, 0], sizes = [8, 32], strides = [1, 1]} : vector<9x32xbf16> to vector<8x32xbf16>
    %35 = tpu.concatenate %29, %30, %33, %34 in 1 : vector<8x32xbf16>, vector<8x32xbf16>, vector<8x32xbf16>, vector<8x32xbf16> -> vector<8x128xbf16>
    %36 = vector.extract_strided_slice %4 {offsets = [3, 0, 0], sizes = [1, 9, 32], strides = [1, 1, 1]} : vector<8x9x32xbf16> to vector<1x9x32xbf16>
    %37 = vector.shape_cast %36 : vector<1x9x32xbf16> to vector<9x32xbf16>
    %38 = vector.extract_strided_slice %37 {offsets = [0, 0], sizes = [8, 32], strides = [1, 1]} : vector<9x32xbf16> to vector<8x32xbf16>
    %39 = vector.extract_strided_slice %37 {offsets = [1, 0], sizes = [8, 32], strides = [1, 1]} : vector<9x32xbf16> to vector<8x32xbf16>
    %40 = vector.extract_strided_slice %8 {offsets = [3, 0, 0], sizes = [1, 9, 32], strides = [1, 1, 1]} : vector<8x9x32xbf16> to vector<1x9x32xbf16>
    %41 = vector.shape_cast %40 : vector<1x9x32xbf16> to vector<9x32xbf16>
    %42 = vector.extract_strided_slice %41 {offsets = [0, 0], sizes = [8, 32], strides = [1, 1]} : vector<9x32xbf16> to vector<8x32xbf16>
    %43 = vector.extract_strided_slice %41 {offsets = [1, 0], sizes = [8, 32], strides = [1, 1]} : vector<9x32xbf16> to vector<8x32xbf16>
    %44 = tpu.concatenate %38, %39, %42, %43 in 1 : vector<8x32xbf16>, vector<8x32xbf16>, vector<8x32xbf16>, vector<8x32xbf16> -> vector<8x128xbf16>
    %45 = vector.extract_strided_slice %4 {offsets = [4, 0, 0], sizes = [1, 9, 32], strides = [1, 1, 1]} : vector<8x9x32xbf16> to vector<1x9x32xbf16>
    %46 = vector.shape_cast %45 : vector<1x9x32xbf16> to vector<9x32xbf16>
    %47 = vector.extract_strided_slice %46 {offsets = [0, 0], sizes = [8, 32], strides = [1, 1]} : vector<9x32xbf16> to vector<8x32xbf16>
    %48 = vector.extract_strided_slice %46 {offsets = [1, 0], sizes = [8, 32], strides = [1, 1]} : vector<9x32xbf16> to vector<8x32xbf16>
    %49 = vector.extract_strided_slice %8 {offsets = [4, 0, 0], sizes = [1, 9, 32], strides = [1, 1, 1]} : vector<8x9x32xbf16> to vector<1x9x32xbf16>
    %50 = vector.shape_cast %49 : vector<1x9x32xbf16> to vector<9x32xbf16>
    %51 = vector.extract_strided_slice %50 {offsets = [0, 0], sizes = [8, 32], strides = [1, 1]} : vector<9x32xbf16> to vector<8x32xbf16>
    %52 = vector.extract_strided_slice %50 {offsets = [1, 0], sizes = [8, 32], strides = [1, 1]} : vector<9x32xbf16> to vector<8x32xbf16>
    %53 = tpu.concatenate %47, %48, %51, %52 in 1 : vector<8x32xbf16>, vector<8x32xbf16>, vector<8x32xbf16>, vector<8x32xbf16> -> vector<8x128xbf16>
    %54 = vector.extract_strided_slice %4 {offsets = [5, 0, 0], sizes = [1, 9, 32], strides = [1, 1, 1]} : vector<8x9x32xbf16> to vector<1x9x32xbf16>
    %55 = vector.shape_cast %54 : vector<1x9x32xbf16> to vector<9x32xbf16>
    %56 = vector.extract_strided_slice %55 {offsets = [0, 0], sizes = [8, 32], strides = [1, 1]} : vector<9x32xbf16> to vector<8x32xbf16>
    %57 = vector.extract_strided_slice %55 {offsets = [1, 0], sizes = [8, 32], strides = [1, 1]} : vector<9x32xbf16> to vector<8x32xbf16>
    %58 = vector.extract_strided_slice %8 {offsets = [5, 0, 0], sizes = [1, 9, 32], strides = [1, 1, 1]} : vector<8x9x32xbf16> to vector<1x9x32xbf16>
    %59 = vector.shape_cast %58 : vector<1x9x32xbf16> to vector<9x32xbf16>
    %60 = vector.extract_strided_slice %59 {offsets = [0, 0], sizes = [8, 32], strides = [1, 1]} : vector<9x32xbf16> to vector<8x32xbf16>
    %61 = vector.extract_strided_slice %59 {offsets = [1, 0], sizes = [8, 32], strides = [1, 1]} : vector<9x32xbf16> to vector<8x32xbf16>
    %62 = tpu.concatenate %56, %57, %60, %61 in 1 : vector<8x32xbf16>, vector<8x32xbf16>, vector<8x32xbf16>, vector<8x32xbf16> -> vector<8x128xbf16>
    %63 = vector.extract_strided_slice %4 {offsets = [6, 0, 0], sizes = [1, 9, 32], strides = [1, 1, 1]} : vector<8x9x32xbf16> to vector<1x9x32xbf16>
    %64 = vector.shape_cast %63 : vector<1x9x32xbf16> to vector<9x32xbf16>
    %65 = vector.extract_strided_slice %64 {offsets = [0, 0], sizes = [8, 32], strides = [1, 1]} : vector<9x32xbf16> to vector<8x32xbf16>
    %66 = vector.extract_strided_slice %64 {offsets = [1, 0], sizes = [8, 32], strides = [1, 1]} : vector<9x32xbf16> to vector<8x32xbf16>
    %67 = vector.extract_strided_slice %8 {offsets = [6, 0, 0], sizes = [1, 9, 32], strides = [1, 1, 1]} : vector<8x9x32xbf16> to vector<1x9x32xbf16>
    %68 = vector.shape_cast %67 : vector<1x9x32xbf16> to vector<9x32xbf16>
    %69 = vector.extract_strided_slice %68 {offsets = [0, 0], sizes = [8, 32], strides = [1, 1]} : vector<9x32xbf16> to vector<8x32xbf16>
    %70 = vector.extract_strided_slice %68 {offsets = [1, 0], sizes = [8, 32], strides = [1, 1]} : vector<9x32xbf16> to vector<8x32xbf16>
    %71 = tpu.concatenate %65, %66, %69, %70 in 1 : vector<8x32xbf16>, vector<8x32xbf16>, vector<8x32xbf16>, vector<8x32xbf16> -> vector<8x128xbf16>
    %72 = vector.extract_strided_slice %4 {offsets = [7, 0, 0], sizes = [1, 9, 32], strides = [1, 1, 1]} : vector<8x9x32xbf16> to vector<1x9x32xbf16>
    %73 = vector.shape_cast %72 : vector<1x9x32xbf16> to vector<9x32xbf16>
    %74 = vector.extract_strided_slice %73 {offsets = [0, 0], sizes = [8, 32], strides = [1, 1]} : vector<9x32xbf16> to vector<8x32xbf16>
    %75 = vector.extract_strided_slice %73 {offsets = [1, 0], sizes = [8, 32], strides = [1, 1]} : vector<9x32xbf16> to vector<8x32xbf16>
    %76 = vector.extract_strided_slice %8 {offsets = [7, 0, 0], sizes = [1, 9, 32], strides = [1, 1, 1]} : vector<8x9x32xbf16> to vector<1x9x32xbf16>
    %77 = vector.shape_cast %76 : vector<1x9x32xbf16> to vector<9x32xbf16>
    %78 = vector.extract_strided_slice %77 {offsets = [0, 0], sizes = [8, 32], strides = [1, 1]} : vector<9x32xbf16> to vector<8x32xbf16>
    %79 = vector.extract_strided_slice %77 {offsets = [1, 0], sizes = [8, 32], strides = [1, 1]} : vector<9x32xbf16> to vector<8x32xbf16>
    %80 = tpu.concatenate %74, %75, %78, %79 in 1 : vector<8x32xbf16>, vector<8x32xbf16>, vector<8x32xbf16>, vector<8x32xbf16> -> vector<8x128xbf16>
    %81 = tpu.concatenate %17, %26, %35, %44, %53, %62, %71, %80 in 0 : vector<8x128xbf16>, vector<8x128xbf16>, vector<8x128xbf16>, vector<8x128xbf16>, vector<8x128xbf16>, vector<8x128xbf16>, vector<8x128xbf16>, vector<8x128xbf16> -> vector<64x128xbf16>
    %c0_5 = arith.constant 0 : index
    %c0_6 = arith.constant 0 : index
    %82 = vector.load %arg3[%c0_5, %c0_6] : memref<128x16xbf16, #tpu.memory_space<vmem>>, vector<128x16xbf16>
    %cst = arith.constant dense<0.000000e+00> : vector<64x16xf32>
    %83 = tpu.matmul %81, %82, %cst {dimension_numbers = #tpu.dot_dimension_numbers<[1], [0], [0], [1], [0, 0, 1, 1], [], []>} : vector<64x128xbf16>, vector<128x16xbf16>, vector<64x16xf32> -> vector<64x16xf32>
    %84 = arith.truncf %83 : vector<64x16xf32> to vector<64x16xbf16>
    %c0_7 = arith.constant 0 : index
    %c0_8 = arith.constant 0 : index
    %c0_9 = arith.constant 0 : index
    %85 = vector.load %arg4[%c0_7, %c0_8, %c0_9] : memref<1x64x16xbf16, #tpu.memory_space<vmem>>, vector<1x64x16xbf16>
    %86 = vector.shape_cast %85 : vector<1x64x16xbf16> to vector<64x16xbf16>
    %87 = vector.shape_cast %84 : vector<64x16xbf16> to vector<1x64x16xbf16>
    tpu.vector_store %arg4[%c0_7, %c0_8, %c0_9], %87 {strides = array<i32>} : memref<1x64x16xbf16, #tpu.memory_space<vmem>>, vector<1x64x16xbf16>,
    %cst_10 = arith.constant dense<0.000000e+00> : vector<16xf32>
    %88 = vector.multi_reduction <add>, %83, %cst_10 [0] : vector<64x16xf32> to vector<16xf32>
    %89 = vector.shape_cast %88 : vector<16xf32> to vector<1x16xf32>
    %90 = arith.mulf %83, %83 : vector<64x16xf32>
    %cst_11 = arith.constant dense<0.000000e+00> : vector<16xf32>
    %91 = vector.multi_reduction <add>, %90, %cst_11 [0] : vector<64x16xf32> to vector<16xf32>
    %92 = vector.shape_cast %91 : vector<16xf32> to vector<1x16xf32>
    %93 = vector.shape_cast %89 : vector<1x16xf32> to vector<1x16xf32>
    %94 = vector.broadcast %93 : vector<1x16xf32> to vector<8x16xf32>
    %c0_12 = arith.constant 0 : index
    %c0_13 = arith.constant 0 : index
    %c0_14 = arith.constant 0 : index
    %95 = vector.load %arg5[%c0_12, %c0_13, %c0_14] : memref<1x8x16xf32, #tpu.memory_space<vmem>>, vector<1x8x16xf32>
    %96 = vector.shape_cast %95 : vector<1x8x16xf32> to vector<8x16xf32>
    %97 = vector.shape_cast %94 : vector<8x16xf32> to vector<1x8x16xf32>
    tpu.vector_store %arg5[%c0_12, %c0_13, %c0_14], %97 {strides = array<i32>} : memref<1x8x16xf32, #tpu.memory_space<vmem>>, vector<1x8x16xf32>,
    %98 = vector.shape_cast %92 : vector<1x16xf32> to vector<1x16xf32>
    %99 = vector.broadcast %98 : vector<1x16xf32> to vector<8x16xf32>
    %c0_15 = arith.constant 0 : index
    %c0_16 = arith.constant 0 : index
    %c0_17 = arith.constant 0 : index
    %100 = vector.load %arg6[%c0_15, %c0_16, %c0_17] : memref<1x8x16xf32, #tpu.memory_space<vmem>>, vector<1x8x16xf32>
    %101 = vector.shape_cast %100 : vector<1x8x16xf32> to vector<8x16xf32>
    %102 = vector.shape_cast %99 : vector<8x16xf32> to vector<1x8x16xf32>
    tpu.vector_store %arg6[%c0_15, %c0_16, %c0_17], %102 {strides = array<i32>} : memref<1x8x16xf32, #tpu.memory_space<vmem>>, vector<1x8x16xf32>,
    return
  }
  func.func @transform_0(%arg0: i32, %arg1: i32) -> (i32, i32, i32, i32) {
    %c0_i32 = arith.constant 0 : i32
    %c0_i32_0 = arith.constant 0 : i32
    %c0_i32_1 = arith.constant 0 : i32
    %c0_i32_2 = arith.constant 0 : i32
    return %arg0, %c0_i32, %c0_i32_0, %c0_i32_1 : i32, i32, i32, i32
  }
  func.func @transform_1(%arg0: i32, %arg1: i32) -> (i32, i32) {
    %c0_i32 = arith.constant 0 : i32
    %c0_i32_0 = arith.constant 0 : i32
    %c0_i32_1 = arith.constant 0 : i32
    return %c0_i32, %c0_i32_0 : i32, i32
  }
  func.func @transform_2(%arg0: i32, %arg1: i32) -> (i32, i32, i32) {
    %c0_i32 = arith.constant 0 : i32
    %c0_i32_0 = arith.constant 0 : i32
    return %arg0, %arg1, %c0_i32 : i32, i32, i32
  }
  func.func @transform_3(%arg0: i32, %arg1: i32) -> (i32, i32, i32) {
    %c1_i32 = arith.constant 1 : i32
    %0 = arith.muli %arg0, %c1_i32 : i32
    %1 = arith.addi %0, %arg1 : i32
    %c0_i32 = arith.constant 0 : i32
    %c0_i32_0 = arith.constant 0 : i32
    %c0_i32_1 = arith.constant 0 : i32
    return %1, %c0_i32, %c0_i32_0 : i32, i32, i32
  }
  func.func @transform_4(%arg0: i32, %arg1: i32) -> (i32, i32, i32) {
    %c1_i32 = arith.constant 1 : i32
    %0 = arith.muli %arg0, %c1_i32 : i32
    %1 = arith.addi %0, %arg1 : i32
    %c0_i32 = arith.constant 0 : i32
    %c0_i32_0 = arith.constant 0 : i32
    %c0_i32_1 = arith.constant 0 : i32
    return %1, %c0_i32, %c0_i32_0 : i32, i32, i32
  }
}

module attributes {stable_mosaic.version = 11 : i64} {
  func.func @_bn_lrelu_kernel(%arg0: i32, %arg1: memref<16x128xbf16, #tpu.memory_space<vmem>>, %arg2: memref<1x128xf32, #tpu.memory_space<vmem>>, %arg3: memref<1x128xf32, #tpu.memory_space<vmem>>, %arg4: memref<16x128xbf16, #tpu.memory_space<vmem>>) attributes {dimension_semantics = [#tpu.dimension_semantics<parallel>], iteration_bounds = array<i64: 1>, scalar_prefetch = 0 : i64, scratch_operands = 0 : i64, tpu.core_type = #tpu.core_type<tc>, window_params = [{transform_indices = @transform_0, window_bounds = array<i64: 16, 128>}, {pipeline_mode = #tpu.pipeline_mode<synchronous>, transform_indices = @transform_1, window_bounds = array<i64: 1, 128>}, {pipeline_mode = #tpu.pipeline_mode<synchronous>, transform_indices = @transform_2, window_bounds = array<i64: 1, 128>}, {transform_indices = @transform_3, window_bounds = array<i64: 16, 128>}]} {
    %c0 = arith.constant 0 : index
    %c0_0 = arith.constant 0 : index
    %0 = vector.load %arg1[%c0, %c0_0] : memref<16x128xbf16, #tpu.memory_space<vmem>>, vector<16x128xbf16>
    %1 = arith.extf %0 : vector<16x128xbf16> to vector<16x128xf32>
    %c0_1 = arith.constant 0 : index
    %c0_2 = arith.constant 0 : index
    %2 = vector.load %arg2[%c0_1, %c0_2] : memref<1x128xf32, #tpu.memory_space<vmem>>, vector<1x128xf32>
    %3 = vector.broadcast %2 : vector<1x128xf32> to vector<16x128xf32>
    %4 = arith.mulf %1, %3 : vector<16x128xf32>
    %c0_3 = arith.constant 0 : index
    %c0_4 = arith.constant 0 : index
    %5 = vector.load %arg3[%c0_3, %c0_4] : memref<1x128xf32, #tpu.memory_space<vmem>>, vector<1x128xf32>
    %6 = vector.broadcast %5 : vector<1x128xf32> to vector<16x128xf32>
    %7 = arith.addf %4, %6 : vector<16x128xf32>
    %cst = arith.constant 0.000000e+00 : f32
    %8 = vector.broadcast %cst : f32 to vector<16x128xf32>
    %9 = arith.cmpf oge, %7, %8 : vector<16x128xf32>
    %cst_5 = arith.constant 2.000000e-01 : f32
    %10 = vector.broadcast %cst_5 : f32 to vector<16x128xf32>
    %11 = arith.mulf %10, %7 : vector<16x128xf32>
    %12 = arith.select %9, %7, %11 : vector<16x128xi1>, vector<16x128xf32>
    %13 = arith.truncf %12 : vector<16x128xf32> to vector<16x128xbf16>
    %c0_6 = arith.constant 0 : index
    %c0_7 = arith.constant 0 : index
    %14 = vector.load %arg4[%c0_6, %c0_7] : memref<16x128xbf16, #tpu.memory_space<vmem>>, vector<16x128xbf16>
    tpu.vector_store %arg4[%c0_6, %c0_7], %13 {strides = array<i32>} : memref<16x128xbf16, #tpu.memory_space<vmem>>, vector<16x128xbf16>,
    return
  }
  func.func @transform_0(%arg0: i32) -> (i32, i32) {
    %c0_i32 = arith.constant 0 : i32
    %c0_i32_0 = arith.constant 0 : i32
    return %arg0, %c0_i32 : i32, i32
  }
  func.func @transform_1(%arg0: i32) -> (i32, i32) {
    %c0_i32 = arith.constant 0 : i32
    %c0_i32_0 = arith.constant 0 : i32
    %c0_i32_1 = arith.constant 0 : i32
    return %c0_i32, %c0_i32_0 : i32, i32
  }
  func.func @transform_2(%arg0: i32) -> (i32, i32) {
    %c0_i32 = arith.constant 0 : i32
    %c0_i32_0 = arith.constant 0 : i32
    %c0_i32_1 = arith.constant 0 : i32
    return %c0_i32, %c0_i32_0 : i32, i32
  }
  func.func @transform_3(%arg0: i32) -> (i32, i32) {
    %c0_i32 = arith.constant 0 : i32
    %c0_i32_0 = arith.constant 0 : i32
    return %arg0, %c0_i32 : i32, i32
  }
}

module attributes {stable_mosaic.version = 11 : i64} {
  func.func @_conv_kernel(%arg0: i32, %arg1: i32, %arg2: memref<1x5x5x64xbf16, #tpu.memory_space<vmem>>, %arg3: memref<256x32xbf16, #tpu.memory_space<vmem>>, %arg4: memref<1x16x32xbf16, #tpu.memory_space<vmem>>, %arg5: memref<1x8x32xf32, #tpu.memory_space<vmem>>, %arg6: memref<1x8x32xf32, #tpu.memory_space<vmem>>) attributes {dimension_semantics = [#tpu.dimension_semantics<parallel>, #tpu.dimension_semantics<parallel>], iteration_bounds = array<i64: 2, 1>, scalar_prefetch = 0 : i64, scratch_operands = 0 : i64, tpu.core_type = #tpu.core_type<tc>, window_params = [{transform_indices = @transform_0, window_bounds = array<i64: 1, 5, 5, 64>}, {pipeline_mode = #tpu.pipeline_mode<synchronous>, transform_indices = @transform_1, window_bounds = array<i64: 256, 32>}, {transform_indices = @transform_2, window_bounds = array<i64: 1, 16, 32>}, {transform_indices = @transform_3, window_bounds = array<i64: 1, 8, 32>}, {transform_indices = @transform_4, window_bounds = array<i64: 1, 8, 32>}]} {
    %c4_i32 = arith.constant 4 : i32
    %0 = arith.muli %arg1, %c4_i32 : i32
    %c0_i32 = arith.constant 0 : i32
    %1 = arith.addi %0, %c0_i32 : i32
    %c0 = arith.constant 0 : index
    %2 = arith.index_cast %1 : i32 to index
    %c0_0 = arith.constant 0 : index
    %c0_1 = arith.constant 0 : index
    %3 = vector.load %arg2[%c0, %2, %c0_0, %c0_1] : memref<1x5x5x64xbf16, #tpu.memory_space<vmem>>, vector<1x4x5x64xbf16>
    %4 = vector.shape_cast %3 : vector<1x4x5x64xbf16> to vector<4x5x64xbf16>
    %c1_i32 = arith.constant 1 : i32
    %5 = arith.addi %0, %c1_i32 : i32
    %c0_2 = arith.constant 0 : index
    %6 = arith.index_cast %5 : i32 to index
    %c0_3 = arith.constant 0 : index
    %c0_4 = arith.constant 0 : index
    %7 = vector.load %arg2[%c0_2, %6, %c0_3, %c0_4] : memref<1x5x5x64xbf16, #tpu.memory_space<vmem>>, vector<1x4x5x64xbf16>
    %8 = vector.shape_cast %7 : vector<1x4x5x64xbf16> to vector<4x5x64xbf16>
    %9 = vector.extract_strided_slice %4 {offsets = [0, 0, 0], sizes = [1, 5, 64], strides = [1, 1, 1]} : vector<4x5x64xbf16> to vector<1x5x64xbf16>
    %10 = vector.shape_cast %9 : vector<1x5x64xbf16> to vector<5x64xbf16>
    %11 = vector.extract_strided_slice %10 {offsets = [0, 0], sizes = [4, 64], strides = [1, 1]} : vector<5x64xbf16> to vector<4x64xbf16>
    %12 = vector.extract_strided_slice %10 {offsets = [1, 0], sizes = [4, 64], strides = [1, 1]} : vector<5x64xbf16> to vector<4x64xbf16>
    %13 = vector.extract_strided_slice %8 {offsets = [0, 0, 0], sizes = [1, 5, 64], strides = [1, 1, 1]} : vector<4x5x64xbf16> to vector<1x5x64xbf16>
    %14 = vector.shape_cast %13 : vector<1x5x64xbf16> to vector<5x64xbf16>
    %15 = vector.extract_strided_slice %14 {offsets = [0, 0], sizes = [4, 64], strides = [1, 1]} : vector<5x64xbf16> to vector<4x64xbf16>
    %16 = vector.extract_strided_slice %14 {offsets = [1, 0], sizes = [4, 64], strides = [1, 1]} : vector<5x64xbf16> to vector<4x64xbf16>
    %17 = tpu.concatenate %11, %12, %15, %16 in 1 : vector<4x64xbf16>, vector<4x64xbf16>, vector<4x64xbf16>, vector<4x64xbf16> -> vector<4x256xbf16>
    %18 = vector.extract_strided_slice %4 {offsets = [1, 0, 0], sizes = [1, 5, 64], strides = [1, 1, 1]} : vector<4x5x64xbf16> to vector<1x5x64xbf16>
    %19 = vector.shape_cast %18 : vector<1x5x64xbf16> to vector<5x64xbf16>
    %20 = vector.extract_strided_slice %19 {offsets = [0, 0], sizes = [4, 64], strides = [1, 1]} : vector<5x64xbf16> to vector<4x64xbf16>
    %21 = vector.extract_strided_slice %19 {offsets = [1, 0], sizes = [4, 64], strides = [1, 1]} : vector<5x64xbf16> to vector<4x64xbf16>
    %22 = vector.extract_strided_slice %8 {offsets = [1, 0, 0], sizes = [1, 5, 64], strides = [1, 1, 1]} : vector<4x5x64xbf16> to vector<1x5x64xbf16>
    %23 = vector.shape_cast %22 : vector<1x5x64xbf16> to vector<5x64xbf16>
    %24 = vector.extract_strided_slice %23 {offsets = [0, 0], sizes = [4, 64], strides = [1, 1]} : vector<5x64xbf16> to vector<4x64xbf16>
    %25 = vector.extract_strided_slice %23 {offsets = [1, 0], sizes = [4, 64], strides = [1, 1]} : vector<5x64xbf16> to vector<4x64xbf16>
    %26 = tpu.concatenate %20, %21, %24, %25 in 1 : vector<4x64xbf16>, vector<4x64xbf16>, vector<4x64xbf16>, vector<4x64xbf16> -> vector<4x256xbf16>
    %27 = vector.extract_strided_slice %4 {offsets = [2, 0, 0], sizes = [1, 5, 64], strides = [1, 1, 1]} : vector<4x5x64xbf16> to vector<1x5x64xbf16>
    %28 = vector.shape_cast %27 : vector<1x5x64xbf16> to vector<5x64xbf16>
    %29 = vector.extract_strided_slice %28 {offsets = [0, 0], sizes = [4, 64], strides = [1, 1]} : vector<5x64xbf16> to vector<4x64xbf16>
    %30 = vector.extract_strided_slice %28 {offsets = [1, 0], sizes = [4, 64], strides = [1, 1]} : vector<5x64xbf16> to vector<4x64xbf16>
    %31 = vector.extract_strided_slice %8 {offsets = [2, 0, 0], sizes = [1, 5, 64], strides = [1, 1, 1]} : vector<4x5x64xbf16> to vector<1x5x64xbf16>
    %32 = vector.shape_cast %31 : vector<1x5x64xbf16> to vector<5x64xbf16>
    %33 = vector.extract_strided_slice %32 {offsets = [0, 0], sizes = [4, 64], strides = [1, 1]} : vector<5x64xbf16> to vector<4x64xbf16>
    %34 = vector.extract_strided_slice %32 {offsets = [1, 0], sizes = [4, 64], strides = [1, 1]} : vector<5x64xbf16> to vector<4x64xbf16>
    %35 = tpu.concatenate %29, %30, %33, %34 in 1 : vector<4x64xbf16>, vector<4x64xbf16>, vector<4x64xbf16>, vector<4x64xbf16> -> vector<4x256xbf16>
    %36 = vector.extract_strided_slice %4 {offsets = [3, 0, 0], sizes = [1, 5, 64], strides = [1, 1, 1]} : vector<4x5x64xbf16> to vector<1x5x64xbf16>
    %37 = vector.shape_cast %36 : vector<1x5x64xbf16> to vector<5x64xbf16>
    %38 = vector.extract_strided_slice %37 {offsets = [0, 0], sizes = [4, 64], strides = [1, 1]} : vector<5x64xbf16> to vector<4x64xbf16>
    %39 = vector.extract_strided_slice %37 {offsets = [1, 0], sizes = [4, 64], strides = [1, 1]} : vector<5x64xbf16> to vector<4x64xbf16>
    %40 = vector.extract_strided_slice %8 {offsets = [3, 0, 0], sizes = [1, 5, 64], strides = [1, 1, 1]} : vector<4x5x64xbf16> to vector<1x5x64xbf16>
    %41 = vector.shape_cast %40 : vector<1x5x64xbf16> to vector<5x64xbf16>
    %42 = vector.extract_strided_slice %41 {offsets = [0, 0], sizes = [4, 64], strides = [1, 1]} : vector<5x64xbf16> to vector<4x64xbf16>
    %43 = vector.extract_strided_slice %41 {offsets = [1, 0], sizes = [4, 64], strides = [1, 1]} : vector<5x64xbf16> to vector<4x64xbf16>
    %44 = tpu.concatenate %38, %39, %42, %43 in 1 : vector<4x64xbf16>, vector<4x64xbf16>, vector<4x64xbf16>, vector<4x64xbf16> -> vector<4x256xbf16>
    %45 = tpu.concatenate %17, %26, %35, %44 in 0 : vector<4x256xbf16>, vector<4x256xbf16>, vector<4x256xbf16>, vector<4x256xbf16> -> vector<16x256xbf16>
    %c0_5 = arith.constant 0 : index
    %c0_6 = arith.constant 0 : index
    %46 = vector.load %arg3[%c0_5, %c0_6] : memref<256x32xbf16, #tpu.memory_space<vmem>>, vector<256x32xbf16>
    %cst = arith.constant dense<0.000000e+00> : vector<16x32xf32>
    %47 = tpu.matmul %45, %46, %cst {dimension_numbers = #tpu.dot_dimension_numbers<[1], [0], [0], [1], [0, 0, 1, 1], [], []>} : vector<16x256xbf16>, vector<256x32xbf16>, vector<16x32xf32> -> vector<16x32xf32>
    %48 = arith.truncf %47 : vector<16x32xf32> to vector<16x32xbf16>
    %c0_7 = arith.constant 0 : index
    %c0_8 = arith.constant 0 : index
    %c0_9 = arith.constant 0 : index
    %49 = vector.load %arg4[%c0_7, %c0_8, %c0_9] : memref<1x16x32xbf16, #tpu.memory_space<vmem>>, vector<1x16x32xbf16>
    %50 = vector.shape_cast %49 : vector<1x16x32xbf16> to vector<16x32xbf16>
    %51 = vector.shape_cast %48 : vector<16x32xbf16> to vector<1x16x32xbf16>
    tpu.vector_store %arg4[%c0_7, %c0_8, %c0_9], %51 {strides = array<i32>} : memref<1x16x32xbf16, #tpu.memory_space<vmem>>, vector<1x16x32xbf16>,
    %cst_10 = arith.constant dense<0.000000e+00> : vector<32xf32>
    %52 = vector.multi_reduction <add>, %47, %cst_10 [0] : vector<16x32xf32> to vector<32xf32>
    %53 = vector.shape_cast %52 : vector<32xf32> to vector<1x32xf32>
    %54 = arith.mulf %47, %47 : vector<16x32xf32>
    %cst_11 = arith.constant dense<0.000000e+00> : vector<32xf32>
    %55 = vector.multi_reduction <add>, %54, %cst_11 [0] : vector<16x32xf32> to vector<32xf32>
    %56 = vector.shape_cast %55 : vector<32xf32> to vector<1x32xf32>
    %57 = vector.shape_cast %53 : vector<1x32xf32> to vector<1x32xf32>
    %58 = vector.broadcast %57 : vector<1x32xf32> to vector<8x32xf32>
    %c0_12 = arith.constant 0 : index
    %c0_13 = arith.constant 0 : index
    %c0_14 = arith.constant 0 : index
    %59 = vector.load %arg5[%c0_12, %c0_13, %c0_14] : memref<1x8x32xf32, #tpu.memory_space<vmem>>, vector<1x8x32xf32>
    %60 = vector.shape_cast %59 : vector<1x8x32xf32> to vector<8x32xf32>
    %61 = vector.shape_cast %58 : vector<8x32xf32> to vector<1x8x32xf32>
    tpu.vector_store %arg5[%c0_12, %c0_13, %c0_14], %61 {strides = array<i32>} : memref<1x8x32xf32, #tpu.memory_space<vmem>>, vector<1x8x32xf32>,
    %62 = vector.shape_cast %56 : vector<1x32xf32> to vector<1x32xf32>
    %63 = vector.broadcast %62 : vector<1x32xf32> to vector<8x32xf32>
    %c0_15 = arith.constant 0 : index
    %c0_16 = arith.constant 0 : index
    %c0_17 = arith.constant 0 : index
    %64 = vector.load %arg6[%c0_15, %c0_16, %c0_17] : memref<1x8x32xf32, #tpu.memory_space<vmem>>, vector<1x8x32xf32>
    %65 = vector.shape_cast %64 : vector<1x8x32xf32> to vector<8x32xf32>
    %66 = vector.shape_cast %63 : vector<8x32xf32> to vector<1x8x32xf32>
    tpu.vector_store %arg6[%c0_15, %c0_16, %c0_17], %66 {strides = array<i32>} : memref<1x8x32xf32, #tpu.memory_space<vmem>>, vector<1x8x32xf32>,
    return
  }
  func.func @transform_0(%arg0: i32, %arg1: i32) -> (i32, i32, i32, i32) {
    %c0_i32 = arith.constant 0 : i32
    %c0_i32_0 = arith.constant 0 : i32
    %c0_i32_1 = arith.constant 0 : i32
    %c0_i32_2 = arith.constant 0 : i32
    return %arg0, %c0_i32, %c0_i32_0, %c0_i32_1 : i32, i32, i32, i32
  }
  func.func @transform_1(%arg0: i32, %arg1: i32) -> (i32, i32) {
    %c0_i32 = arith.constant 0 : i32
    %c0_i32_0 = arith.constant 0 : i32
    %c0_i32_1 = arith.constant 0 : i32
    return %c0_i32, %c0_i32_0 : i32, i32
  }
  func.func @transform_2(%arg0: i32, %arg1: i32) -> (i32, i32, i32) {
    %c0_i32 = arith.constant 0 : i32
    %c0_i32_0 = arith.constant 0 : i32
    return %arg0, %arg1, %c0_i32 : i32, i32, i32
  }
  func.func @transform_3(%arg0: i32, %arg1: i32) -> (i32, i32, i32) {
    %c1_i32 = arith.constant 1 : i32
    %0 = arith.muli %arg0, %c1_i32 : i32
    %1 = arith.addi %0, %arg1 : i32
    %c0_i32 = arith.constant 0 : i32
    %c0_i32_0 = arith.constant 0 : i32
    %c0_i32_1 = arith.constant 0 : i32
    return %1, %c0_i32, %c0_i32_0 : i32, i32, i32
  }
  func.func @transform_4(%arg0: i32, %arg1: i32) -> (i32, i32, i32) {
    %c1_i32 = arith.constant 1 : i32
    %0 = arith.muli %arg0, %c1_i32 : i32
    %1 = arith.addi %0, %arg1 : i32
    %c0_i32 = arith.constant 0 : i32
    %c0_i32_0 = arith.constant 0 : i32
    %c0_i32_1 = arith.constant 0 : i32
    return %1, %c0_i32, %c0_i32_0 : i32, i32, i32
  }
}

module attributes {stable_mosaic.version = 11 : i64} {
  func.func @_bn_lrelu_kernel(%arg0: i32, %arg1: memref<8x128xbf16, #tpu.memory_space<vmem>>, %arg2: memref<1x128xf32, #tpu.memory_space<vmem>>, %arg3: memref<1x128xf32, #tpu.memory_space<vmem>>, %arg4: memref<8x128xbf16, #tpu.memory_space<vmem>>) attributes {dimension_semantics = [#tpu.dimension_semantics<parallel>], iteration_bounds = array<i64: 1>, scalar_prefetch = 0 : i64, scratch_operands = 0 : i64, tpu.core_type = #tpu.core_type<tc>, window_params = [{transform_indices = @transform_0, window_bounds = array<i64: 8, 128>}, {pipeline_mode = #tpu.pipeline_mode<synchronous>, transform_indices = @transform_1, window_bounds = array<i64: 1, 128>}, {pipeline_mode = #tpu.pipeline_mode<synchronous>, transform_indices = @transform_2, window_bounds = array<i64: 1, 128>}, {transform_indices = @transform_3, window_bounds = array<i64: 8, 128>}]} {
    %c0 = arith.constant 0 : index
    %c0_0 = arith.constant 0 : index
    %0 = vector.load %arg1[%c0, %c0_0] : memref<8x128xbf16, #tpu.memory_space<vmem>>, vector<8x128xbf16>
    %1 = arith.extf %0 : vector<8x128xbf16> to vector<8x128xf32>
    %c0_1 = arith.constant 0 : index
    %c0_2 = arith.constant 0 : index
    %2 = vector.load %arg2[%c0_1, %c0_2] : memref<1x128xf32, #tpu.memory_space<vmem>>, vector<1x128xf32>
    %3 = vector.broadcast %2 : vector<1x128xf32> to vector<8x128xf32>
    %4 = arith.mulf %1, %3 : vector<8x128xf32>
    %c0_3 = arith.constant 0 : index
    %c0_4 = arith.constant 0 : index
    %5 = vector.load %arg3[%c0_3, %c0_4] : memref<1x128xf32, #tpu.memory_space<vmem>>, vector<1x128xf32>
    %6 = vector.broadcast %5 : vector<1x128xf32> to vector<8x128xf32>
    %7 = arith.addf %4, %6 : vector<8x128xf32>
    %cst = arith.constant 0.000000e+00 : f32
    %8 = vector.broadcast %cst : f32 to vector<8x128xf32>
    %9 = arith.cmpf oge, %7, %8 : vector<8x128xf32>
    %cst_5 = arith.constant 2.000000e-01 : f32
    %10 = vector.broadcast %cst_5 : f32 to vector<8x128xf32>
    %11 = arith.mulf %10, %7 : vector<8x128xf32>
    %12 = arith.select %9, %7, %11 : vector<8x128xi1>, vector<8x128xf32>
    %13 = arith.truncf %12 : vector<8x128xf32> to vector<8x128xbf16>
    %c0_6 = arith.constant 0 : index
    %c0_7 = arith.constant 0 : index
    %14 = vector.load %arg4[%c0_6, %c0_7] : memref<8x128xbf16, #tpu.memory_space<vmem>>, vector<8x128xbf16>
    tpu.vector_store %arg4[%c0_6, %c0_7], %13 {strides = array<i32>} : memref<8x128xbf16, #tpu.memory_space<vmem>>, vector<8x128xbf16>,
    return
  }
  func.func @transform_0(%arg0: i32) -> (i32, i32) {
    %c0_i32 = arith.constant 0 : i32
    %c0_i32_0 = arith.constant 0 : i32
    return %arg0, %c0_i32 : i32, i32
  }
  func.func @transform_1(%arg0: i32) -> (i32, i32) {
    %c0_i32 = arith.constant 0 : i32
    %c0_i32_0 = arith.constant 0 : i32
    %c0_i32_1 = arith.constant 0 : i32
    return %c0_i32, %c0_i32_0 : i32, i32
  }
  func.func @transform_2(%arg0: i32) -> (i32, i32) {
    %c0_i32 = arith.constant 0 : i32
    %c0_i32_0 = arith.constant 0 : i32
    %c0_i32_1 = arith.constant 0 : i32
    return %c0_i32, %c0_i32_0 : i32, i32
  }
  func.func @transform_3(%arg0: i32) -> (i32, i32) {
    %c0_i32 = arith.constant 0 : i32
    %c0_i32_0 = arith.constant 0 : i32
    return %arg0, %c0_i32 : i32, i32
  }
}

module attributes {stable_mosaic.version = 11 : i64} {
  func.func @_bn_lrelu_kernel(%arg0: i32, %arg1: memref<6x192xbf16, #tpu.memory_space<vmem>>, %arg2: memref<1x192xf32, #tpu.memory_space<vmem>>, %arg3: memref<1x192xf32, #tpu.memory_space<vmem>>, %arg4: memref<6x192xbf16, #tpu.memory_space<vmem>>) attributes {dimension_semantics = [#tpu.dimension_semantics<parallel>], iteration_bounds = array<i64: 1>, scalar_prefetch = 0 : i64, scratch_operands = 0 : i64, tpu.core_type = #tpu.core_type<tc>, window_params = [{transform_indices = @transform_0, window_bounds = array<i64: 6, 192>}, {pipeline_mode = #tpu.pipeline_mode<synchronous>, transform_indices = @transform_1, window_bounds = array<i64: 1, 192>}, {pipeline_mode = #tpu.pipeline_mode<synchronous>, transform_indices = @transform_2, window_bounds = array<i64: 1, 192>}, {transform_indices = @transform_3, window_bounds = array<i64: 6, 192>}]} {
    %c0 = arith.constant 0 : index
    %c0_0 = arith.constant 0 : index
    %0 = vector.load %arg1[%c0, %c0_0] : memref<6x192xbf16, #tpu.memory_space<vmem>>, vector<6x192xbf16>
    %1 = arith.extf %0 : vector<6x192xbf16> to vector<6x192xf32>
    %c0_1 = arith.constant 0 : index
    %c0_2 = arith.constant 0 : index
    %2 = vector.load %arg2[%c0_1, %c0_2] : memref<1x192xf32, #tpu.memory_space<vmem>>, vector<1x192xf32>
    %3 = vector.broadcast %2 : vector<1x192xf32> to vector<6x192xf32>
    %4 = arith.mulf %1, %3 : vector<6x192xf32>
    %c0_3 = arith.constant 0 : index
    %c0_4 = arith.constant 0 : index
    %5 = vector.load %arg3[%c0_3, %c0_4] : memref<1x192xf32, #tpu.memory_space<vmem>>, vector<1x192xf32>
    %6 = vector.broadcast %5 : vector<1x192xf32> to vector<6x192xf32>
    %7 = arith.addf %4, %6 : vector<6x192xf32>
    %cst = arith.constant 0.000000e+00 : f32
    %8 = vector.broadcast %cst : f32 to vector<6x192xf32>
    %9 = arith.cmpf oge, %7, %8 : vector<6x192xf32>
    %cst_5 = arith.constant 2.000000e-01 : f32
    %10 = vector.broadcast %cst_5 : f32 to vector<6x192xf32>
    %11 = arith.mulf %10, %7 : vector<6x192xf32>
    %12 = arith.select %9, %7, %11 : vector<6x192xi1>, vector<6x192xf32>
    %13 = arith.truncf %12 : vector<6x192xf32> to vector<6x192xbf16>
    %c0_6 = arith.constant 0 : index
    %c0_7 = arith.constant 0 : index
    %14 = vector.load %arg4[%c0_6, %c0_7] : memref<6x192xbf16, #tpu.memory_space<vmem>>, vector<6x192xbf16>
    tpu.vector_store %arg4[%c0_6, %c0_7], %13 {strides = array<i32>} : memref<6x192xbf16, #tpu.memory_space<vmem>>, vector<6x192xbf16>,
    return
  }
  func.func @transform_0(%arg0: i32) -> (i32, i32) {
    %c0_i32 = arith.constant 0 : i32
    %c0_i32_0 = arith.constant 0 : i32
    return %arg0, %c0_i32 : i32, i32
  }
  func.func @transform_1(%arg0: i32) -> (i32, i32) {
    %c0_i32 = arith.constant 0 : i32
    %c0_i32_0 = arith.constant 0 : i32
    %c0_i32_1 = arith.constant 0 : i32
    return %c0_i32, %c0_i32_0 : i32, i32
  }
  func.func @transform_2(%arg0: i32) -> (i32, i32) {
    %c0_i32 = arith.constant 0 : i32
    %c0_i32_0 = arith.constant 0 : i32
    %c0_i32_1 = arith.constant 0 : i32
    return %c0_i32, %c0_i32_0 : i32, i32
  }
  func.func @transform_3(%arg0: i32) -> (i32, i32) {
    %c0_i32 = arith.constant 0 : i32
    %c0_i32_0 = arith.constant 0 : i32
    return %arg0, %c0_i32 : i32, i32
  }
}

module attributes {stable_mosaic.version = 11 : i64} {
  func.func @_conv_kernel(%arg0: i32, %arg1: i32, %arg2: memref<1x5x5x64xbf16, #tpu.memory_space<vmem>>, %arg3: memref<1x1024xf32, #tpu.memory_space<vmem>>, %arg4: memref<1x4x1xf32, #tpu.memory_space<vmem>>) attributes {dimension_semantics = [#tpu.dimension_semantics<parallel>, #tpu.dimension_semantics<parallel>], iteration_bounds = array<i64: 2, 1>, scalar_prefetch = 0 : i64, scratch_operands = 0 : i64, tpu.core_type = #tpu.core_type<tc>, window_params = [{transform_indices = @transform_0, window_bounds = array<i64: 1, 5, 5, 64>}, {pipeline_mode = #tpu.pipeline_mode<synchronous>, transform_indices = @transform_1, window_bounds = array<i64: 1, 1024>}, {transform_indices = @transform_2, window_bounds = array<i64: 1, 4, 1>}]} {
    %c2_i32 = arith.constant 2 : i32
    %0 = arith.muli %arg1, %c2_i32 : i32
    %c0_i32 = arith.constant 0 : i32
    %1 = arith.addi %0, %c0_i32 : i32
    %c0 = arith.constant 0 : index
    %2 = arith.index_cast %1 : i32 to index
    %c0_0 = arith.constant 0 : index
    %c0_1 = arith.constant 0 : index
    %3 = vector.load %arg2[%c0, %2, %c0_0, %c0_1] : memref<1x5x5x64xbf16, #tpu.memory_space<vmem>>, vector<1x2x5x64xbf16>
    %4 = vector.shape_cast %3 : vector<1x2x5x64xbf16> to vector<2x5x64xbf16>
    %c1_i32 = arith.constant 1 : i32
    %5 = arith.addi %0, %c1_i32 : i32
    %c0_2 = arith.constant 0 : index
    %6 = arith.index_cast %5 : i32 to index
    %c0_3 = arith.constant 0 : index
    %c0_4 = arith.constant 0 : index
    %7 = vector.load %arg2[%c0_2, %6, %c0_3, %c0_4] : memref<1x5x5x64xbf16, #tpu.memory_space<vmem>>, vector<1x2x5x64xbf16>
    %8 = vector.shape_cast %7 : vector<1x2x5x64xbf16> to vector<2x5x64xbf16>
    %c2_i32_5 = arith.constant 2 : i32
    %9 = arith.addi %0, %c2_i32_5 : i32
    %c0_6 = arith.constant 0 : index
    %10 = arith.index_cast %9 : i32 to index
    %c0_7 = arith.constant 0 : index
    %c0_8 = arith.constant 0 : index
    %11 = vector.load %arg2[%c0_6, %10, %c0_7, %c0_8] : memref<1x5x5x64xbf16, #tpu.memory_space<vmem>>, vector<1x2x5x64xbf16>
    %12 = vector.shape_cast %11 : vector<1x2x5x64xbf16> to vector<2x5x64xbf16>
    %c3_i32 = arith.constant 3 : i32
    %13 = arith.addi %0, %c3_i32 : i32
    %c0_9 = arith.constant 0 : index
    %14 = arith.index_cast %13 : i32 to index
    %c0_10 = arith.constant 0 : index
    %c0_11 = arith.constant 0 : index
    %15 = vector.load %arg2[%c0_9, %14, %c0_10, %c0_11] : memref<1x5x5x64xbf16, #tpu.memory_space<vmem>>, vector<1x2x5x64xbf16>
    %16 = vector.shape_cast %15 : vector<1x2x5x64xbf16> to vector<2x5x64xbf16>
    %17 = vector.extract_strided_slice %4 {offsets = [0, 0, 0], sizes = [1, 5, 64], strides = [1, 1, 1]} : vector<2x5x64xbf16> to vector<1x5x64xbf16>
    %18 = vector.shape_cast %17 : vector<1x5x64xbf16> to vector<5x64xbf16>
    %19 = vector.extract_strided_slice %18 {offsets = [0, 0], sizes = [2, 64], strides = [1, 1]} : vector<5x64xbf16> to vector<2x64xbf16>
    %20 = vector.extract_strided_slice %18 {offsets = [1, 0], sizes = [2, 64], strides = [1, 1]} : vector<5x64xbf16> to vector<2x64xbf16>
    %21 = vector.extract_strided_slice %18 {offsets = [2, 0], sizes = [2, 64], strides = [1, 1]} : vector<5x64xbf16> to vector<2x64xbf16>
    %22 = vector.extract_strided_slice %18 {offsets = [3, 0], sizes = [2, 64], strides = [1, 1]} : vector<5x64xbf16> to vector<2x64xbf16>
    %23 = vector.extract_strided_slice %8 {offsets = [0, 0, 0], sizes = [1, 5, 64], strides = [1, 1, 1]} : vector<2x5x64xbf16> to vector<1x5x64xbf16>
    %24 = vector.shape_cast %23 : vector<1x5x64xbf16> to vector<5x64xbf16>
    %25 = vector.extract_strided_slice %24 {offsets = [0, 0], sizes = [2, 64], strides = [1, 1]} : vector<5x64xbf16> to vector<2x64xbf16>
    %26 = vector.extract_strided_slice %24 {offsets = [1, 0], sizes = [2, 64], strides = [1, 1]} : vector<5x64xbf16> to vector<2x64xbf16>
    %27 = vector.extract_strided_slice %24 {offsets = [2, 0], sizes = [2, 64], strides = [1, 1]} : vector<5x64xbf16> to vector<2x64xbf16>
    %28 = vector.extract_strided_slice %24 {offsets = [3, 0], sizes = [2, 64], strides = [1, 1]} : vector<5x64xbf16> to vector<2x64xbf16>
    %29 = vector.extract_strided_slice %12 {offsets = [0, 0, 0], sizes = [1, 5, 64], strides = [1, 1, 1]} : vector<2x5x64xbf16> to vector<1x5x64xbf16>
    %30 = vector.shape_cast %29 : vector<1x5x64xbf16> to vector<5x64xbf16>
    %31 = vector.extract_strided_slice %30 {offsets = [0, 0], sizes = [2, 64], strides = [1, 1]} : vector<5x64xbf16> to vector<2x64xbf16>
    %32 = vector.extract_strided_slice %30 {offsets = [1, 0], sizes = [2, 64], strides = [1, 1]} : vector<5x64xbf16> to vector<2x64xbf16>
    %33 = vector.extract_strided_slice %30 {offsets = [2, 0], sizes = [2, 64], strides = [1, 1]} : vector<5x64xbf16> to vector<2x64xbf16>
    %34 = vector.extract_strided_slice %30 {offsets = [3, 0], sizes = [2, 64], strides = [1, 1]} : vector<5x64xbf16> to vector<2x64xbf16>
    %35 = vector.extract_strided_slice %16 {offsets = [0, 0, 0], sizes = [1, 5, 64], strides = [1, 1, 1]} : vector<2x5x64xbf16> to vector<1x5x64xbf16>
    %36 = vector.shape_cast %35 : vector<1x5x64xbf16> to vector<5x64xbf16>
    %37 = vector.extract_strided_slice %36 {offsets = [0, 0], sizes = [2, 64], strides = [1, 1]} : vector<5x64xbf16> to vector<2x64xbf16>
    %38 = vector.extract_strided_slice %36 {offsets = [1, 0], sizes = [2, 64], strides = [1, 1]} : vector<5x64xbf16> to vector<2x64xbf16>
    %39 = vector.extract_strided_slice %36 {offsets = [2, 0], sizes = [2, 64], strides = [1, 1]} : vector<5x64xbf16> to vector<2x64xbf16>
    %40 = vector.extract_strided_slice %36 {offsets = [3, 0], sizes = [2, 64], strides = [1, 1]} : vector<5x64xbf16> to vector<2x64xbf16>
    %41 = tpu.concatenate %19, %20, %21, %22, %25, %26, %27, %28, %31, %32, %33, %34, %37, %38, %39, %40 in 1 : vector<2x64xbf16>, vector<2x64xbf16>, vector<2x64xbf16>, vector<2x64xbf16>, vector<2x64xbf16>, vector<2x64xbf16>, vector<2x64xbf16>, vector<2x64xbf16>, vector<2x64xbf16>, vector<2x64xbf16>, vector<2x64xbf16>, vector<2x64xbf16>, vector<2x64xbf16>, vector<2x64xbf16>, vector<2x64xbf16>, vector<2x64xbf16> -> vector<2x1024xbf16>
    %42 = vector.extract_strided_slice %4 {offsets = [1, 0, 0], sizes = [1, 5, 64], strides = [1, 1, 1]} : vector<2x5x64xbf16> to vector<1x5x64xbf16>
    %43 = vector.shape_cast %42 : vector<1x5x64xbf16> to vector<5x64xbf16>
    %44 = vector.extract_strided_slice %43 {offsets = [0, 0], sizes = [2, 64], strides = [1, 1]} : vector<5x64xbf16> to vector<2x64xbf16>
    %45 = vector.extract_strided_slice %43 {offsets = [1, 0], sizes = [2, 64], strides = [1, 1]} : vector<5x64xbf16> to vector<2x64xbf16>
    %46 = vector.extract_strided_slice %43 {offsets = [2, 0], sizes = [2, 64], strides = [1, 1]} : vector<5x64xbf16> to vector<2x64xbf16>
    %47 = vector.extract_strided_slice %43 {offsets = [3, 0], sizes = [2, 64], strides = [1, 1]} : vector<5x64xbf16> to vector<2x64xbf16>
    %48 = vector.extract_strided_slice %8 {offsets = [1, 0, 0], sizes = [1, 5, 64], strides = [1, 1, 1]} : vector<2x5x64xbf16> to vector<1x5x64xbf16>
    %49 = vector.shape_cast %48 : vector<1x5x64xbf16> to vector<5x64xbf16>
    %50 = vector.extract_strided_slice %49 {offsets = [0, 0], sizes = [2, 64], strides = [1, 1]} : vector<5x64xbf16> to vector<2x64xbf16>
    %51 = vector.extract_strided_slice %49 {offsets = [1, 0], sizes = [2, 64], strides = [1, 1]} : vector<5x64xbf16> to vector<2x64xbf16>
    %52 = vector.extract_strided_slice %49 {offsets = [2, 0], sizes = [2, 64], strides = [1, 1]} : vector<5x64xbf16> to vector<2x64xbf16>
    %53 = vector.extract_strided_slice %49 {offsets = [3, 0], sizes = [2, 64], strides = [1, 1]} : vector<5x64xbf16> to vector<2x64xbf16>
    %54 = vector.extract_strided_slice %12 {offsets = [1, 0, 0], sizes = [1, 5, 64], strides = [1, 1, 1]} : vector<2x5x64xbf16> to vector<1x5x64xbf16>
    %55 = vector.shape_cast %54 : vector<1x5x64xbf16> to vector<5x64xbf16>
    %56 = vector.extract_strided_slice %55 {offsets = [0, 0], sizes = [2, 64], strides = [1, 1]} : vector<5x64xbf16> to vector<2x64xbf16>
    %57 = vector.extract_strided_slice %55 {offsets = [1, 0], sizes = [2, 64], strides = [1, 1]} : vector<5x64xbf16> to vector<2x64xbf16>
    %58 = vector.extract_strided_slice %55 {offsets = [2, 0], sizes = [2, 64], strides = [1, 1]} : vector<5x64xbf16> to vector<2x64xbf16>
    %59 = vector.extract_strided_slice %55 {offsets = [3, 0], sizes = [2, 64], strides = [1, 1]} : vector<5x64xbf16> to vector<2x64xbf16>
    %60 = vector.extract_strided_slice %16 {offsets = [1, 0, 0], sizes = [1, 5, 64], strides = [1, 1, 1]} : vector<2x5x64xbf16> to vector<1x5x64xbf16>
    %61 = vector.shape_cast %60 : vector<1x5x64xbf16> to vector<5x64xbf16>
    %62 = vector.extract_strided_slice %61 {offsets = [0, 0], sizes = [2, 64], strides = [1, 1]} : vector<5x64xbf16> to vector<2x64xbf16>
    %63 = vector.extract_strided_slice %61 {offsets = [1, 0], sizes = [2, 64], strides = [1, 1]} : vector<5x64xbf16> to vector<2x64xbf16>
    %64 = vector.extract_strided_slice %61 {offsets = [2, 0], sizes = [2, 64], strides = [1, 1]} : vector<5x64xbf16> to vector<2x64xbf16>
    %65 = vector.extract_strided_slice %61 {offsets = [3, 0], sizes = [2, 64], strides = [1, 1]} : vector<5x64xbf16> to vector<2x64xbf16>
    %66 = tpu.concatenate %44, %45, %46, %47, %50, %51, %52, %53, %56, %57, %58, %59, %62, %63, %64, %65 in 1 : vector<2x64xbf16>, vector<2x64xbf16>, vector<2x64xbf16>, vector<2x64xbf16>, vector<2x64xbf16>, vector<2x64xbf16>, vector<2x64xbf16>, vector<2x64xbf16>, vector<2x64xbf16>, vector<2x64xbf16>, vector<2x64xbf16>, vector<2x64xbf16>, vector<2x64xbf16>, vector<2x64xbf16>, vector<2x64xbf16>, vector<2x64xbf16> -> vector<2x1024xbf16>
    %67 = tpu.concatenate %41, %66 in 0 : vector<2x1024xbf16>, vector<2x1024xbf16> -> vector<4x1024xbf16>
    %68 = arith.extf %67 : vector<4x1024xbf16> to vector<4x1024xf32>
    %c0_12 = arith.constant 0 : index
    %c0_13 = arith.constant 0 : index
    %69 = vector.load %arg3[%c0_12, %c0_13] : memref<1x1024xf32, #tpu.memory_space<vmem>>, vector<1x1024xf32>
    %70 = vector.broadcast %69 : vector<1x1024xf32> to vector<4x1024xf32>
    %71 = arith.mulf %68, %70 : vector<4x1024xf32>
    %cst = arith.constant dense<0.000000e+00> : vector<4xf32>
    %72 = vector.multi_reduction <add>, %71, %cst [1] : vector<4x1024xf32> to vector<4xf32>
    %73 = vector.shape_cast %72 : vector<4xf32> to vector<4x1xf32>
    %c0_14 = arith.constant 0 : index
    %c0_15 = arith.constant 0 : index
    %c0_16 = arith.constant 0 : index
    %74 = vector.load %arg4[%c0_14, %c0_15, %c0_16] : memref<1x4x1xf32, #tpu.memory_space<vmem>>, vector<1x4x1xf32>
    %75 = vector.shape_cast %74 : vector<1x4x1xf32> to vector<4x1xf32>
    %76 = vector.shape_cast %73 : vector<4x1xf32> to vector<1x4x1xf32>
    tpu.vector_store %arg4[%c0_14, %c0_15, %c0_16], %76 {strides = array<i32>} : memref<1x4x1xf32, #tpu.memory_space<vmem>>, vector<1x4x1xf32>,
    return
  }
  func.func @transform_0(%arg0: i32, %arg1: i32) -> (i32, i32, i32, i32) {
    %c0_i32 = arith.constant 0 : i32
    %c0_i32_0 = arith.constant 0 : i32
    %c0_i32_1 = arith.constant 0 : i32
    %c0_i32_2 = arith.constant 0 : i32
    return %arg0, %c0_i32, %c0_i32_0, %c0_i32_1 : i32, i32, i32, i32
  }
  func.func @transform_1(%arg0: i32, %arg1: i32) -> (i32, i32) {
    %c0_i32 = arith.constant 0 : i32
    %c0_i32_0 = arith.constant 0 : i32
    %c0_i32_1 = arith.constant 0 : i32
    return %c0_i32, %c0_i32_0 : i32, i32
  }
  func.func @transform_2(%arg0: i32, %arg1: i32) -> (i32, i32, i32) {
    %c0_i32 = arith.constant 0 : i32
    %c0_i32_0 = arith.constant 0 : i32
    return %arg0, %arg1, %c0_i32 : i32, i32, i32
  }
}

module attributes {stable_mosaic.version = 11 : i64} {
  func.func @_conv_kernel(%arg0: i32, %arg1: i32, %arg2: memref<1x6x6x32xbf16, #tpu.memory_space<vmem>>, %arg3: memref<512x64xbf16, #tpu.memory_space<vmem>>, %arg4: memref<1x9x64xbf16, #tpu.memory_space<vmem>>, %arg5: memref<1x8x64xf32, #tpu.memory_space<vmem>>, %arg6: memref<1x8x64xf32, #tpu.memory_space<vmem>>) attributes {dimension_semantics = [#tpu.dimension_semantics<parallel>, #tpu.dimension_semantics<parallel>], iteration_bounds = array<i64: 2, 1>, scalar_prefetch = 0 : i64, scratch_operands = 0 : i64, tpu.core_type = #tpu.core_type<tc>, window_params = [{transform_indices = @transform_0, window_bounds = array<i64: 1, 6, 6, 32>}, {pipeline_mode = #tpu.pipeline_mode<synchronous>, transform_indices = @transform_1, window_bounds = array<i64: 512, 64>}, {transform_indices = @transform_2, window_bounds = array<i64: 1, 9, 64>}, {transform_indices = @transform_3, window_bounds = array<i64: 1, 8, 64>}, {transform_indices = @transform_4, window_bounds = array<i64: 1, 8, 64>}]} {
    %c3_i32 = arith.constant 3 : i32
    %0 = arith.muli %arg1, %c3_i32 : i32
    %c0_i32 = arith.constant 0 : i32
    %1 = arith.addi %0, %c0_i32 : i32
    %c0 = arith.constant 0 : index
    %2 = arith.index_cast %1 : i32 to index
    %c0_0 = arith.constant 0 : index
    %c0_1 = arith.constant 0 : index
    %3 = vector.load %arg2[%c0, %2, %c0_0, %c0_1] : memref<1x6x6x32xbf16, #tpu.memory_space<vmem>>, vector<1x3x6x32xbf16>
    %4 = vector.shape_cast %3 : vector<1x3x6x32xbf16> to vector<3x6x32xbf16>
    %c1_i32 = arith.constant 1 : i32
    %5 = arith.addi %0, %c1_i32 : i32
    %c0_2 = arith.constant 0 : index
    %6 = arith.index_cast %5 : i32 to index
    %c0_3 = arith.constant 0 : index
    %c0_4 = arith.constant 0 : index
    %7 = vector.load %arg2[%c0_2, %6, %c0_3, %c0_4] : memref<1x6x6x32xbf16, #tpu.memory_space<vmem>>, vector<1x3x6x32xbf16>
    %8 = vector.shape_cast %7 : vector<1x3x6x32xbf16> to vector<3x6x32xbf16>
    %c2_i32 = arith.constant 2 : i32
    %9 = arith.addi %0, %c2_i32 : i32
    %c0_5 = arith.constant 0 : index
    %10 = arith.index_cast %9 : i32 to index
    %c0_6 = arith.constant 0 : index
    %c0_7 = arith.constant 0 : index
    %11 = vector.load %arg2[%c0_5, %10, %c0_6, %c0_7] : memref<1x6x6x32xbf16, #tpu.memory_space<vmem>>, vector<1x3x6x32xbf16>
    %12 = vector.shape_cast %11 : vector<1x3x6x32xbf16> to vector<3x6x32xbf16>
    %c3_i32_8 = arith.constant 3 : i32
    %13 = arith.addi %0, %c3_i32_8 : i32
    %c0_9 = arith.constant 0 : index
    %14 = arith.index_cast %13 : i32 to index
    %c0_10 = arith.constant 0 : index
    %c0_11 = arith.constant 0 : index
    %15 = vector.load %arg2[%c0_9, %14, %c0_10, %c0_11] : memref<1x6x6x32xbf16, #tpu.memory_space<vmem>>, vector<1x3x6x32xbf16>
    %16 = vector.shape_cast %15 : vector<1x3x6x32xbf16> to vector<3x6x32xbf16>
    %17 = vector.extract_strided_slice %4 {offsets = [0, 0, 0], sizes = [1, 6, 32], strides = [1, 1, 1]} : vector<3x6x32xbf16> to vector<1x6x32xbf16>
    %18 = vector.shape_cast %17 : vector<1x6x32xbf16> to vector<6x32xbf16>
    %19 = vector.extract_strided_slice %18 {offsets = [0, 0], sizes = [3, 32], strides = [1, 1]} : vector<6x32xbf16> to vector<3x32xbf16>
    %20 = vector.extract_strided_slice %18 {offsets = [1, 0], sizes = [3, 32], strides = [1, 1]} : vector<6x32xbf16> to vector<3x32xbf16>
    %21 = vector.extract_strided_slice %18 {offsets = [2, 0], sizes = [3, 32], strides = [1, 1]} : vector<6x32xbf16> to vector<3x32xbf16>
    %22 = vector.extract_strided_slice %18 {offsets = [3, 0], sizes = [3, 32], strides = [1, 1]} : vector<6x32xbf16> to vector<3x32xbf16>
    %23 = vector.extract_strided_slice %8 {offsets = [0, 0, 0], sizes = [1, 6, 32], strides = [1, 1, 1]} : vector<3x6x32xbf16> to vector<1x6x32xbf16>
    %24 = vector.shape_cast %23 : vector<1x6x32xbf16> to vector<6x32xbf16>
    %25 = vector.extract_strided_slice %24 {offsets = [0, 0], sizes = [3, 32], strides = [1, 1]} : vector<6x32xbf16> to vector<3x32xbf16>
    %26 = vector.extract_strided_slice %24 {offsets = [1, 0], sizes = [3, 32], strides = [1, 1]} : vector<6x32xbf16> to vector<3x32xbf16>
    %27 = vector.extract_strided_slice %24 {offsets = [2, 0], sizes = [3, 32], strides = [1, 1]} : vector<6x32xbf16> to vector<3x32xbf16>
    %28 = vector.extract_strided_slice %24 {offsets = [3, 0], sizes = [3, 32], strides = [1, 1]} : vector<6x32xbf16> to vector<3x32xbf16>
    %29 = vector.extract_strided_slice %12 {offsets = [0, 0, 0], sizes = [1, 6, 32], strides = [1, 1, 1]} : vector<3x6x32xbf16> to vector<1x6x32xbf16>
    %30 = vector.shape_cast %29 : vector<1x6x32xbf16> to vector<6x32xbf16>
    %31 = vector.extract_strided_slice %30 {offsets = [0, 0], sizes = [3, 32], strides = [1, 1]} : vector<6x32xbf16> to vector<3x32xbf16>
    %32 = vector.extract_strided_slice %30 {offsets = [1, 0], sizes = [3, 32], strides = [1, 1]} : vector<6x32xbf16> to vector<3x32xbf16>
    %33 = vector.extract_strided_slice %30 {offsets = [2, 0], sizes = [3, 32], strides = [1, 1]} : vector<6x32xbf16> to vector<3x32xbf16>
    %34 = vector.extract_strided_slice %30 {offsets = [3, 0], sizes = [3, 32], strides = [1, 1]} : vector<6x32xbf16> to vector<3x32xbf16>
    %35 = vector.extract_strided_slice %16 {offsets = [0, 0, 0], sizes = [1, 6, 32], strides = [1, 1, 1]} : vector<3x6x32xbf16> to vector<1x6x32xbf16>
    %36 = vector.shape_cast %35 : vector<1x6x32xbf16> to vector<6x32xbf16>
    %37 = vector.extract_strided_slice %36 {offsets = [0, 0], sizes = [3, 32], strides = [1, 1]} : vector<6x32xbf16> to vector<3x32xbf16>
    %38 = vector.extract_strided_slice %36 {offsets = [1, 0], sizes = [3, 32], strides = [1, 1]} : vector<6x32xbf16> to vector<3x32xbf16>
    %39 = vector.extract_strided_slice %36 {offsets = [2, 0], sizes = [3, 32], strides = [1, 1]} : vector<6x32xbf16> to vector<3x32xbf16>
    %40 = vector.extract_strided_slice %36 {offsets = [3, 0], sizes = [3, 32], strides = [1, 1]} : vector<6x32xbf16> to vector<3x32xbf16>
    %41 = tpu.concatenate %19, %20, %21, %22, %25, %26, %27, %28, %31, %32, %33, %34, %37, %38, %39, %40 in 1 : vector<3x32xbf16>, vector<3x32xbf16>, vector<3x32xbf16>, vector<3x32xbf16>, vector<3x32xbf16>, vector<3x32xbf16>, vector<3x32xbf16>, vector<3x32xbf16>, vector<3x32xbf16>, vector<3x32xbf16>, vector<3x32xbf16>, vector<3x32xbf16>, vector<3x32xbf16>, vector<3x32xbf16>, vector<3x32xbf16>, vector<3x32xbf16> -> vector<3x512xbf16>
    %42 = vector.extract_strided_slice %4 {offsets = [1, 0, 0], sizes = [1, 6, 32], strides = [1, 1, 1]} : vector<3x6x32xbf16> to vector<1x6x32xbf16>
    %43 = vector.shape_cast %42 : vector<1x6x32xbf16> to vector<6x32xbf16>
    %44 = vector.extract_strided_slice %43 {offsets = [0, 0], sizes = [3, 32], strides = [1, 1]} : vector<6x32xbf16> to vector<3x32xbf16>
    %45 = vector.extract_strided_slice %43 {offsets = [1, 0], sizes = [3, 32], strides = [1, 1]} : vector<6x32xbf16> to vector<3x32xbf16>
    %46 = vector.extract_strided_slice %43 {offsets = [2, 0], sizes = [3, 32], strides = [1, 1]} : vector<6x32xbf16> to vector<3x32xbf16>
    %47 = vector.extract_strided_slice %43 {offsets = [3, 0], sizes = [3, 32], strides = [1, 1]} : vector<6x32xbf16> to vector<3x32xbf16>
    %48 = vector.extract_strided_slice %8 {offsets = [1, 0, 0], sizes = [1, 6, 32], strides = [1, 1, 1]} : vector<3x6x32xbf16> to vector<1x6x32xbf16>
    %49 = vector.shape_cast %48 : vector<1x6x32xbf16> to vector<6x32xbf16>
    %50 = vector.extract_strided_slice %49 {offsets = [0, 0], sizes = [3, 32], strides = [1, 1]} : vector<6x32xbf16> to vector<3x32xbf16>
    %51 = vector.extract_strided_slice %49 {offsets = [1, 0], sizes = [3, 32], strides = [1, 1]} : vector<6x32xbf16> to vector<3x32xbf16>
    %52 = vector.extract_strided_slice %49 {offsets = [2, 0], sizes = [3, 32], strides = [1, 1]} : vector<6x32xbf16> to vector<3x32xbf16>
    %53 = vector.extract_strided_slice %49 {offsets = [3, 0], sizes = [3, 32], strides = [1, 1]} : vector<6x32xbf16> to vector<3x32xbf16>
    %54 = vector.extract_strided_slice %12 {offsets = [1, 0, 0], sizes = [1, 6, 32], strides = [1, 1, 1]} : vector<3x6x32xbf16> to vector<1x6x32xbf16>
    %55 = vector.shape_cast %54 : vector<1x6x32xbf16> to vector<6x32xbf16>
    %56 = vector.extract_strided_slice %55 {offsets = [0, 0], sizes = [3, 32], strides = [1, 1]} : vector<6x32xbf16> to vector<3x32xbf16>
    %57 = vector.extract_strided_slice %55 {offsets = [1, 0], sizes = [3, 32], strides = [1, 1]} : vector<6x32xbf16> to vector<3x32xbf16>
    %58 = vector.extract_strided_slice %55 {offsets = [2, 0], sizes = [3, 32], strides = [1, 1]} : vector<6x32xbf16> to vector<3x32xbf16>
    %59 = vector.extract_strided_slice %55 {offsets = [3, 0], sizes = [3, 32], strides = [1, 1]} : vector<6x32xbf16> to vector<3x32xbf16>
    %60 = vector.extract_strided_slice %16 {offsets = [1, 0, 0], sizes = [1, 6, 32], strides = [1, 1, 1]} : vector<3x6x32xbf16> to vector<1x6x32xbf16>
    %61 = vector.shape_cast %60 : vector<1x6x32xbf16> to vector<6x32xbf16>
    %62 = vector.extract_strided_slice %61 {offsets = [0, 0], sizes = [3, 32], strides = [1, 1]} : vector<6x32xbf16> to vector<3x32xbf16>
    %63 = vector.extract_strided_slice %61 {offsets = [1, 0], sizes = [3, 32], strides = [1, 1]} : vector<6x32xbf16> to vector<3x32xbf16>
    %64 = vector.extract_strided_slice %61 {offsets = [2, 0], sizes = [3, 32], strides = [1, 1]} : vector<6x32xbf16> to vector<3x32xbf16>
    %65 = vector.extract_strided_slice %61 {offsets = [3, 0], sizes = [3, 32], strides = [1, 1]} : vector<6x32xbf16> to vector<3x32xbf16>
    %66 = tpu.concatenate %44, %45, %46, %47, %50, %51, %52, %53, %56, %57, %58, %59, %62, %63, %64, %65 in 1 : vector<3x32xbf16>, vector<3x32xbf16>, vector<3x32xbf16>, vector<3x32xbf16>, vector<3x32xbf16>, vector<3x32xbf16>, vector<3x32xbf16>, vector<3x32xbf16>, vector<3x32xbf16>, vector<3x32xbf16>, vector<3x32xbf16>, vector<3x32xbf16>, vector<3x32xbf16>, vector<3x32xbf16>, vector<3x32xbf16>, vector<3x32xbf16> -> vector<3x512xbf16>
    %67 = vector.extract_strided_slice %4 {offsets = [2, 0, 0], sizes = [1, 6, 32], strides = [1, 1, 1]} : vector<3x6x32xbf16> to vector<1x6x32xbf16>
    %68 = vector.shape_cast %67 : vector<1x6x32xbf16> to vector<6x32xbf16>
    %69 = vector.extract_strided_slice %68 {offsets = [0, 0], sizes = [3, 32], strides = [1, 1]} : vector<6x32xbf16> to vector<3x32xbf16>
    %70 = vector.extract_strided_slice %68 {offsets = [1, 0], sizes = [3, 32], strides = [1, 1]} : vector<6x32xbf16> to vector<3x32xbf16>
    %71 = vector.extract_strided_slice %68 {offsets = [2, 0], sizes = [3, 32], strides = [1, 1]} : vector<6x32xbf16> to vector<3x32xbf16>
    %72 = vector.extract_strided_slice %68 {offsets = [3, 0], sizes = [3, 32], strides = [1, 1]} : vector<6x32xbf16> to vector<3x32xbf16>
    %73 = vector.extract_strided_slice %8 {offsets = [2, 0, 0], sizes = [1, 6, 32], strides = [1, 1, 1]} : vector<3x6x32xbf16> to vector<1x6x32xbf16>
    %74 = vector.shape_cast %73 : vector<1x6x32xbf16> to vector<6x32xbf16>
    %75 = vector.extract_strided_slice %74 {offsets = [0, 0], sizes = [3, 32], strides = [1, 1]} : vector<6x32xbf16> to vector<3x32xbf16>
    %76 = vector.extract_strided_slice %74 {offsets = [1, 0], sizes = [3, 32], strides = [1, 1]} : vector<6x32xbf16> to vector<3x32xbf16>
    %77 = vector.extract_strided_slice %74 {offsets = [2, 0], sizes = [3, 32], strides = [1, 1]} : vector<6x32xbf16> to vector<3x32xbf16>
    %78 = vector.extract_strided_slice %74 {offsets = [3, 0], sizes = [3, 32], strides = [1, 1]} : vector<6x32xbf16> to vector<3x32xbf16>
    %79 = vector.extract_strided_slice %12 {offsets = [2, 0, 0], sizes = [1, 6, 32], strides = [1, 1, 1]} : vector<3x6x32xbf16> to vector<1x6x32xbf16>
    %80 = vector.shape_cast %79 : vector<1x6x32xbf16> to vector<6x32xbf16>
    %81 = vector.extract_strided_slice %80 {offsets = [0, 0], sizes = [3, 32], strides = [1, 1]} : vector<6x32xbf16> to vector<3x32xbf16>
    %82 = vector.extract_strided_slice %80 {offsets = [1, 0], sizes = [3, 32], strides = [1, 1]} : vector<6x32xbf16> to vector<3x32xbf16>
    %83 = vector.extract_strided_slice %80 {offsets = [2, 0], sizes = [3, 32], strides = [1, 1]} : vector<6x32xbf16> to vector<3x32xbf16>
    %84 = vector.extract_strided_slice %80 {offsets = [3, 0], sizes = [3, 32], strides = [1, 1]} : vector<6x32xbf16> to vector<3x32xbf16>
    %85 = vector.extract_strided_slice %16 {offsets = [2, 0, 0], sizes = [1, 6, 32], strides = [1, 1, 1]} : vector<3x6x32xbf16> to vector<1x6x32xbf16>
    %86 = vector.shape_cast %85 : vector<1x6x32xbf16> to vector<6x32xbf16>
    %87 = vector.extract_strided_slice %86 {offsets = [0, 0], sizes = [3, 32], strides = [1, 1]} : vector<6x32xbf16> to vector<3x32xbf16>
    %88 = vector.extract_strided_slice %86 {offsets = [1, 0], sizes = [3, 32], strides = [1, 1]} : vector<6x32xbf16> to vector<3x32xbf16>
    %89 = vector.extract_strided_slice %86 {offsets = [2, 0], sizes = [3, 32], strides = [1, 1]} : vector<6x32xbf16> to vector<3x32xbf16>
    %90 = vector.extract_strided_slice %86 {offsets = [3, 0], sizes = [3, 32], strides = [1, 1]} : vector<6x32xbf16> to vector<3x32xbf16>
    %91 = tpu.concatenate %69, %70, %71, %72, %75, %76, %77, %78, %81, %82, %83, %84, %87, %88, %89, %90 in 1 : vector<3x32xbf16>, vector<3x32xbf16>, vector<3x32xbf16>, vector<3x32xbf16>, vector<3x32xbf16>, vector<3x32xbf16>, vector<3x32xbf16>, vector<3x32xbf16>, vector<3x32xbf16>, vector<3x32xbf16>, vector<3x32xbf16>, vector<3x32xbf16>, vector<3x32xbf16>, vector<3x32xbf16>, vector<3x32xbf16>, vector<3x32xbf16> -> vector<3x512xbf16>
    %92 = tpu.concatenate %41, %66, %91 in 0 : vector<3x512xbf16>, vector<3x512xbf16>, vector<3x512xbf16> -> vector<9x512xbf16>
    %c0_12 = arith.constant 0 : index
    %c0_13 = arith.constant 0 : index
    %93 = vector.load %arg3[%c0_12, %c0_13] : memref<512x64xbf16, #tpu.memory_space<vmem>>, vector<512x64xbf16>
    %cst = arith.constant dense<0.000000e+00> : vector<9x64xf32>
    %94 = tpu.matmul %92, %93, %cst {dimension_numbers = #tpu.dot_dimension_numbers<[1], [0], [0], [1], [0, 0, 1, 1], [], []>} : vector<9x512xbf16>, vector<512x64xbf16>, vector<9x64xf32> -> vector<9x64xf32>
    %95 = arith.truncf %94 : vector<9x64xf32> to vector<9x64xbf16>
    %c0_14 = arith.constant 0 : index
    %c0_15 = arith.constant 0 : index
    %c0_16 = arith.constant 0 : index
    %96 = vector.load %arg4[%c0_14, %c0_15, %c0_16] : memref<1x9x64xbf16, #tpu.memory_space<vmem>>, vector<1x9x64xbf16>
    %97 = vector.shape_cast %96 : vector<1x9x64xbf16> to vector<9x64xbf16>
    %98 = vector.shape_cast %95 : vector<9x64xbf16> to vector<1x9x64xbf16>
    tpu.vector_store %arg4[%c0_14, %c0_15, %c0_16], %98 {strides = array<i32>} : memref<1x9x64xbf16, #tpu.memory_space<vmem>>, vector<1x9x64xbf16>,
    %cst_17 = arith.constant dense<0.000000e+00> : vector<64xf32>
    %99 = vector.multi_reduction <add>, %94, %cst_17 [0] : vector<9x64xf32> to vector<64xf32>
    %100 = vector.shape_cast %99 : vector<64xf32> to vector<1x64xf32>
    %101 = arith.mulf %94, %94 : vector<9x64xf32>
    %cst_18 = arith.constant dense<0.000000e+00> : vector<64xf32>
    %102 = vector.multi_reduction <add>, %101, %cst_18 [0] : vector<9x64xf32> to vector<64xf32>
    %103 = vector.shape_cast %102 : vector<64xf32> to vector<1x64xf32>
    %104 = vector.shape_cast %100 : vector<1x64xf32> to vector<1x64xf32>
    %105 = vector.broadcast %104 : vector<1x64xf32> to vector<8x64xf32>
    %c0_19 = arith.constant 0 : index
    %c0_20 = arith.constant 0 : index
    %c0_21 = arith.constant 0 : index
    %106 = vector.load %arg5[%c0_19, %c0_20, %c0_21] : memref<1x8x64xf32, #tpu.memory_space<vmem>>, vector<1x8x64xf32>
    %107 = vector.shape_cast %106 : vector<1x8x64xf32> to vector<8x64xf32>
    %108 = vector.shape_cast %105 : vector<8x64xf32> to vector<1x8x64xf32>
    tpu.vector_store %arg5[%c0_19, %c0_20, %c0_21], %108 {strides = array<i32>} : memref<1x8x64xf32, #tpu.memory_space<vmem>>, vector<1x8x64xf32>,
    %109 = vector.shape_cast %103 : vector<1x64xf32> to vector<1x64xf32>
    %110 = vector.broadcast %109 : vector<1x64xf32> to vector<8x64xf32>
    %c0_22 = arith.constant 0 : index
    %c0_23 = arith.constant 0 : index
    %c0_24 = arith.constant 0 : index
    %111 = vector.load %arg6[%c0_22, %c0_23, %c0_24] : memref<1x8x64xf32, #tpu.memory_space<vmem>>, vector<1x8x64xf32>
    %112 = vector.shape_cast %111 : vector<1x8x64xf32> to vector<8x64xf32>
    %113 = vector.shape_cast %110 : vector<8x64xf32> to vector<1x8x64xf32>
    tpu.vector_store %arg6[%c0_22, %c0_23, %c0_24], %113 {strides = array<i32>} : memref<1x8x64xf32, #tpu.memory_space<vmem>>, vector<1x8x64xf32>,
    return
  }
  func.func @transform_0(%arg0: i32, %arg1: i32) -> (i32, i32, i32, i32) {
    %c0_i32 = arith.constant 0 : i32
    %c0_i32_0 = arith.constant 0 : i32
    %c0_i32_1 = arith.constant 0 : i32
    %c0_i32_2 = arith.constant 0 : i32
    return %arg0, %c0_i32, %c0_i32_0, %c0_i32_1 : i32, i32, i32, i32
  }
  func.func @transform_1(%arg0: i32, %arg1: i32) -> (i32, i32) {
    %c0_i32 = arith.constant 0 : i32
    %c0_i32_0 = arith.constant 0 : i32
    %c0_i32_1 = arith.constant 0 : i32
    return %c0_i32, %c0_i32_0 : i32, i32
  }
  func.func @transform_2(%arg0: i32, %arg1: i32) -> (i32, i32, i32) {
    %c0_i32 = arith.constant 0 : i32
    %c0_i32_0 = arith.constant 0 : i32
    return %arg0, %arg1, %c0_i32 : i32, i32, i32
  }
  func.func @transform_3(%arg0: i32, %arg1: i32) -> (i32, i32, i32) {
    %c1_i32 = arith.constant 1 : i32
    %0 = arith.muli %arg0, %c1_i32 : i32
    %1 = arith.addi %0, %arg1 : i32
    %c0_i32 = arith.constant 0 : i32
    %c0_i32_0 = arith.constant 0 : i32
    %c0_i32_1 = arith.constant 0 : i32
    return %1, %c0_i32, %c0_i32_0 : i32, i32, i32
  }
  func.func @transform_4(%arg0: i32, %arg1: i32) -> (i32, i32, i32) {
    %c1_i32 = arith.constant 1 : i32
    %0 = arith.muli %arg0, %c1_i32 : i32
    %1 = arith.addi %0, %arg1 : i32
    %c0_i32 = arith.constant 0 : i32
    %c0_i32_0 = arith.constant 0 : i32
    %c0_i32_1 = arith.constant 0 : i32
    return %1, %c0_i32, %c0_i32_0 : i32, i32, i32
  }
}

</mosaic_0001>

<bundles_post_ra>
// kernel: tile.48
= control target key start
LH: loop header
LB: loop body
LE: loop exit
PB: predicated region body
PF: predicated region fallthrough
CT: control target
= control target key end

     0   :  { %s28_s0 = inlined_call_operand.vmem [shape: f32[8], index: 0, kind: input, shape index: {}]   ;;  %s29_s1 = inlined_call_operand.vmem [shape: f32[16,8], index: 1, kind: output, shape index: {}]  }
   0x1   :  { %v4_v0 = vld [vmem:[%s28_s0] ss:$0 sm:$0xff] }
   0x2   :  { %5 = vst [vmem:[%s29_s1] sm:$0xff] %v4_v0  ;;  %8 = vst [vmem:[%s29_s1 + $0x8] sm:$0xff] %v4_v0 }

// kernel: tile.49
= control target key start
LH: loop header
LB: loop body
LE: loop exit
PB: predicated region body
PF: predicated region fallthrough
CT: control target
= control target key end

     0   :  { %s131_s10 = smov 120   ;;  %s132_s11 = smov 104   ;;  %vm3_vm0 = vcmask 64512   ;;  %vm9_vm1 = vcmask 1048512   ;;  %vm15_vm2 = vcmask 982912   ;;  %vm21_vm3 = vcmask 917312   ;;  %s207_s0 = inlined_call_operand.vmem [shape: f32[16,8], index: 0, kind: input, shape index: {}]   ;;  %s208_s1 = inlined_call_operand.vmem [shape: f32[1,128], index: 1, kind: output, shape index: {}]  }
   0x1   :  { %v101_v0 = vld [vmem:[%s207_s0 + $0xf] sm:$0x1]   ;;  %v103_v1 = vld [vmem:[%s207_s0 + $0xd] sm:$0x1]   ;;  %v102_v2 = vld [vmem:[%s207_s0 + $0xe] sm:$0x1]  }
   0x2   :  { %7 = vrot.lane.b32.xlu0 %v101_v0, %s131_s10  ;;  %19 = vrot.lane.b32.xlu1 %v103_v1, %s132_s11  ;;  %v104_v3 = vld [vmem:[%s207_s0 + $0xc] sm:$0x1]   ;;  %s133_s16 = smov 112   ;;  %s134_s17 = smov 96   ;;  %v105_v4 = vld [vmem:[%s207_s0 + $0xb] sm:$0x1]  }
   0x3   :  { %v106_v5 = vld [vmem:[%s207_s0 + $0xa] sm:$0x1]   ;;  %v2_v6 = vld [vmem:[%s207_s0] sm:$0x1]   ;;  %s135_s24 = smov 88   ;;  %s136_s25 = smov 80  }
   0x4   :  { %4 = vst.msk [vmem:[#allocation0] sm:$0x1] %vm3_vm0, %v2_v6   ;;  %v107_v7 = vld [vmem:[%s207_s0 + $0x9] sm:$0x1]   ;;  %v108_v8 = vld [vmem:[%s207_s0 + $0x8] sm:$0x1]  }
   0x5   :  { %s137_s30 = smov 72   ;;  %s138_s2 = smov 64   ;;  %v109_v9 = vld [vmem:[%s207_s0 + $0x7] sm:$0x1]   ;;  %v110_v10 = vld [vmem:[%s207_s0 + $0x6] sm:$0x1]  }
   0x6   :  { %13 = vrot.lane.b32.xlu0 %v102_v2, %s133_s16  ;;  %25 = vrot.lane.b32.xlu1 %v104_v3, %s134_s17  ;;  %s139_s7 = smov 56   ;;  %s140_s8 = smov 48   ;;  %v111_v11 = vld [vmem:[%s207_s0 + $0x5] sm:$0x1]   ;;  %v112_v12 = vld [vmem:[%s207_s0 + $0x4] sm:$0x1]  }
   0x7   :  { %s141_s13 = smov 40   ;;  %s142_s14 = smov 32   ;;  %v113_v13 = vld [vmem:[%s207_s0 + $0x3] sm:$0x1]   ;;  %v114_v14 = vld [vmem:[%s207_s0 + $0x2] sm:$0x1]  }
   0x8   :  { %s143_s19 = smov 24   ;;  %s144_s20 = smov 16   ;;  %v115_v15 = vld [vmem:[%s207_s0 + $0x1] sm:$0x1]   ;;  %vm27_vm4 = vcmask 851712   ;;  %vm33_vm5 = vcmask 786112  }
   0x9   :  { %s145_s0 = smov 8   ;;  %vm39_vm6 = vcmask 720512   ;;  %vm45_vm7 = vcmask 654912   ;;  %vm51_vm8 = vcmask 589312   ;;  %vm57_vm9 = vcmask 523712  }
   0xa   :  { %31 = vrot.lane.b32.xlu0 %v105_v4, %s135_s24  ;;  %37 = vrot.lane.b32.xlu1 %v106_v5, %s136_s25  ;;  %vm63_vm10 = vcmask 458112   ;;  %vm69_vm11 = vcmask 392512   ;;  %vm75_vm12 = vcmask 326912   ;;  %vm81_vm13 = vcmask 261312  }
   0xb   :  { %vm87_vm14 = vcmask 195712   ;;  %vm93_vm15 = vcmask 130112  }
   0xe   :  { %43 = vrot.lane.b32.xlu0 %v107_v7, %s137_s30  ;;  %49 = vrot.lane.b32.xlu1 %v108_v8, %s138_s2 }
  0x12   :  { %55 = vrot.lane.b32.xlu0 %v109_v9, %s139_s7  ;;  %61 = vrot.lane.b32.xlu1 %v110_v10, %s140_s8 }
  0x16   :  { %67 = vrot.lane.b32.xlu0 %v111_v11, %s141_s13  ;;  %73 = vrot.lane.b32.xlu1 %v112_v12, %s142_s14 }
  0x1a   :  { %79 = vrot.lane.b32.xlu0 %v113_v13, %s143_s19  ;;  %85 = vrot.lane.b32.xlu1 %v114_v14, %s144_s20 }
  0x1e   :  { %91 = vrot.lane.b32.xlu0 %v115_v15, %s145_s0 }
  0x74   :  { %v8_v16 = vpop.permute.xlu0 %7   ;;  %v20_v17 = vpop.permute.xlu1 %19  }
  0x75   :  { %10 = vst.msk [vmem:[#allocation0] sm:$0x1] %vm9_vm1, %v8_v16  }
  0x78   :  { %v14_v18 = vpop.permute.xlu0 %13   ;;  %v26_v19 = vpop.permute.xlu1 %25  }
  0x79   :  { %16 = vst.msk [vmem:[#allocation0] sm:$0x1] %vm15_vm2, %v14_v18  }
  0x7a   :  { %22 = vst.msk [vmem:[#allocation0] sm:$0x1] %vm21_vm3, %v20_v17  }
  0x7b   :  { %28 = vst.msk [vmem:[#allocation0] sm:$0x1] %vm27_vm4, %v26_v19  }
  0x7c   :  { %v32_v20 = vpop.permute.xlu0 %31   ;;  %v38_v21 = vpop.permute.xlu1 %37  }
  0x7d   :  { %34 = vst.msk [vmem:[#allocation0] sm:$0x1] %vm33_vm5, %v32_v20  }
  0x7e   :  { %40 = vst.msk [vmem:[#allocation0] sm:$0x1] %vm39_vm6, %v38_v21  }
  0x80   :  { %v44_v22 = vpop.permute.xlu0 %43   ;;  %v50_v23 = vpop.permute.xlu1 %49  }
  0x81   :  { %46 = vst.msk [vmem:[#allocation0] sm:$0x1] %vm45_vm7, %v44_v22  }
  0x82   :  { %52 = vst.msk [vmem:[#allocation0] sm:$0x1] %vm51_vm8, %v50_v23  }
  0x84   :  { %v56_v24 = vpop.permute.xlu0 %55   ;;  %v62_v25 = vpop.permute.xlu1 %61  }
  0x85   :  { %58 = vst.msk [vmem:[#allocation0] sm:$0x1] %vm57_vm9, %v56_v24  }
  0x86   :  { %64 = vst.msk [vmem:[#allocation0] sm:$0x1] %vm63_vm10, %v62_v25  }
  0x88   :  { %v68_v26 = vpop.permute.xlu0 %67   ;;  %v74_v27 = vpop.permute.xlu1 %73  }
  0x89   :  { %70 = vst.msk [vmem:[#allocation0] sm:$0x1] %vm69_vm11, %v68_v26  }
  0x8a   :  { %76 = vst.msk [vmem:[#allocation0] sm:$0x1] %vm75_vm12, %v74_v27  }
  0x8c   :  { %v80_v28 = vpop.permute.xlu0 %79   ;;  %v86_v29 = vpop.permute.xlu1 %85  }
  0x8d   :  { %82 = vst.msk [vmem:[#allocation0] sm:$0x1] %vm81_vm13, %v80_v28  }
  0x8e   :  { %88 = vst.msk [vmem:[#allocation0] sm:$0x1] %vm87_vm14, %v86_v29  }
  0x90   :  { %v92_v30 = vpop.permute.xlu0 %91  }
  0x91   :  { %94 = vst.msk [vmem:[#allocation0] sm:$0x1] %vm93_vm15, %v92_v30  }
  0x98   :  { %v98_v31 = vld [vmem:[#allocation0] sm:$0x1] }
  0x99   :  { %100 = vst [vmem:[%s208_s1] sm:$0x1] %v98_v31 }

// kernel: _lambda_.10
= control target key start
LH: loop header
LB: loop body
LE: loop exit
PB: predicated region body
PF: predicated region fallthrough
CT: control target
= control target key end

     0   :  { %s148_s0 = inlined_call_operand.vmem [shape: bf16[32,128], index: 0, kind: input, shape index: {}]   ;;  %s149_s1 = inlined_call_operand.vmem [shape: f32[1,128], index: 1, kind: input, shape index: {}]   ;;  %s150_s2 = inlined_call_operand.vmem [shape: f32[1,128], index: 2, kind: input, shape index: {}]   ;;  %s151_s3 = inlined_call_operand.vmem [shape: bf16[32,128], index: 3, kind: output, shape index: {}]  }
   0x1   :  { %v91_v0 = vld [vmem:[%s148_s0] sm:$0xff]   ;;  %v108_v4 = vld [vmem:[%s148_s0 + $0x8] sm:$0xff]  }
   0x2   :  { %v80_v1 = vld [vmem:[%s149_s1] ss:$0 sm:$0xff]  ;;  %v92_v2 = vunpack.c.l.bf16 %v91_v0  ;;  %v93_v3 = vunpack.c.h.bf16 %v91_v0  ;;  %v96_v6 = vunpack.c.l.bf16 %v108_v4  ;;  %v97_v7 = vunpack.c.h.bf16 %v108_v4 }
   0x3   :  { %v81_v5 = vld [vmem:[%s150_s2] ss:$0 sm:$0xff] }
   0x4   :  { %v29_v8 = vmul.f32 %v92_v2, %v80_v1  ;;  %v30_v9 = vmul.f32 %v93_v3, %v80_v1  ;;  %v31_v10 = vmul.f32 %v96_v6, %v80_v1  ;;  %v32_v11 = vmul.f32 %v97_v7, %v80_v1 }
   0x6   :  { %v40_v12 = vadd.f32 %v81_v5, %v29_v8  ;;  %v41_v13 = vadd.f32 %v81_v5, %v30_v9  ;;  %v42_v14 = vadd.f32 %v81_v5, %v31_v10  ;;  %v43_v15 = vadd.f32 %v81_v5, %v32_v11 }
   0x8   :  { %vm44_vm0 = vcmp.ge.f32.partialorder %v40_v12, 0.0  ;;  %vm45_vm1 = vcmp.ge.f32.partialorder %v41_v13, 0.0  ;;  %v48_v16 = vmul.f32 0.2, %v40_v12  ;;  %v49_v17 = vmul.f32 0.2, %v41_v13 }
   0x9   :  { %vm46_vm2 = vcmp.ge.f32.partialorder %v42_v14, 0.0  ;;  %vm47_vm3 = vcmp.ge.f32.partialorder %v43_v15, 0.0  ;;  %v50_v18 = vmul.f32 0.2, %v42_v14  ;;  %v51_v19 = vmul.f32 0.2, %v43_v15 }
   0xa   :  { %v52_v20 = vsel %vm44_vm0, %v40_v12, %v48_v16  ;;  %v53_v21 = vsel %vm45_vm1, %v41_v13, %v49_v17 }
   0xb   :  { %v101_v22 = vpack.c.bf16 %v53_v21, %v52_v20  ;;  %v54_v23 = vsel %vm46_vm2, %v42_v14, %v50_v18  ;;  %v55_v24 = vsel %vm47_vm3, %v43_v15, %v51_v19 }
   0xc   :  { %v106_v25 = vpack.c.bf16 %v55_v24, %v54_v23 }
   0xd   :  { %102 = vst [vmem:[%s151_s3] sm:$0xff] %v101_v22  }
   0xe   :  { %109 = vst [vmem:[%s151_s3 + $0x8] sm:$0xff] %v106_v25  }

// kernel: _lambda_.9
= control target key start
LH: loop header
LB: loop body
LE: loop exit
PB: predicated region body
PF: predicated region fallthrough
CT: control target
= control target key end

     0   :  { %s1540_s15 = smov 0   ;;  %s1542_s16 = smov 0   ;;  %s1842_s0 = inlined_call_operand.vmem [shape: bf16[2,17,17,16], index: 0, kind: input, shape index: {}]   ;;  %s1843_s1 = inlined_call_operand.vmem [shape: bf16[64,8], index: 1, kind: input, shape index: {}]   ;;  %s1844_s2 = inlined_call_operand.vmem [shape: bf16[2,256,8], index: 2, kind: output, shape index: {0}]   ;;  %s1845_s3 = inlined_call_operand.vmem [shape: f32[4,8,8], index: 3, kind: output, shape index: {1}]   ;;  %s1846_s4 = inlined_call_operand.vmem [shape: f32[4,8,8], index: 4, kind: output, shape index: {2}]  }
   0x1   :  { %s1544_s17 = smov 0   ;;  %s1546_s18 = smov 0  }
   0x2   :  { %s1548_s19 = smov 0  }
   0x3 LB: > { %s24_s20 = sadd.s32 1, %s1502_s17  ;;  %s27_s21 = sadd.s32 1, %s1506_s18  ;;  %s1510_s19 = sphi %s1548_s19, %s15_s19   ;;  %s1506_s18 = sphi %s1546_s18, %s1850_s18   ;;  %s1502_s17 = sphi %s1544_s17, %s1849_s17   ;;  %s1498_s16 = sphi %s1542_s16, %s1848_s16   ;;  %s1494_s15 = sphi %s1540_s15, %s1847_s15  }
   0x4   : > { %p25_p0 = scmp.ge.s32.totalorder %s24_s20, 2  ;;  %p1231_p1 = scmp.ge.s32.totalorder %s1510_s19, 1 }
   0x5   : > { %p189_p2 = scmp.lt.s32.totalorder %s1510_s19, 5 }
   0x6   : > { %s1852_s20 = smov (%p25_p0, %s24_s20), 0  ;;  %s1854_s21 = smov (!%p25_p0, %s27_s21), %s1506_s18 }
   0x7   : > { %p190_p3 = pnand %p1231_p1, %p189_p2  ;;  %p29_p4 = scmp.ge.s32.totalorder %s1854_s21, 2 }
   0x8   : > { %p231_p5 = scmp.lt.s32.totalorder (!%p190_p3), %s1498_s16, 1  ;;  %v1468_v0 = vld [vmem:[%s1843_s1] sm:$0xff] (!%p190_p3)   ;;  %v1469_v1 = vld [vmem:[%s1843_s1 + $0x8] sm:$0xff] (!%p190_p3)   ;;  %s1331_s27 = smul.u32 (!%p190_p3), 96, %s1494_s15  ;;  %vm327_vm0 = vsmask.f32 (!%p190_p3), 7424 }
   0x9   : > { %s1856_s21 = smov (%p29_p4, %s1854_s21), 0  ;;  %193 = sbr.rel (%p190_p3) target bundleno = 424 (0x1a8), region = 28 }
   0xa   : > { %1360 = vmatprep.subr.bf16.mxu0 (!%p190_p3), %v1468_v0  ;;  %1384 = vmatprep.subr.bf16.mxu1 (!%p190_p3), %v1468_v0  ;;  %s1512_s7 = smov (!%p190_p3), 32   ;;  %s1513_s8 = smov (!%p190_p3), 16   ;;  %vm366_vm1 = vcmask (!%p190_p3), 130048   ;;  %vm369_vm2 = vcmask (!%p190_p3), 261120   ;;  %vm372_vm3 = vcmask (!%p190_p3), 392192   ;;  %vm771_vm4 = vcmask (!%p190_p3), 523264  }
   0xb   : > { %1361 = vmatpush3.bf16.msra.mxu0 (!%p190_p3), %v1468_v0  ;;  %1388 = vmatpush3.bf16.msra.mxu1 (!%p190_p3), %v1468_v0  ;;  %s1514_s9 = smov (!%p190_p3), 48   ;;  %s1233_s14 = sshll.u32 (!%p190_p3), %s1494_s15, 4  ;;  %vm949_vm5 = vcmask (!%p190_p3), 60416   ;;  %vm966_vm6 = vcmask (!%p190_p3), 64512  }
   0xc   : > { %1362 = vmatprep.subr.bf16.mxu0 (!%p190_p3), %v1469_v1  ;;  %1385 = vmatprep.subr.bf16.mxu1 (!%p190_p3), %v1469_v1  ;;  %p239_p6 = scmp.lt.s32.totalorder (!%p190_p3), %s1233_s14, 31 }
   0xf   : > { %1363 = vmatpush3.bf16.msra.mxu0 (!%p190_p3), %v1469_v1  ;;  %1389 = vmatpush3.bf16.msra.mxu1 (!%p190_p3), %v1469_v1 }
  0x10   : > { %s1582_s26 = scalar_select %p231_p5, %s1498_s16, 1 }
  0x11   : > { %s1858_s14 = smov (!%p239_p6, %s1233_s14), 31 }
  0x12   : > { %s1392_s28 = smul.u32 204, %s1582_s26  ;;  %s1234_s22 = sshll.u32 %s1582_s26, 5 }
  0x13   : > { %s242_s23 = sadd.s32 %s1234_s22, %s1858_s14  ;;  %s1236_s26 = sshll.u32 %s1498_s16, 1 }
  0x14   : > { %s235_s5 = scalar_lea.vmem %s1842_s0, %s1392_s28  ;;  %s1235_s24 = sshll.u32 %s242_s23, 2 }
  0x15   : > { %s1589_s6 = scalar_lea.vmem %s235_s5, %s1331_s27  ;;  %s1751_s28 = scalar_lea.vmem %s1844_s2, %s1235_s24 }
  0x16   : > { %v1436_v2 = vld [vmem:[%s1589_s6 + $0xc] sm:$0xff]   ;;  %v1593_v3 = vld [vmem:[%s1589_s6 + $0x24] sm:$0xff]   ;;  %v1438_v5 = vld [vmem:[%s1589_s6 + $0x18] sm:$0xff]   ;;  %s247_s29 = sadd.s32 %s1494_s15, %s1236_s26 }
  0x17   : > { %347 = vrot.lane.b32.xlu0 %v1436_v2, %s1512_s7  ;;  %v355_v4 = vshll.u32 %v1436_v2, 16  ;;  %454 = vrot.lane.b32.xlu1 %v1593_v3, %s1512_s7  ;;  %v462_v6 = vshll.u32 %v1593_v3, 16  ;;  %v1601_v7 = vld [vmem:[%s1589_s6 + $0xc] sm:$0xff]   ;;  %v410_v8 = vshll.u32 %v1438_v5, 16  ;;  %v1608_v13 = vld [vmem:[%s1589_s6] sm:$0xff]   ;;  %v353_v16 = vshrl.u32 %v1436_v2, 16 }
  0x18   : > { %v1440_v9 = vld [vmem:[%s1589_s6 + $0x14] ss:$0 sps:$4 sm:$0x11]   ;;  %v384_v10 = vshrl.u32 %v1601_v7, 16  ;;  %v386_v11 = vshll.u32 %v1601_v7, 16  ;;  %v329_v19 = vshrl.u32 %v1608_v13, 16 }
  0x19   : > { %v391_v12 = vshll.u32 %v1440_v9, 16  ;;  %v1442_v15 = vld [vmem:[%s1589_s6 + $0x8] ss:$0 sps:$4 sm:$0x11]   ;;  %v357_v17 = vrot.slane %v355_v4, 1  ;;  %v331_v20 = vshll.u32 %v1608_v13, 16 }
  0x1a   : > { %v388_v14 = vrot.slane %v386_v11, 1  ;;  %v1443_v21 = vld [vmem:[%s1589_s6 + $0x14] ss:$0 sps:$4 sm:$0x11]   ;;  %v336_v23 = vshll.u32 %v1442_v15, 16  ;;  %v1615_v24 = vld [vmem:[%s1589_s6 + $0x18] sm:$0xff]  }
  0x1b   : > { %402 = vrot.lane.b32.xlu0 %v1438_v5, %s1512_s7  ;;  %v393_v18 = vrot.slane %v391_v12, 1  ;;  %v333_v25 = vrot.slane %v331_v20, 1  ;;  %v358_v26 = vor.u32 %v357_v17, %v353_v16  ;;  %v360_v27 = vshll.u32 %v1443_v21, 16  ;;  %v1445_v30 = vld [vmem:[%s1589_s6 + $0x20] ss:$0 sps:$4 sm:$0x11]  }
  0x1c   : > { %v389_v22 = vor.u32 %v388_v14, %v384_v10  ;;  %v338_v29 = vrot.slane %v336_v23, 1  ;;  %v436_v31 = vshrl.u32 %v1615_v24, 16  ;;  %v438_v32 = vshll.u32 %v1615_v24, 16  ;;  %v1446_v35 = vld [vmem:[%s1589_s6 + $0x20] ss:$0 sps:$4 sm:$0x11]  }
  0x1d   : > { %v334_v33 = vor.u32 %v333_v25, %v329_v19  ;;  %v362_v34 = vrot.slane %v360_v27, 1  ;;  %v408_v36 = vshrl.u32 %v1438_v5, 16  ;;  %v412_v37 = vrot.slane %v410_v8, 1  ;;  %v1626_v44 = vld [vmem:[%s1589_s6 + $0x24] sm:$0xff]   ;;  %v1450_v56 = vld [vmem:[%s1589_s6 + $0x30] sm:$0xff]   ;;  %v1454_v8 = vld [vmem:[%s1589_s6 + $0x3c] sm:$0xff]  }
  0x1e   : > { %v394_v28 = vsel %vm327_vm0, %v389_v22, %v393_v18  ;;  %v440_v38 = vrot.slane %v438_v32, 1  ;;  %v443_v39 = vshll.u32 %v1445_v30, 16  ;;  %v415_v43 = vshll.u32 %v1446_v35, 16  ;;  %v1448_v47 = vld [vmem:[%s1589_s6 + $0x2c] ss:$0 sps:$4 sm:$0x11]  }
  0x1f   : > { %395 = vrot.lane.b32.xlu1 %v394_v28, %s1513_s8  ;;  %v339_v40 = vsel %vm327_vm0, %v334_v33, %v338_v29  ;;  %v363_v41 = vsel %vm327_vm0, %v358_v26, %v362_v34  ;;  %v413_v42 = vor.u32 %v412_v37, %v408_v36  ;;  %v460_v48 = vshrl.u32 %v1593_v3, 16  ;;  %v1449_v53 = vld [vmem:[%s1589_s6 + $0x2c] ss:$0 sps:$4 sm:$0x11]   ;;  %v1642_v3 = vld [vmem:[%s1589_s6 + $0x30] sm:$0xff]   ;;  %v1652_v18 = vld [vmem:[%s1589_s6 + $0x3c] sm:$0xff]  }
  0x20   : > { %340 = vrot.lane.b32.xlu0 %v339_v40, %s1513_s8  ;;  %v441_v45 = vor.u32 %v440_v38, %v436_v31  ;;  %v445_v46 = vrot.slane %v443_v39, 1  ;;  %v464_v49 = vrot.slane %v462_v6, 1  ;;  %v417_v50 = vrot.slane %v415_v43, 1  ;;  %v1451_v63 = vld [vmem:[%s1589_s6 + $0x38] ss:$0 sps:$4 sm:$0x11]  }
  0x21   : > { %v488_v51 = vshrl.u32 %v1626_v44, 16  ;;  %v490_v52 = vshll.u32 %v1626_v44, 16  ;;  %v495_v55 = vshll.u32 %v1448_v47, 16  ;;  %v467_v60 = vshll.u32 %v1449_v53, 16  ;;  %v1458_v34 = vld [vmem:[%s1589_s6 + $0x48] sm:$0xff]   ;;  %p248_p7 = scmp.lt.s32.totalorder %s247_s29, 3 }
  0x22   : > { %v446_v54 = vsel %vm327_vm0, %v441_v45, %v445_v46  ;;  %v418_v57 = vsel %vm327_vm0, %v413_v42, %v417_v50  ;;  %v465_v59 = vor.u32 %v464_v49, %v460_v48  ;;  %v514_v62 = vshll.u32 %v1450_v56, 16  ;;  %v1453_v6 = vld [vmem:[%s1589_s6 + $0x38] ss:$0 sps:$4 sm:$0x11]   ;;  %v1666_v42 = vld [vmem:[%s1589_s6 + $0x48] sm:$0xff]  }
  0x23   : > { %364 = vrot.lane.b32.xlu1 %v363_v41, %s1514_s9  ;;  %v492_v58 = vrot.slane %v490_v52, 1  ;;  %v497_v61 = vrot.slane %v495_v55, 1  ;;  %v512_v0 = vshrl.u32 %v1450_v56, 16  ;;  %v469_v2 = vrot.slane %v467_v60, 1  ;;  %v1462_v50 = vld [vmem:[%s1589_s6 + $0x54] sm:$0xff]   ;;  %s1860_s29 = smov (!%p248_p7, %s247_s29), 3 }
  0x24   : > { %447 = vrot.lane.b32.xlu0 %v446_v54, %s1513_s8  ;;  %v516_v4 = vrot.slane %v514_v62, 1  ;;  %v519_v5 = vshll.u32 %v1451_v63, 16  ;;  %v540_v11 = vshrl.u32 %v1642_v3, 16  ;;  %v542_v12 = vshll.u32 %v1642_v3, 16  ;;  %s1237_s15 = sshll.u32 %s1860_s29, 3 }
  0x25   : > { %v493_v1 = vor.u32 %v492_v58, %v488_v51  ;;  %v470_v10 = vsel %vm327_vm0, %v465_v59, %v469_v2  ;;  %v547_v16 = vshll.u32 %v1453_v6, 16  ;;  %v566_v17 = vshll.u32 %v1454_v8, 16  ;;  %v1456_v23 = vld [vmem:[%s1589_s6 + $0x44] ss:$0 sps:$4 sm:$0x11]   ;;  %s251_s5 = scalar_lea.vmem %s1845_s3, %s1237_s15 }
  0x26   : > { %v517_v14 = vor.u32 %v516_v4, %v512_v0  ;;  %v521_v15 = vrot.slane %v519_v5, 1  ;;  %v544_v19 = vrot.slane %v542_v12, 1  ;;  %v564_v20 = vshrl.u32 %v1454_v8, 16  ;;  %v1457_v28 = vld [vmem:[%s1589_s6 + $0x44] ss:$0 sps:$4 sm:$0x11]  }
  0x27   : > { %419 = vrot.lane.b32.xlu1 %v418_v57, %s1514_s9  ;;  %v498_v9 = vsel %vm327_vm0, %v493_v1, %v497_v61  ;;  %v549_v22 = vrot.slane %v547_v16, 1  ;;  %v592_v25 = vshrl.u32 %v1652_v18, 16  ;;  %v594_v26 = vshll.u32 %v1652_v18, 16  ;;  %v1459_v38 = vld [vmem:[%s1589_s6 + $0x50] ss:$0 sps:$4 sm:$0x11]  }
  0x28   : > { %499 = vrot.lane.b32.xlu0 %v498_v9, %s1513_s8  ;;  %v522_v21 = vsel %vm327_vm0, %v517_v14, %v521_v15  ;;  %v545_v27 = vor.u32 %v544_v19, %v540_v11  ;;  %v568_v29 = vrot.slane %v566_v17, 1  ;;  %v599_v31 = vshll.u32 %v1456_v23, 16  ;;  %v1461_v45 = vld [vmem:[%s1589_s6 + $0x50] ss:$0 sps:$4 sm:$0x11]   ;;  %v1677_v57 = vld [vmem:[%s1589_s6 + $0x54] sm:$0xff]  }
  0x29   : > { %v596_v30 = vrot.slane %v594_v26, 1  ;;  %v571_v33 = vshll.u32 %v1457_v28, 16  ;;  %v618_v40 = vshll.u32 %v1458_v34, 16  ;;  %v616_v41 = vshrl.u32 %v1458_v34, 16  ;;  %v1466_v1 = vld [vmem:[%s1589_s6 + $0x60] sm:$0xff]   ;;  %v1471_v12 = vld [vmem:[%s1843_s1 + $0x18] sm:$0xff]  }
  0x2a   : > { %v550_v32 = vsel %vm327_vm0, %v545_v27, %v549_v22  ;;  %v601_v36 = vrot.slane %v599_v31, 1  ;;  %v569_v37 = vor.u32 %v568_v29, %v564_v20  ;;  %v623_v43 = vshll.u32 %v1459_v38, 16  ;;  %v1464_v60 = vld [vmem:[%s1589_s6 + $0x5c] ss:$0 sps:$4 sm:$0x11]  }
  0x2b   : > { %471 = vrot.lane.b32.xlu1 %v470_v10, %s1514_s9  ;;  %v597_v35 = vor.u32 %v596_v30, %v592_v25  ;;  %v573_v39 = vrot.slane %v571_v33, 1  ;;  %v620_v47 = vrot.slane %v618_v40, 1  ;;  %v644_v48 = vshrl.u32 %v1666_v42, 16  ;;  %v1465_v0 = vld [vmem:[%s1589_s6 + $0x5c] ss:$0 sps:$4 sm:$0x11]  }
  0x2c   : > { %506 = vrot.lane.b32.xlu0 %v1450_v56, %s1512_s7  ;;  %v646_v49 = vshll.u32 %v1666_v42, 16  ;;  %v625_v52 = vrot.slane %v623_v43, 1  ;;  %v651_v53 = vshll.u32 %v1461_v45, 16  ;;  %v670_v56 = vshll.u32 %v1462_v50, 16  ;;  %v1470_v10 = vld [vmem:[%s1843_s1 + $0x10] sm:$0xff]  }
  0x2d   : > { %v602_v46 = vsel %vm327_vm0, %v597_v35, %v601_v36  ;;  %v574_v51 = vsel %vm327_vm0, %v569_v37, %v573_v39  ;;  %v621_v54 = vor.u32 %v620_v47, %v616_v41  ;;  %v668_v58 = vshrl.u32 %v1462_v50, 16  ;;  %v1467_v11 = vld [vmem:[%s1589_s6 + $0x68] ss:$0 sps:$4 sm:$0x11]   ;;  %1364 = vmatprep.subr.bf16.mxu0 %v1470_v10  ;;  %1386 = vmatprep.subr.bf16.mxu1 %v1470_v10 }
  0x2e   : > { %v648_v55 = vrot.slane %v646_v49, 1  ;;  %v653_v59 = vrot.slane %v651_v53, 1  ;;  %v696_v62 = vshrl.u32 %v1677_v57, 16  ;;  %v698_v63 = vshll.u32 %v1677_v57, 16  ;;  %1365 = vmatpush3.bf16.msra.mxu0 %v1470_v10  ;;  %1390 = vmatpush3.bf16.msra.mxu1 %v1470_v10 }
  0x2f   : > { %523 = vrot.lane.b32.xlu1 %v522_v21, %s1514_s9  ;;  %v626_v2 = vsel %vm327_vm0, %v621_v54, %v625_v52  ;;  %v703_v4 = vshll.u32 %v1464_v60, 16  ;;  %v672_v5 = vrot.slane %v670_v56, 1  ;;  %v722_v9 = vshll.u32 %v1466_v1, 16  ;;  %1366 = vmatprep.subr.bf16.mxu0 %v1471_v12 }
  0x30   : > { %551 = vrot.lane.b32.xlu0 %v550_v32, %s1513_s8  ;;  %v649_v61 = vor.u32 %v648_v55, %v644_v48  ;;  %v700_v6 = vrot.slane %v698_v63, 1  ;;  %v720_v20 = vshrl.u32 %v1466_v1, 16  ;;  %v727_v22 = vshll.u32 %v1467_v11, 16  ;;  %1387 = vmatprep.subr.bf16.mxu1 %v1471_v12 }
  0x31   : > { %v705_v16 = vrot.slane %v703_v4, 1  ;;  %v673_v17 = vor.u32 %v672_v5, %v668_v58  ;;  %v724_v21 = vrot.slane %v722_v9, 1 }
  0x32   : > { %v654_v14 = vsel %vm327_vm0, %v649_v61, %v653_v59  ;;  %v701_v15 = vor.u32 %v700_v6, %v696_v62  ;;  %v729_v27 = vrot.slane %v727_v22, 1  ;;  %1367 = vmatpush3.bf16.msra.mxu0 %v1471_v12  ;;  %1391 = vmatpush3.bf16.msra.mxu1 %v1471_v12 }
  0x33   : > { %558 = vrot.lane.b32.xlu1 %v1454_v8, %s1512_s7  ;;  %v675_v8 = vshll.u32 %v1465_v0, 16  ;;  %v725_v26 = vor.u32 %v724_v21, %v720_v20 }
  0x34   : > { %603 = vrot.lane.b32.xlu0 %v602_v46, %s1513_s8  ;;  %v706_v23 = vsel %vm327_vm0, %v701_v15, %v705_v16 }
  0x35   : > { %v677_v19 = vrot.slane %v675_v8, 1  ;;  %v730_v28 = vsel %vm327_vm0, %v725_v26, %v729_v27 }
  0x37   : > { %575 = vrot.lane.b32.xlu1 %v574_v51, %s1514_s9  ;;  %v678_v25 = vsel %vm327_vm0, %v673_v17, %v677_v19 }
  0x38   : > { %610 = vrot.lane.b32.xlu0 %v1458_v34, %s1512_s7 }
  0x3b   : > { %627 = vrot.lane.b32.xlu1 %v626_v2, %s1514_s9 }
  0x3c   : > { %655 = vrot.lane.b32.xlu0 %v654_v14, %s1513_s8 }
  0x3f   : > { %662 = vrot.lane.b32.xlu1 %v1462_v50, %s1512_s7 }
  0x40   : > { %707 = vrot.lane.b32.xlu0 %v706_v23, %s1513_s8  ;;  %s259_s8 = scalar_lea.vmem %s1846_s4, %s1237_s15 }
  0x43   : > { %679 = vrot.lane.b32.xlu1 %v678_v25, %s1514_s9 }
  0x44   : > { %714 = vrot.lane.b32.xlu0 %v1466_v1, %s1512_s7 }
  0x47   : > { %731 = vrot.lane.b32.xlu1 %v730_v28, %s1514_s9 }
  0x89   : > { %v348_v29 = vpop.permute.xlu0 %347  ;;  %v455_v30 = vpop.permute.xlu1 %454 }
  0x8d   : > { %v403_v31 = vpop.permute.xlu0 %402 }
  0x91   : > { %v396_v32 = vpop.permute.xlu1 %395 }
  0x92   : > { %v341_v33 = vpop.permute.xlu0 %340  ;;  %v422_v36 = vsel %vm366_vm1, %v1601_v7, %v396_v32 }
  0x93   : > { %v368_v34 = vsel %vm366_vm1, %v1608_v13, %v341_v33  ;;  %v424_v40 = vsel %vm369_vm2, %v422_v36, %v403_v31 }
  0x94   : > { %v371_v37 = vsel %vm369_vm2, %v368_v34, %v348_v29 }
  0x95   : > { %v365_v35 = vpop.permute.xlu1 %364 }
  0x96   : > { %v374_v38 = vsel %vm372_vm3, %v371_v37, %v365_v35  ;;  %v448_v39 = vpop.permute.xlu0 %447 }
  0x97   : > { %1368 = vmatprep.mubr.msk.bf16.mxu0 %vm771_vm4, %v374_v38  ;;  %v474_v43 = vsel %vm366_vm1, %v1615_v24, %v448_v39 }
  0x98   : > { %v476_v7 = vsel %vm369_vm2, %v474_v43, %v455_v30 }
  0x99   : > { %v420_v41 = vpop.permute.xlu1 %419 }
  0x9a   : > { %v426_v13 = vsel %vm372_vm3, %v424_v40, %v420_v41  ;;  %v500_v45 = vpop.permute.xlu0 %499 }
  0x9b   : > { %1369 = vmatmul.mubr.msk.bf16.vlgmr.msra.gmra.mrb[0].mxu0 %vm771_vm4, %v426_v13  ;;  %v526_v47 = vsel %vm366_vm1, %v1626_v44, %v500_v45 }
  0x9d   : > { %v472_v46 = vpop.permute.xlu1 %471 }
  0x9e   : > { %v478_v48 = vsel %vm372_vm3, %v476_v7, %v472_v46  ;;  %v507_v49 = vpop.permute.xlu0 %506 }
  0x9f   : > { %1372 = vmatprep.mubr.msk.bf16.mxu0 %vm771_vm4, %v478_v48  ;;  %v528_v50 = vsel %vm369_vm2, %v526_v47, %v507_v49 }
  0xa1   : > { %v524_v51 = vpop.permute.xlu1 %523 }
  0xa2   : > { %v530_v24 = vsel %vm372_vm3, %v528_v50, %v524_v51  ;;  %v552_v52 = vpop.permute.xlu0 %551 }
  0xa3   : > { %1373 = vmatmul.mubr.msk.bf16.gmra.mrb[4].mxu0 %vm771_vm4, %v530_v24  ;;  %v578_v54 = vsel %vm366_vm1, %v1642_v3, %v552_v52 }
  0xa5   : > { %v559_v53 = vpop.permute.xlu1 %558 }
  0xa6   : > { %v604_v55 = vpop.permute.xlu0 %603  ;;  %v580_v44 = vsel %vm369_vm2, %v578_v54, %v559_v53 }
  0xa7   : > { %v630_v58 = vsel %vm366_vm1, %v1652_v18, %v604_v55 }
  0xa9   : > { %v576_v56 = vpop.permute.xlu1 %575 }
  0xaa   : > { %v582_v59 = vsel %vm372_vm3, %v580_v44, %v576_v56  ;;  %v611_v60 = vpop.permute.xlu0 %610 }
  0xab   : > { %1376 = vmatprep.mubr.msk.bf16.mxu1 %vm771_vm4, %v582_v59  ;;  %v632_v61 = vsel %vm369_vm2, %v630_v58, %v611_v60 }
  0xad   : > { %v628_v62 = vpop.permute.xlu1 %627 }
  0xae   : > { %v634_v63 = vsel %vm372_vm3, %v632_v61, %v628_v62  ;;  %v656_v3 = vpop.permute.xlu0 %655 }
  0xaf   : > { %1377 = vmatmul.mubr.msk.bf16.vlgmr.msra.gmra.mrb[0].mxu1 %vm771_vm4, %v634_v63  ;;  %v682_v1 = vsel %vm366_vm1, %v1666_v42, %v656_v3 }
  0xb1   : > { %v663_v0 = vpop.permute.xlu1 %662 }
  0xb2   : > { %v708_v18 = vpop.permute.xlu0 %707  ;;  %v684_v2 = vsel %vm369_vm2, %v682_v1, %v663_v0 }
  0xb3   : > { %v734_v5 = vsel %vm366_vm1, %v1677_v57, %v708_v18 }
  0xb5   : > { %v680_v4 = vpop.permute.xlu1 %679 }
  0xb6   : > { %v686_v6 = vsel %vm372_vm3, %v684_v2, %v680_v4  ;;  %v715_v8 = vpop.permute.xlu0 %714 }
  0xb7   : > { %1380 = vmatprep.mubr.msk.bf16.mxu1 %vm771_vm4, %v686_v6  ;;  %v736_v9 = vsel %vm369_vm2, %v734_v5, %v715_v8 }
  0xb9   : > { %v732_v10 = vpop.permute.xlu1 %731 }
  0xba   : > { %v738_v11 = vsel %vm372_vm3, %v736_v9, %v732_v10 }
  0xbb   : > { %1381 = vmatmul.mubr.msk.bf16.gmra.mrb[4].mxu1 %vm771_vm4, %v738_v11 }
 0x16e   : > { %v1370_v42 = vpop.f32.mrb[0].mxu0 }
 0x16f   : > { %v1334_v57 = vpack.c.bf16 %v1370_v42, %v1370_v42  ;;  %v822_v12 = vpop.f32.mrb[1].mxu0  ;;  %v1006_v17 = vmul.f32 %v1370_v42, %v1370_v42  ;;  %v970_v28 = vsel %vm966_vm6, %v1370_v42, 0.0 }
 0x170   : > { %v1332_v14 = vpack.c.bf16 %v822_v12, %v822_v12  ;;  %v1004_v15 = vmul.f32 %v822_v12, %v822_v12  ;;  %v1371_v16 = vpop.f32.mrb[2].mxu0  ;;  %v967_v21 = vsel %vm966_vm6, %v822_v12, 0.0 }
 0x171   : > { %952 = vst.msk [vmem:[%s1751_s28 + $0x8] sm:$0xf] %vm949_vm5, %v1334_v57  ;;  %v1335_v19 = vpack.c.bf16 %v1371_v16, %v1371_v16  ;;  %v825_v20 = vpop.f32.mrb[3].mxu0  ;;  %v1007_v26 = vmul.f32 %v1371_v16, %v1371_v16  ;;  %v1023_v33 = vsel %vm966_vm6, %v1006_v17, 0.0  ;;  %v972_v35 = vsel %vm966_vm6, %v1371_v16, 0.0 }
 0x172   : > { %950 = vst.msk [vmem:[%s1751_s28] sm:$0xf] %vm949_vm5, %v1332_v14  ;;  %v1333_v22 = vpack.c.bf16 %v825_v20, %v825_v20  ;;  %v968_v23 = vsel %vm966_vm6, %v825_v20, 0.0  ;;  %v1005_v25 = vmul.f32 %v825_v20, %v825_v20  ;;  %v1020_v29 = vsel %vm966_vm6, %v1004_v15, 0.0 }
 0x173   : > { %953 = vst.msk [vmem:[%s1751_s28 + $0xc] sm:$0xf] %vm949_vm5, %v1335_v19  ;;  %v969_v27 = vadd.f32 %v968_v23, %v967_v21  ;;  %v1025_v36 = vsel %vm966_vm6, %v1007_v26, 0.0 }
 0x174   : > { %951 = vst.msk [vmem:[%s1751_s28 + $0x4] sm:$0xf] %vm949_vm5, %v1333_v22  ;;  %v1021_v30 = vsel %vm966_vm6, %v1005_v25, 0.0 }
 0x175   : > { %v971_v31 = vadd.f32 %v970_v28, %v969_v27  ;;  %v1022_v32 = vadd.f32 %v1021_v30, %v1020_v29 }
 0x176   : > { %v1374_v34 = vpop.f32.mrb[4].mxu0 }
 0x177   : > { %v1024_v37 = vadd.f32 %v1023_v33, %v1022_v32  ;;  %v1338_v38 = vpack.c.bf16 %v1374_v34, %v1374_v34  ;;  %v838_v39 = vpop.f32.mrb[5].mxu0  ;;  %v973_v41 = vadd.f32 %v972_v35, %v971_v31  ;;  %v1010_v51 = vmul.f32 %v1374_v34, %v1374_v34 }
 0x178   : > { %v1336_v40 = vpack.c.bf16 %v838_v39, %v838_v39  ;;  %v974_v43 = vsel %vm966_vm6, %v838_v39, 0.0  ;;  %v1008_v13 = vmul.f32 %v838_v39, %v838_v39  ;;  %v1375_v45 = vpop.f32.mrb[6].mxu0  ;;  %v978_v55 = vsel %vm966_vm6, %v1374_v34, 0.0 }
 0x179   : > { %956 = vst.msk [vmem:[%s1751_s28 + $0x18] sm:$0xf] %vm949_vm5, %v1338_v38  ;;  %v1026_v46 = vadd.f32 %v1025_v36, %v1024_v37  ;;  %v1339_v7 = vpack.c.bf16 %v1375_v45, %v1375_v45  ;;  %v841_v47 = vpop.f32.mrb[7].mxu0  ;;  %v975_v48 = vadd.f32 %v974_v43, %v973_v41  ;;  %v1011_v44 = vmul.f32 %v1375_v45, %v1375_v45 }
 0x17a   : > { %954 = vst.msk [vmem:[%s1751_s28 + $0x10] sm:$0xf] %vm949_vm5, %v1336_v40  ;;  %v1027_v49 = vsel %vm966_vm6, %v1008_v13, 0.0  ;;  %v1337_v50 = vpack.c.bf16 %v841_v47, %v841_v47  ;;  %v976_v52 = vsel %vm966_vm6, %v841_v47, 0.0  ;;  %v1009_v53 = vmul.f32 %v841_v47, %v841_v47 }
 0x17b   : > { %v1028_v24 = vadd.f32 %v1027_v49, %v1026_v46  ;;  %957 = vst.msk [vmem:[%s1751_s28 + $0x1c] sm:$0xf] %vm949_vm5, %v1339_v7  ;;  %v977_v54 = vadd.f32 %v976_v52, %v975_v48  ;;  %v1031_v60 = vsel %vm966_vm6, %v1010_v51, 0.0  ;;  %v980_v61 = vsel %vm966_vm6, %v1375_v45, 0.0 }
 0x17c   : > { %955 = vst.msk [vmem:[%s1751_s28 + $0x14] sm:$0xf] %vm949_vm5, %v1337_v50  ;;  %v1029_v56 = vsel %vm966_vm6, %v1009_v53, 0.0  ;;  %v1033_v3 = vsel %vm966_vm6, %v1011_v44, 0.0 }
 0x17d   : > { %v979_v58 = vadd.f32 %v978_v55, %v977_v54  ;;  %v1030_v59 = vadd.f32 %v1029_v56, %v1028_v24 }
 0x17f   : > { %v1032_v62 = vadd.f32 %v1031_v60, %v1030_v59  ;;  %v981_v63 = vadd.f32 %v980_v61, %v979_v58 }
 0x181   : > { %v1034_v1 = vadd.f32 %v1033_v3, %v1032_v62 }
 0x182   : > { %v1378_v0 = vpop.f32.mrb[0].mxu1 }
 0x183   : > { %v1342_v18 = vpack.c.bf16 %v1378_v0, %v1378_v0  ;;  %v854_v2 = vpop.f32.mrb[1].mxu1  ;;  %v1014_v14 = vmul.f32 %v1378_v0, %v1378_v0  ;;  %v986_v19 = vsel %vm966_vm6, %v1378_v0, 0.0 }
 0x184   : > { %v1340_v4 = vpack.c.bf16 %v854_v2, %v854_v2  ;;  %v982_v5 = vsel %vm966_vm6, %v854_v2, 0.0  ;;  %v1012_v6 = vmul.f32 %v854_v2, %v854_v2  ;;  %v1379_v8 = vpop.f32.mrb[2].mxu1 }
 0x185   : > { %960 = vst.msk [vmem:[%s1751_s28 + $0x28] sm:$0xf] %vm949_vm5, %v1342_v18  ;;  %v983_v9 = vadd.f32 %v982_v5, %v981_v63  ;;  %v1343_v10 = vpack.c.bf16 %v1379_v8, %v1379_v8  ;;  %v857_v11 = vpop.f32.mrb[3].mxu1  ;;  %v1015_v20 = vmul.f32 %v1379_v8, %v1379_v8  ;;  %v988_v23 = vsel %vm966_vm6, %v1379_v8, 0.0 }
 0x186   : > { %958 = vst.msk [vmem:[%s1751_s28 + $0x20] sm:$0xf] %vm949_vm5, %v1340_v4  ;;  %v1035_v42 = vsel %vm966_vm6, %v1012_v6, 0.0  ;;  %v1341_v57 = vpack.c.bf16 %v857_v11, %v857_v11  ;;  %v984_v12 = vsel %vm966_vm6, %v857_v11, 0.0  ;;  %v1013_v17 = vmul.f32 %v857_v11, %v857_v11 }
 0x187   : > { %v1036_v15 = vadd.f32 %v1035_v42, %v1034_v1  ;;  %961 = vst.msk [vmem:[%s1751_s28 + $0x2c] sm:$0xf] %vm949_vm5, %v1343_v10  ;;  %v985_v16 = vadd.f32 %v984_v12, %v983_v9  ;;  %v1039_v26 = vsel %vm966_vm6, %v1014_v14, 0.0  ;;  %v1041_v29 = vsel %vm966_vm6, %v1015_v20, 0.0 }
 0x188   : > { %959 = vst.msk [vmem:[%s1751_s28 + $0x24] sm:$0xf] %vm949_vm5, %v1341_v57  ;;  %v1037_v22 = vsel %vm966_vm6, %v1013_v17, 0.0 }
 0x189   : > { %v987_v21 = vadd.f32 %v986_v19, %v985_v16  ;;  %v1038_v25 = vadd.f32 %v1037_v22, %v1036_v15 }
 0x18b   : > { %v989_v27 = vadd.f32 %v988_v23, %v987_v21  ;;  %v1040_v28 = vadd.f32 %v1039_v26, %v1038_v25 }
 0x18d   : > { %v1042_v31 = vadd.f32 %v1041_v29, %v1040_v28 }
 0x18e   : > { %v1382_v30 = vpop.f32.mrb[4].mxu1 }
 0x18f   : > { %v1346_v32 = vpack.c.bf16 %v1382_v30, %v1382_v30  ;;  %v870_v33 = vpop.f32.mrb[5].mxu1  ;;  %v1018_v45 = vmul.f32 %v1382_v30, %v1382_v30  ;;  %v994_v48 = vsel %vm966_vm6, %v1382_v30, 0.0 }
 0x190   : > { %v1344_v34 = vpack.c.bf16 %v870_v33, %v870_v33  ;;  %v990_v35 = vsel %vm966_vm6, %v870_v33, 0.0  ;;  %v1016_v36 = vmul.f32 %v870_v33, %v870_v33  ;;  %v1383_v37 = vpop.f32.mrb[6].mxu1 }
 0x191   : > { %964 = vst.msk [vmem:[%s1751_s28 + $0x38] sm:$0xf] %vm949_vm5, %v1346_v32  ;;  %v991_v38 = vadd.f32 %v990_v35, %v989_v27  ;;  %v1347_v39 = vpack.c.bf16 %v1383_v37, %v1383_v37  ;;  %v873_v40 = vpop.f32.mrb[7].mxu1  ;;  %v1019_v49 = vmul.f32 %v1383_v37, %v1383_v37  ;;  %v996_v24 = vsel %vm966_vm6, %v1383_v37, 0.0 }
 0x192   : > { %962 = vst.msk [vmem:[%s1751_s28 + $0x30] sm:$0xf] %vm949_vm5, %v1344_v34  ;;  %v1043_v41 = vsel %vm966_vm6, %v1016_v36, 0.0  ;;  %v1345_v43 = vpack.c.bf16 %v873_v40, %v873_v40  ;;  %v992_v13 = vsel %vm966_vm6, %v873_v40, 0.0  ;;  %v1017_v47 = vmul.f32 %v873_v40, %v873_v40 }
 0x193   : > { %v1044_v46 = vadd.f32 %v1043_v41, %v1042_v31  ;;  %965 = vst.msk [vmem:[%s1751_s28 + $0x3c] sm:$0xf] %vm949_vm5, %v1347_v39  ;;  %v993_v7 = vadd.f32 %v992_v13, %v991_v38  ;;  %v1047_v53 = vsel %vm966_vm6, %v1018_v45, 0.0  ;;  %v1049_v44 = vsel %vm966_vm6, %v1019_v49, 0.0 }
 0x194   : > { %963 = vst.msk [vmem:[%s1751_s28 + $0x34] sm:$0xf] %vm949_vm5, %v1345_v43  ;;  %v1045_v51 = vsel %vm966_vm6, %v1017_v47, 0.0 }
 0x195   : > { %v995_v50 = vadd.f32 %v994_v48, %v993_v7  ;;  %v1046_v52 = vadd.f32 %v1045_v51, %v1044_v46 }
 0x197   : > { %v997_v54 = vadd.f32 %v996_v24, %v995_v50  ;;  %v1048_v55 = vadd.f32 %v1047_v53, %v1046_v52 }
 0x199   : > { %v998_v56 = vrot.slane %v997_v54, 4  ;;  %v1050_v58 = vadd.f32 %v1049_v44, %v1048_v55 }
 0x19b   : > { %v999_v59 = vadd.f32 %v998_v56, %v997_v54  ;;  %v1051_v60 = vrot.slane %v1050_v58, 4 }
 0x19d   : > { %v1000_v61 = vrot.slane %v999_v59, 2  ;;  %v1052_v62 = vadd.f32 %v1051_v60, %v1050_v58 }
 0x19f   : > { %v1001_v63 = vadd.f32 %v1000_v61, %v999_v59  ;;  %v1053_v3 = vrot.slane %v1052_v62, 2 }
 0x1a1   : > { %v1002_v0 = vrot.slane %v1001_v63, 1  ;;  %v1054_v1 = vadd.f32 %v1053_v3, %v1052_v62 }
 0x1a3   : > { %v1003_v18 = vadd.f32 %v1002_v0, %v1001_v63  ;;  %v1055_v2 = vrot.slane %v1054_v1, 1 }
 0x1a5   : > { %1057 = vst.msk [vmem:[%s251_s5] sm:$0xff] %vm966_vm6, %v1003_v18  ;;  %v1056_v4 = vadd.f32 %v1055_v2, %v1054_v1 }
 0x1a7   : > { %1058 = vst.msk [vmem:[%s259_s8] sm:$0xff] %vm966_vm6, %v1056_v4 }
 0x1a8 PF: > { %s15_s19 = sadd.s32 1, %s1510_s19   ;;  %s1847_s15 = smov %s1502_s17 }
 0x1a9   : > { %p12_p8 = scmp.ge.s32.totalorder %s15_s19, 6   ;;  %s1848_s16 = smov %s1506_s18 }
 0x1aa   : > { %s1849_s17 = smov %s1852_s20  ;;  %s1850_s18 = smov %s1856_s21 }
 0x1ab   :  { %14 = sbr.rel (!%p12_p8) target bundleno = 3 (0x3), region = 84 }

// kernel: tile.58
= control target key start
LH: loop header
LB: loop body
LE: loop exit
PB: predicated region body
PF: predicated region fallthrough
CT: control target
= control target key end

     0   :  { %s22_s0 = inlined_call_operand.vmem [shape: f32[16], index: 0, kind: input, shape index: {}]   ;;  %s23_s1 = inlined_call_operand.vmem [shape: f32[8,16], index: 1, kind: output, shape index: {}]  }
   0x1   :  { %v4_v0 = vld [vmem:[%s22_s0] ss:$0 sm:$0xff] }
   0x2   :  { %5 = vst [vmem:[%s23_s1] sm:$0xff] %v4_v0 }

// kernel: tile.59
= control target key start
LH: loop header
LB: loop body
LE: loop exit
PB: predicated region body
PF: predicated region fallthrough
CT: control target
= control target key end

     0   :  { %s67_s10 = smov 112   ;;  %s68_s11 = smov 80   ;;  %vm3_vm0 = vcmask 130048   ;;  %vm9_vm1 = vcmask 1048448   ;;  %vm15_vm2 = vcmask 917248   ;;  %vm21_vm3 = vcmask 786048   ;;  %s111_s0 = inlined_call_operand.vmem [shape: f32[8,16], index: 0, kind: input, shape index: {}]   ;;  %s112_s1 = inlined_call_operand.vmem [shape: f32[1,128], index: 1, kind: output, shape index: {}]  }
   0x1   :  { %v53_v0 = vld [vmem:[%s111_s0 + $0x7] sm:$0x1]   ;;  %v55_v1 = vld [vmem:[%s111_s0 + $0x5] sm:$0x1]   ;;  %v54_v2 = vld [vmem:[%s111_s0 + $0x6] sm:$0x1]  }
   0x2   :  { %7 = vrot.lane.b32.xlu0 %v53_v0, %s67_s10  ;;  %19 = vrot.lane.b32.xlu1 %v55_v1, %s68_s11  ;;  %v56_v3 = vld [vmem:[%s111_s0 + $0x4] sm:$0x1]   ;;  %v2_v4 = vld [vmem:[%s111_s0] sm:$0x1]   ;;  %s69_s18 = smov 96   ;;  %s70_s19 = smov 64  }
   0x3   :  { %4 = vst.msk [vmem:[#allocation0] sm:$0x1] %vm3_vm0, %v2_v4   ;;  %v57_v5 = vld [vmem:[%s111_s0 + $0x3] sm:$0x1]   ;;  %v58_v6 = vld [vmem:[%s111_s0 + $0x2] sm:$0x1]  }
   0x4   :  { %s71_s24 = smov 48   ;;  %s72_s25 = smov 32   ;;  %v59_v7 = vld [vmem:[%s111_s0 + $0x1] sm:$0x1]   ;;  %vm27_vm4 = vcmask 654848   ;;  %vm33_vm5 = vcmask 523648  }
   0x5   :  { %s73_s0 = smov 16   ;;  %vm39_vm6 = vcmask 392448   ;;  %vm45_vm7 = vcmask 261248  }
   0x6   :  { %13 = vrot.lane.b32.xlu0 %v54_v2, %s69_s18  ;;  %25 = vrot.lane.b32.xlu1 %v56_v3, %s70_s19 }
   0xa   :  { %31 = vrot.lane.b32.xlu0 %v57_v5, %s71_s24  ;;  %37 = vrot.lane.b32.xlu1 %v58_v6, %s72_s25 }
   0xe   :  { %43 = vrot.lane.b32.xlu0 %v59_v7, %s73_s0 }
  0x74   :  { %v8_v8 = vpop.permute.xlu0 %7   ;;  %v20_v9 = vpop.permute.xlu1 %19  }
  0x75   :  { %10 = vst.msk [vmem:[#allocation0] sm:$0x1] %vm9_vm1, %v8_v8  }
  0x78   :  { %v14_v10 = vpop.permute.xlu0 %13   ;;  %v26_v11 = vpop.permute.xlu1 %25  }
  0x79   :  { %16 = vst.msk [vmem:[#allocation0] sm:$0x1] %vm15_vm2, %v14_v10  }
  0x7a   :  { %22 = vst.msk [vmem:[#allocation0] sm:$0x1] %vm21_vm3, %v20_v9  }
  0x7b   :  { %28 = vst.msk [vmem:[#allocation0] sm:$0x1] %vm27_vm4, %v26_v11  }
  0x7c   :  { %v32_v12 = vpop.permute.xlu0 %31   ;;  %v38_v13 = vpop.permute.xlu1 %37  }
  0x7d   :  { %34 = vst.msk [vmem:[#allocation0] sm:$0x1] %vm33_vm5, %v32_v12  }
  0x7e   :  { %40 = vst.msk [vmem:[#allocation0] sm:$0x1] %vm39_vm6, %v38_v13  }
  0x80   :  { %v44_v14 = vpop.permute.xlu0 %43  }
  0x81   :  { %46 = vst.msk [vmem:[#allocation0] sm:$0x1] %vm45_vm7, %v44_v14  }
  0x88   :  { %v50_v15 = vld [vmem:[#allocation0] sm:$0x1] }
  0x89   :  { %52 = vst [vmem:[%s112_s1] sm:$0x1] %v50_v15 }

// kernel: _lambda_.11
= control target key start
LH: loop header
LB: loop body
LE: loop exit
PB: predicated region body
PF: predicated region fallthrough
CT: control target
= control target key end

     0   :  { %s1240_s15 = smov 0   ;;  %s1242_s16 = smov 0   ;;  %s1479_s0 = inlined_call_operand.vmem [shape: bf16[2,9,9,32], index: 0, kind: input, shape index: {}]   ;;  %s1480_s1 = inlined_call_operand.vmem [shape: bf16[128,16], index: 1, kind: input, shape index: {}]   ;;  %s1481_s2 = inlined_call_operand.vmem [shape: bf16[2,64,16], index: 2, kind: output, shape index: {0}]   ;;  %s1482_s3 = inlined_call_operand.vmem [shape: f32[2,8,16], index: 3, kind: output, shape index: {1}]   ;;  %s1483_s4 = inlined_call_operand.vmem [shape: f32[2,8,16], index: 4, kind: output, shape index: {2}]  }
   0x1   :  { %s1244_s17 = smov 0  }
   0x2 LB: > { %s27_s18 = sadd.s32 1, %s1206_s16  ;;  %p1003_p0 = scmp.ge.s32.totalorder %s1210_s17, 1  ;;  %s1210_s17 = sphi %s1244_s17, %s15_s17   ;;  %s1206_s16 = sphi %s1242_s16, %s1485_s16   ;;  %s1202_s15 = sphi %s1240_s15, %s1484_s15  }
   0x3   : > { %p29_p1 = scmp.ge.s32.totalorder %s27_s18, 2  ;;  %p185_p2 = scmp.lt.s32.totalorder %s1210_s17, 3 }
   0x5   : > { %s1487_s18 = smov (%p29_p1, %s27_s18), 0  ;;  %p186_p3 = pnand %p1003_p0, %p185_p2 }
   0x6   : > { %p225_p4 = scmp.lt.s32.totalorder (!%p186_p3), %s1202_s15, 1  ;;  %v1180_v0 = vld [vmem:[%s1480_s1] sm:$0xff] (!%p186_p3)   ;;  %v1181_v1 = vld [vmem:[%s1480_s1 + $0x8] sm:$0xff] (!%p186_p3)   ;;  %v1182_v2 = vld [vmem:[%s1480_s1 + $0x10] sm:$0xff] (!%p186_p3)   ;;  %s1212_s5 = smov (!%p186_p3), 64   ;;  %vm324_vm0 = vcmask (!%p186_p3), 261120  }
   0x7   : > { %189 = sbr.rel (%p186_p3) target bundleno = 423 (0x1a7), region = 28  ;;  %1088 = vmatprep.subr.bf16.mxu0 (!%p186_p3), %v1180_v0  ;;  %1112 = vmatprep.subr.bf16.mxu1 (!%p186_p3), %v1180_v0  ;;  %v1183_v6 = vld [vmem:[%s1480_s1 + $0x18] sm:$0xff] (!%p186_p3)   ;;  %v1184_v35 = vld [vmem:[%s1480_s1 + $0x20] sm:$0xff] (!%p186_p3)   ;;  %v1185_v50 = vld [vmem:[%s1480_s1 + $0x28] sm:$0xff] (!%p186_p3)   ;;  %s1213_s10 = smov (!%p186_p3), 32   ;;  %vm331_vm1 = vcmask (!%p186_p3), 785408  }
   0x8   : > { %1089 = vmatpush3.bf16.msra.mxu0 (!%p186_p3), %v1180_v0  ;;  %1120 = vmatpush3.bf16.msra.mxu1 (!%p186_p3), %v1180_v0  ;;  %v1186_v62 = vld [vmem:[%s1480_s1 + $0x30] sm:$0xff] (!%p186_p3)   ;;  %s1214_s13 = smov (!%p186_p3), 96   ;;  %vm328_vm2 = vcmask (!%p186_p3), 523264   ;;  %vm608_vm3 = vcmask (!%p186_p3), 1043456   ;;  %vm782_vm4 = vcmask (!%p186_p3), 125952   ;;  %vm791_vm5 = vcmask (!%p186_p3), 130048  }
   0x9   : > { %1090 = vmatprep.subr.bf16.mxu0 (!%p186_p3), %v1181_v1  ;;  %1113 = vmatprep.subr.bf16.mxu1 (!%p186_p3), %v1181_v1 }
   0xc   : > { %1091 = vmatpush3.bf16.msra.mxu0 (!%p186_p3), %v1181_v1  ;;  %1121 = vmatpush3.bf16.msra.mxu1 (!%p186_p3), %v1181_v1 }
   0xd   : > { %1092 = vmatprep.subr.bf16.mxu0 (!%p186_p3), %v1182_v2  ;;  %1114 = vmatprep.subr.bf16.mxu1 (!%p186_p3), %v1182_v2 }
   0xe   : > { %s1489_s15 = smov (!%p225_p4, %s1202_s15), 1 }
   0xf   : > { %s1128_s23 = smul.u32 72, %s1489_s15  ;;  %s1067_s20 = sshll.u32 %s1489_s15, 5 }
  0x10   : > { %1093 = vmatpush3.bf16.msra.mxu0 %v1182_v2  ;;  %1122 = vmatpush3.bf16.msra.mxu1 %v1182_v2  ;;  %s1007_s24 = sshll.u32 %s1489_s15, 3 }
  0x11   : > { %s1273_s28 = scalar_lea.vmem %s1479_s0, %s1128_s23  ;;  %1094 = vmatprep.subr.bf16.mxu0 %v1183_v6  ;;  %1115 = vmatprep.subr.bf16.mxu1 %v1183_v6  ;;  %s1427_s23 = scalar_lea.vmem %s1481_s2, %s1067_s20 }
  0x12   : > { %v1011_v3 = vld [vmem:[%s1273_s28 + $0x10] sm:$0xf]  ;;  %v1012_v4 = vld [vmem:[%s1273_s28 + $0x14] sm:$0x1]  ;;  %v1015_v5 = vld [vmem:[%s1273_s28 + $0x20] sm:$0xf]  ;;  %s244_s27 = scalar_lea.vmem %s1482_s3, %s1007_s24  ;;  %s250_s30 = scalar_lea.vmem %s1483_s4, %s1007_s24 }
  0x13   : > { %v1029_v7 = vcombine.low %v1011_v3, %v1011_v3  ;;  %v1281_v8 = vcombine.low %v1011_v3, %v1012_v4  ;;  %v1016_v9 = vld [vmem:[%s1273_s28 + $0x24] sm:$0x1]  ;;  %v1035_v10 = vcombine.low %v1015_v5, %v1015_v5  ;;  %v1009_v11 = vld [vmem:[%s1273_s28 + $0x8] sm:$0xf]  ;;  %v1010_v12 = vld [vmem:[%s1273_s28 + $0xc] sm:$0x1] }
  0x14   : > { %v1286_v13 = vcombine.low %v1015_v5, %v1016_v9  ;;  %v1289_v14 = vld [vmem:[%s1273_s28 + $0x18] sm:$0xf]  ;;  %v264_v15 = vld [vmem:[%s1273_s28 + $0x1c] sm:$0x1]  ;;  %v1293_v16 = vld [vmem:[%s1273_s28 + $0x8] sm:$0xf]  ;;  %v1026_v18 = vcombine.low %v1009_v11, %v1009_v11  ;;  %v1303_v22 = vcombine.low %v1009_v11, %v1010_v12  ;;  %1095 = vmatpush3.bf16.msra.mxu0 %v1183_v6  ;;  %1123 = vmatpush3.bf16.msra.mxu1 %v1183_v6 }
  0x15   : > { %v359_v17 = vshll.u32 %v1281_v8, 16  ;;  %351 = vrot.lane.b32.xlu0 %v1029_v7, %s1212_s5  ;;  %427 = vrot.lane.b32.xlu1 %v1035_v10, %s1212_s5  ;;  %v1034_v19 = vcombine.low %v1289_v14, %v264_v15  ;;  %v260_v20 = vld [vmem:[%s1273_s28 + $0xc] sm:$0x1]  ;;  %v1301_v21 = vld [vmem:[%s1273_s28] sm:$0xf]  ;;  %v357_v26 = vshrl.u32 %v1281_v8, 16 }
  0x16   : > { %v1028_v23 = vcombine.low %v1293_v16, %v260_v20  ;;  %v258_v24 = vld [vmem:[%s1273_s28 + $0x4] sm:$0x1]  ;;  %v1308_v25 = vld [vmem:[%s1273_s28 + $0x10] sm:$0xf]  ;;  %v262_v30 = vld [vmem:[%s1273_s28 + $0x14] sm:$0x1]  ;;  %1096 = vmatprep.subr.bf16.mxu0 %v1184_v35  ;;  %1116 = vmatprep.subr.bf16.mxu1 %v1184_v35 }
  0x17   : > { %v416_v27 = vshrl.u32 %v1034_v19, 16  ;;  %v418_v28 = vshll.u32 %v1034_v19, 16  ;;  %v1025_v29 = vcombine.low %v1301_v21, %v258_v24  ;;  %v435_v31 = vshll.u32 %v1286_v13, 16  ;;  %v1320_v42 = vld [vmem:[%s1273_s28 + $0x18] sm:$0xf] }
  0x18   : > { %v340_v32 = vshrl.u32 %v1028_v23, 16  ;;  %v342_v33 = vshll.u32 %v1028_v23, 16  ;;  %v1031_v34 = vcombine.low %v1308_v25, %v262_v30  ;;  %v361_v39 = vrot.slane %v359_v17, 1  ;;  %v1014_v43 = vld [vmem:[%s1273_s28 + $0x1c] sm:$0x1]  ;;  %1097 = vmatpush3.bf16.msra.mxu0 %v1184_v35  ;;  %1124 = vmatpush3.bf16.msra.mxu1 %v1184_v35 }
  0x19   : > { %310 = vrot.lane.b32.xlu0 %v1026_v18, %s1212_s5  ;;  %v420_v36 = vrot.slane %v418_v28, 1  ;;  %v299_v37 = vshrl.u32 %v1025_v29, 16  ;;  %v301_v38 = vshll.u32 %v1025_v29, 16  ;;  %v1324_v46 = vld [vmem:[%s1273_s28 + $0x28] sm:$0xf]  ;;  %v318_v53 = vshll.u32 %v1303_v22, 16  ;;  %1098 = vmatprep.subr.bf16.mxu0 %v1185_v50 }
  0x1a   : > { %v344_v40 = vrot.slane %v342_v33, 1  ;;  %v380_v41 = vshll.u32 %v1031_v34, 16  ;;  %v268_v47 = vld [vmem:[%s1273_s28 + $0x2c] sm:$0x1]  ;;  %v378_v49 = vshrl.u32 %v1031_v34, 16  ;;  %v1033_v54 = vcombine.low %v1320_v42, %v1014_v43  ;;  %1117 = vmatprep.subr.bf16.mxu1 %v1185_v50  ;;  %v1187_v10 = vld [vmem:[%s1480_s1 + $0x38] sm:$0xff]  }
  0x1b   : > { %v421_v44 = vor.u32 %v420_v36, %v416_v27  ;;  %v303_v45 = vrot.slane %v301_v38, 1  ;;  %v433_v55 = vshrl.u32 %v1286_v13, 16  ;;  %v362_v56 = vor.u32 %v361_v39, %v357_v26  ;;  %v1337_v59 = vld [vmem:[%s1273_s28 + $0x38] sm:$0xf]  ;;  %v272_v60 = vld [vmem:[%s1273_s28 + $0x3c] sm:$0x1] }
  0x1c   : > { %v345_v48 = vor.u32 %v344_v40, %v340_v32  ;;  %v382_v52 = vrot.slane %v380_v41, 1  ;;  %v437_v57 = vrot.slane %v435_v31, 1  ;;  %v1040_v58 = vcombine.low %v1324_v46, %v268_v47  ;;  %v1019_v2 = vld [vmem:[%s1273_s28 + $0x30] sm:$0xf]  ;;  %v1020_v3 = vld [vmem:[%s1273_s28 + $0x34] sm:$0x1]  ;;  %1099 = vmatpush3.bf16.msra.mxu0 %v1185_v50  ;;  %1125 = vmatpush3.bf16.msra.mxu1 %v1185_v50 }
  0x1d   : > { %422 = vrot.lane.b32.xlu1 %v421_v44, %s1213_s10  ;;  %v304_v51 = vor.u32 %v303_v45, %v299_v37  ;;  %v316_v61 = vshrl.u32 %v1303_v22, 16  ;;  %v320_v0 = vrot.slane %v318_v53, 1  ;;  %v397_v1 = vshll.u32 %v1033_v54, 16  ;;  %v1350_v7 = vld [vmem:[%s1273_s28 + $0x20] sm:$0xf]  ;;  %1100 = vmatprep.subr.bf16.mxu0 %v1186_v62 }
  0x1e   : > { %346 = vrot.lane.b32.xlu0 %v345_v48, %s1213_s10  ;;  %v383_v63 = vor.u32 %v382_v52, %v378_v49  ;;  %v438_v4 = vor.u32 %v437_v57, %v433_v55  ;;  %v494_v5 = vshll.u32 %v1040_v58, 16  ;;  %v1046_v6 = vcombine.low %v1337_v59, %v272_v60  ;;  %v266_v8 = vld [vmem:[%s1273_s28 + $0x24] sm:$0x1]  ;;  %1118 = vmatprep.subr.bf16.mxu1 %v1186_v62  ;;  %v1364_v29 = vld [vmem:[%s1273_s28 + $0x30] sm:$0xf] }
  0x1f   : > { %v395_v9 = vshrl.u32 %v1033_v54, 16  ;;  %v321_v11 = vor.u32 %v320_v0, %v316_v61  ;;  %v399_v12 = vrot.slane %v397_v1, 1  ;;  %v1042_v13 = vcombine.low %v1019_v2, %v1020_v3  ;;  %v270_v30 = vld [vmem:[%s1273_s28 + $0x34] sm:$0x1]  ;;  %v1023_v31 = vld [vmem:[%s1273_s28 + $0x40] sm:$0xf] }
  0x20   : > { %v1037_v15 = vcombine.low %v1350_v7, %v266_v8  ;;  %v1032_v17 = vcombine.low %v1320_v42, %v1320_v42  ;;  %v492_v18 = vshrl.u32 %v1040_v58, 16  ;;  %v496_v19 = vrot.slane %v494_v5, 1  ;;  %1101 = vmatpush3.bf16.msra.mxu0 %v1186_v62  ;;  %1126 = vmatpush3.bf16.msra.mxu1 %v1186_v62  ;;  %v1024_v32 = vld [vmem:[%s1273_s28 + $0x44] sm:$0x1]  ;;  %v1017_v41 = vld [vmem:[%s1273_s28 + $0x28] sm:$0xf] }
  0x21   : > { %305 = vrot.lane.b32.xlu1 %v304_v51, %s1213_s10  ;;  %v570_v20 = vshll.u32 %v1046_v6, 16  ;;  %1102 = vmatprep.subr.bf16.mxu0 %v1187_v10  ;;  %v400_v22 = vor.u32 %v399_v12, %v395_v9  ;;  %v511_v24 = vshll.u32 %v1042_v13, 16  ;;  %v568_v27 = vshrl.u32 %v1046_v6, 16  ;;  %v1018_v42 = vld [vmem:[%s1273_s28 + $0x2c] sm:$0x1] }
  0x22   : > { %363 = vrot.lane.b32.xlu0 %v362_v56, %s1214_s13  ;;  %1119 = vmatprep.subr.bf16.mxu1 %v1187_v10  ;;  %v456_v23 = vshll.u32 %v1037_v15, 16  ;;  %v497_v26 = vor.u32 %v496_v19, %v492_v18  ;;  %v1041_v33 = vcombine.low %v1019_v2, %v1019_v2  ;;  %v454_v34 = vshrl.u32 %v1037_v15, 16  ;;  %v1021_v49 = vld [vmem:[%s1273_s28 + $0x38] sm:$0xf]  ;;  %v1022_v50 = vld [vmem:[%s1273_s28 + $0x3c] sm:$0x1] }
  0x23   : > { %v572_v28 = vrot.slane %v570_v20, 1  ;;  %v1043_v36 = vcombine.low %v1364_v29, %v270_v30  ;;  %v509_v38 = vshrl.u32 %v1042_v13, 16  ;;  %v513_v39 = vrot.slane %v511_v24, 1 }
  0x24   : > { %1103 = vmatpush3.bf16.msra.mxu0 %v1187_v10  ;;  %1127 = vmatpush3.bf16.msra.mxu1 %v1187_v10  ;;  %v458_v35 = vrot.slane %v456_v23, 1  ;;  %v1048_v40 = vcombine.low %v1023_v31, %v1024_v32  ;;  %v1039_v44 = vcombine.low %v1017_v41, %v1018_v42  ;;  %v1047_v51 = vcombine.low %v1023_v31, %v1023_v31 }
  0x25   : > { %384 = vrot.lane.b32.xlu1 %v383_v63, %s1213_s10  ;;  %v573_v37 = vor.u32 %v572_v28, %v568_v27  ;;  %v532_v45 = vshll.u32 %v1043_v36, 16  ;;  %v514_v47 = vor.u32 %v513_v39, %v509_v38  ;;  %v530_v52 = vshrl.u32 %v1043_v36, 16 }
  0x26   : > { %439 = vrot.lane.b32.xlu0 %v438_v4, %s1214_s13  ;;  %v459_v43 = vor.u32 %v458_v35, %v454_v34  ;;  %v587_v48 = vshll.u32 %v1048_v40, 16  ;;  %v473_v54 = vshll.u32 %v1039_v44, 16  ;;  %v1045_v55 = vcombine.low %v1021_v49, %v1022_v50 }
  0x27   : > { %v534_v53 = vrot.slane %v532_v45, 1  ;;  %v1038_v56 = vcombine.low %v1017_v41, %v1017_v41  ;;  %v585_v57 = vshrl.u32 %v1048_v40, 16  ;;  %v471_v61 = vshrl.u32 %v1039_v44, 16 }
  0x28   : > { %v589_v58 = vrot.slane %v587_v48, 1  ;;  %v475_v62 = vrot.slane %v473_v54, 1  ;;  %v549_v63 = vshll.u32 %v1045_v55, 16  ;;  %v547_v2 = vshrl.u32 %v1045_v55, 16 }
  0x29   : > { %322 = vrot.lane.b32.xlu1 %v321_v11, %s1214_s13  ;;  %v535_v60 = vor.u32 %v534_v53, %v530_v52  ;;  %v1044_v4 = vcombine.low %v1021_v49, %v1021_v49 }
  0x2a   : > { %389 = vrot.lane.b32.xlu0 %v1032_v17, %s1212_s5  ;;  %v590_v0 = vor.u32 %v589_v58, %v585_v57  ;;  %v476_v1 = vor.u32 %v475_v62, %v471_v61  ;;  %v551_v3 = vrot.slane %v549_v63, 1 }
  0x2c   : > { %v552_v5 = vor.u32 %v551_v3, %v547_v2 }
  0x2d   : > { %401 = vrot.lane.b32.xlu1 %v400_v22, %s1214_s13 }
  0x2e   : > { %498 = vrot.lane.b32.xlu0 %v497_v26, %s1213_s10 }
  0x31   : > { %503 = vrot.lane.b32.xlu1 %v1041_v33, %s1212_s5 }
  0x32   : > { %574 = vrot.lane.b32.xlu0 %v573_v37, %s1213_s10 }
  0x35   : > { %460 = vrot.lane.b32.xlu1 %v459_v43, %s1213_s10 }
  0x36   : > { %515 = vrot.lane.b32.xlu0 %v514_v47, %s1214_s13 }
  0x39   : > { %579 = vrot.lane.b32.xlu1 %v1047_v51, %s1212_s5 }
  0x3a   : > { %465 = vrot.lane.b32.xlu0 %v1038_v56, %s1212_s5 }
  0x3d   : > { %536 = vrot.lane.b32.xlu1 %v535_v60, %s1213_s10 }
  0x3e   : > { %591 = vrot.lane.b32.xlu0 %v590_v0, %s1214_s13 }
  0x41   : > { %477 = vrot.lane.b32.xlu1 %v476_v1, %s1214_s13 }
  0x42   : > { %541 = vrot.lane.b32.xlu0 %v1044_v4, %s1212_s5 }
  0x45   : > { %553 = vrot.lane.b32.xlu1 %v552_v5, %s1214_s13 }
  0x87   : > { %v352_v6 = vpop.permute.xlu0 %351  ;;  %v428_v8 = vpop.permute.xlu1 %427 }
  0x8b   : > { %v311_v9 = vpop.permute.xlu0 %310 }
  0x8f   : > { %v423_v10 = vpop.permute.xlu1 %422 }
  0x90   : > { %v347_v11 = vpop.permute.xlu0 %346  ;;  %v443_v19 = vsel %vm324_vm0, %v1289_v14, %v423_v10 }
  0x91   : > { %v367_v13 = vsel %vm324_vm0, %v1293_v16, %v347_v11  ;;  %v445_v26 = vsel %vm328_vm2, %v443_v19, %v428_v8 }
  0x92   : > { %v369_v17 = vsel %vm328_vm2, %v367_v13, %v352_v6 }
  0x93   : > { %v306_v12 = vpop.permute.xlu1 %305 }
  0x94   : > { %v364_v15 = vpop.permute.xlu0 %363  ;;  %v327_v20 = vsel %vm324_vm0, %v1301_v21, %v306_v12 }
  0x95   : > { %v371_v22 = vsel %vm331_vm1, %v369_v17, %v364_v15  ;;  %v330_v16 = vsel %vm328_vm2, %v327_v20, %v311_v9 }
  0x96   : > { %v601_v24 = vrot.slane %v371_v22, 4 }
  0x97   : > { %v385_v18 = vpop.permute.xlu1 %384 }
  0x98   : > { %v440_v23 = vpop.permute.xlu0 %439  ;;  %v405_v28 = vsel %vm324_vm0, %v1308_v25, %v385_v18 }
  0x99   : > { %v447_v30 = vsel %vm331_vm1, %v445_v26, %v440_v23 }
  0x9a   : > { %v603_v33 = vrot.slane %v447_v30, 4 }
  0x9b   : > { %v323_v27 = vpop.permute.xlu1 %322 }
  0x9c   : > { %v333_v14 = vsel %vm331_vm1, %v330_v16, %v323_v27  ;;  %v390_v31 = vpop.permute.xlu0 %389 }
  0x9d   : > { %v407_v21 = vsel %vm328_vm2, %v405_v28, %v390_v31  ;;  %v610_v32 = vsel %vm608_vm3, %v333_v14, %v601_v24 }
  0x9e   : > { %1104 = vmatprep.mubr.bf16.mxu0 %v610_v32 }
  0x9f   : > { %v402_v34 = vpop.permute.xlu1 %401 }
  0xa0   : > { %v409_v35 = vsel %vm331_vm1, %v407_v21, %v402_v34  ;;  %v499_v36 = vpop.permute.xlu0 %498 }
  0xa1   : > { %v613_v37 = vsel %vm608_vm3, %v409_v35, %v603_v33  ;;  %v519_v42 = vsel %vm324_vm0, %v1324_v46, %v499_v36 }
  0xa2   : > { %1105 = vmatmul.mubr.bf16.vlgmr.msra.gmra.mrb[0].mxu0 %v613_v37 }
  0xa3   : > { %v504_v38 = vpop.permute.xlu1 %503 }
  0xa4   : > { %v575_v25 = vpop.permute.xlu0 %574  ;;  %v521_v44 = vsel %vm328_vm2, %v519_v42, %v504_v38 }
  0xa5   : > { %v595_v49 = vsel %vm324_vm0, %v1337_v59, %v575_v25 }
  0xa7   : > { %v461_v39 = vpop.permute.xlu1 %460 }
  0xa8   : > { %v516_v40 = vpop.permute.xlu0 %515  ;;  %v481_v50 = vsel %vm324_vm0, %v1350_v7, %v461_v39 }
  0xa9   : > { %v523_v47 = vsel %vm331_vm1, %v521_v44, %v516_v40 }
  0xaa   : > { %v605_v51 = vrot.slane %v523_v47, 4 }
  0xab   : > { %v580_v41 = vpop.permute.xlu1 %579 }
  0xac   : > { %v466_v43 = vpop.permute.xlu0 %465  ;;  %v597_v52 = vsel %vm328_vm2, %v595_v49, %v580_v41 }
  0xad   : > { %v483_v53 = vsel %vm328_vm2, %v481_v50, %v466_v43 }
  0xaf   : > { %v537_v45 = vpop.permute.xlu1 %536 }
  0xb0   : > { %v592_v48 = vpop.permute.xlu0 %591  ;;  %v557_v54 = vsel %vm324_vm0, %v1364_v29, %v537_v45 }
  0xb1   : > { %v599_v55 = vsel %vm331_vm1, %v597_v52, %v592_v48 }
  0xb2   : > { %v607_v7 = vrot.slane %v599_v55, 4 }
  0xb3   : > { %v478_v46 = vpop.permute.xlu1 %477 }
  0xb4   : > { %v485_v56 = vsel %vm331_vm1, %v483_v53, %v478_v46  ;;  %v542_v57 = vpop.permute.xlu0 %541 }
  0xb5   : > { %v559_v59 = vsel %vm328_vm2, %v557_v54, %v542_v57  ;;  %v616_v58 = vsel %vm608_vm3, %v485_v56, %v605_v51 }
  0xb6   : > { %1108 = vmatprep.mubr.bf16.mxu1 %v616_v58 }
  0xb7   : > { %v554_v60 = vpop.permute.xlu1 %553 }
  0xb8   : > { %v561_v61 = vsel %vm331_vm1, %v559_v59, %v554_v60 }
  0xb9   : > { %v619_v62 = vsel %vm608_vm3, %v561_v61, %v607_v7 }
  0xba   : > { %1109 = vmatmul.mubr.bf16.vlgmr.msra.gmra.mrb[0].mxu1 %v619_v62 }
 0x175   : > { %v1106_v29 = vpop.f32.mrb[0].mxu0 }
 0x176   : > { %v1070_v63 = vpack.c.bf16 %v1106_v29, %v1106_v29  ;;  %v719_v0 = vpop.f32.mrb[1].mxu0  ;;  %v815_v4 = vmul.f32 %v1106_v29, %v1106_v29  ;;  %v795_v13 = vsel %vm791_vm5, %v1106_v29, 0.0 }
 0x177   : > { %v1068_v1 = vpack.c.bf16 %v719_v0, %v719_v0  ;;  %v813_v2 = vmul.f32 %v719_v0, %v719_v0  ;;  %v1107_v3 = vpop.f32.mrb[2].mxu0  ;;  %v792_v8 = vsel %vm791_vm5, %v719_v0, 0.0 }
 0x178   : > { %785 = vst.msk [vmem:[%s1427_s23 + $0x8] sm:$0xf] %vm782_vm4, %v1070_v63  ;;  %v1071_v5 = vpack.c.bf16 %v1107_v3, %v1107_v3  ;;  %v722_v6 = vpop.f32.mrb[3].mxu0  ;;  %v816_v17 = vmul.f32 %v1107_v3, %v1107_v3  ;;  %v824_v22 = vsel %vm791_vm5, %v815_v4, 0.0  ;;  %v797_v23 = vsel %vm791_vm5, %v1107_v3, 0.0 }
 0x179   : > { %783 = vst.msk [vmem:[%s1427_s23] sm:$0xf] %vm782_vm4, %v1068_v1  ;;  %v1069_v9 = vpack.c.bf16 %v722_v6, %v722_v6  ;;  %v793_v10 = vsel %vm791_vm5, %v722_v6, 0.0  ;;  %v814_v11 = vmul.f32 %v722_v6, %v722_v6  ;;  %v821_v15 = vsel %vm791_vm5, %v813_v2, 0.0 }
 0x17a   : > { %786 = vst.msk [vmem:[%s1427_s23 + $0xc] sm:$0xf] %vm782_vm4, %v1071_v5  ;;  %v794_v12 = vadd.f32 %v793_v10, %v792_v8  ;;  %v826_v16 = vsel %vm791_vm5, %v816_v17, 0.0 }
 0x17b   : > { %784 = vst.msk [vmem:[%s1427_s23 + $0x4] sm:$0xf] %vm782_vm4, %v1069_v9  ;;  %v822_v18 = vsel %vm791_vm5, %v814_v11, 0.0 }
 0x17c   : > { %v796_v19 = vadd.f32 %v795_v13, %v794_v12  ;;  %v823_v20 = vadd.f32 %v822_v18, %v821_v15 }
 0x17e   : > { %v825_v24 = vadd.f32 %v824_v22, %v823_v20  ;;  %v798_v26 = vadd.f32 %v797_v23, %v796_v19 }
 0x180   : > { %v827_v27 = vadd.f32 %v826_v16, %v825_v24 }
 0x18d   : > { %v1110_v28 = vpop.f32.mrb[0].mxu1 }
 0x18e   : > { %v1074_v30 = vpack.c.bf16 %v1110_v28, %v1110_v28  ;;  %v735_v14 = vpop.f32.mrb[1].mxu1  ;;  %v819_v39 = vmul.f32 %v1110_v28, %v1110_v28  ;;  %v803_v43 = vsel %vm791_vm5, %v1110_v28, 0.0 }
 0x18f   : > { %v1072_v31 = vpack.c.bf16 %v735_v14, %v735_v14  ;;  %v799_v21 = vsel %vm791_vm5, %v735_v14, 0.0  ;;  %v817_v32 = vmul.f32 %v735_v14, %v735_v14  ;;  %v1111_v33 = vpop.f32.mrb[2].mxu1 }
 0x190   : > { %789 = vst.msk [vmem:[%s1427_s23 + $0x18] sm:$0xf] %vm782_vm4, %v1074_v30  ;;  %v800_v34 = vadd.f32 %v799_v21, %v798_v26  ;;  %v1075_v35 = vpack.c.bf16 %v1111_v33, %v1111_v33  ;;  %v738_v36 = vpop.f32.mrb[3].mxu1  ;;  %v820_v44 = vmul.f32 %v1111_v33, %v1111_v33  ;;  %v805_v48 = vsel %vm791_vm5, %v1111_v33, 0.0 }
 0x191   : > { %787 = vst.msk [vmem:[%s1427_s23 + $0x10] sm:$0xf] %vm782_vm4, %v1072_v31  ;;  %v828_v37 = vsel %vm791_vm5, %v817_v32, 0.0  ;;  %v1073_v38 = vpack.c.bf16 %v738_v36, %v738_v36  ;;  %v801_v25 = vsel %vm791_vm5, %v738_v36, 0.0  ;;  %v818_v42 = vmul.f32 %v738_v36, %v738_v36 }
 0x192   : > { %v829_v40 = vadd.f32 %v828_v37, %v827_v27  ;;  %790 = vst.msk [vmem:[%s1427_s23 + $0x1c] sm:$0xf] %vm782_vm4, %v1075_v35  ;;  %v802_v41 = vadd.f32 %v801_v25, %v800_v34  ;;  %v832_v50 = vsel %vm791_vm5, %v819_v39, 0.0  ;;  %v834_v53 = vsel %vm791_vm5, %v820_v44, 0.0 }
 0x193   : > { %788 = vst.msk [vmem:[%s1427_s23 + $0x14] sm:$0xf] %vm782_vm4, %v1073_v38  ;;  %v830_v47 = vsel %vm791_vm5, %v818_v42, 0.0 }
 0x194   : > { %v804_v45 = vadd.f32 %v803_v43, %v802_v41  ;;  %v831_v49 = vadd.f32 %v830_v47, %v829_v40 }
 0x196   : > { %v806_v51 = vadd.f32 %v805_v48, %v804_v45  ;;  %v833_v52 = vadd.f32 %v832_v50, %v831_v49 }
 0x198   : > { %v807_v46 = vrot.slane %v806_v51, 4  ;;  %v835_v54 = vadd.f32 %v834_v53, %v833_v52 }
 0x19a   : > { %v808_v55 = vadd.f32 %v807_v46, %v806_v51  ;;  %v836_v56 = vrot.slane %v835_v54, 4 }
 0x19c   : > { %v809_v57 = vrot.slane %v808_v55, 2  ;;  %v837_v59 = vadd.f32 %v836_v56, %v835_v54 }
 0x19e   : > { %v810_v58 = vadd.f32 %v809_v57, %v808_v55  ;;  %v838_v7 = vrot.slane %v837_v59, 2 }
 0x1a0   : > { %v811_v60 = vrot.slane %v810_v58, 1  ;;  %v839_v61 = vadd.f32 %v838_v7, %v837_v59 }
 0x1a2   : > { %v812_v62 = vadd.f32 %v811_v60, %v810_v58  ;;  %v840_v29 = vrot.slane %v839_v61, 1 }
 0x1a4   : > { %842 = vst.msk [vmem:[%s244_s27] sm:$0xff] %vm791_vm5, %v812_v62  ;;  %v841_v63 = vadd.f32 %v840_v29, %v839_v61 }
 0x1a6   : > { %843 = vst.msk [vmem:[%s250_s30] sm:$0xff] %vm791_vm5, %v841_v63 }
 0x1a7 PF: > { %s15_s17 = sadd.s32 1, %s1210_s17   ;;  %s1484_s15 = smov %s1206_s16 }
 0x1a8   : > { %p12_p5 = scmp.ge.s32.totalorder %s15_s17, 4   ;;  %s1485_s16 = smov %s1487_s18 }
 0x1aa   :  { %14 = sbr.rel (!%p12_p5) target bundleno = 2 (0x2), region = 84 }

// kernel: _lambda_.12
= control target key start
LH: loop header
LB: loop body
LE: loop exit
PB: predicated region body
PF: predicated region fallthrough
CT: control target
= control target key end

     0   :  { %s103_s0 = inlined_call_operand.vmem [shape: bf16[16,128], index: 0, kind: input, shape index: {}]   ;;  %s104_s1 = inlined_call_operand.vmem [shape: f32[1,128], index: 1, kind: input, shape index: {}]   ;;  %s105_s2 = inlined_call_operand.vmem [shape: f32[1,128], index: 2, kind: input, shape index: {}]   ;;  %s106_s3 = inlined_call_operand.vmem [shape: bf16[16,128], index: 3, kind: output, shape index: {}]  }
   0x1   :  { %v63_v0 = vld [vmem:[%s103_s0] sm:$0xff]  }
   0x2   :  { %v56_v1 = vld [vmem:[%s104_s1] ss:$0 sm:$0xff]  ;;  %v64_v2 = vunpack.c.l.bf16 %v63_v0  ;;  %v65_v3 = vunpack.c.h.bf16 %v63_v0 }
   0x3   :  { %v57_v4 = vld [vmem:[%s105_s2] ss:$0 sm:$0xff] }
   0x4   :  { %v25_v5 = vmul.f32 %v64_v2, %v56_v1  ;;  %v26_v6 = vmul.f32 %v65_v3, %v56_v1 }
   0x6   :  { %v34_v7 = vadd.f32 %v57_v4, %v25_v5  ;;  %v35_v8 = vadd.f32 %v57_v4, %v26_v6 }
   0x8   :  { %vm36_vm0 = vcmp.ge.f32.partialorder %v34_v7, 0.0  ;;  %vm37_vm1 = vcmp.ge.f32.partialorder %v35_v8, 0.0  ;;  %v38_v9 = vmul.f32 0.2, %v34_v7  ;;  %v39_v10 = vmul.f32 0.2, %v35_v8 }
   0xa   :  { %v40_v11 = vsel %vm36_vm0, %v34_v7, %v38_v9  ;;  %v41_v12 = vsel %vm37_vm1, %v35_v8, %v39_v10 }
   0xb   :  { %v69_v13 = vpack.c.bf16 %v41_v12, %v40_v11 }
   0xd   :  { %70 = vst [vmem:[%s106_s3] sm:$0xff] %v69_v13  }

// kernel: tile.68
= control target key start
LH: loop header
LB: loop body
LE: loop exit
PB: predicated region body
PF: predicated region fallthrough
CT: control target
= control target key end

     0   :  { %s22_s0 = inlined_call_operand.vmem [shape: f32[32], index: 0, kind: input, shape index: {}]   ;;  %s23_s1 = inlined_call_operand.vmem [shape: f32[4,32], index: 1, kind: output, shape index: {}]  }
   0x1   :  { %v4_v0 = vld [vmem:[%s22_s0] ss:$0 sm:$0xff] }
   0x2   :  { %5 = vst [vmem:[%s23_s1] sm:$0xf] %v4_v0 }

// kernel: tile.69
= control target key start
LH: loop header
LB: loop body
LE: loop exit
PB: predicated region body
PF: predicated region fallthrough
CT: control target
= control target key end

     0   :  { %vm7_vm0 = vcmask 261120   ;;  %s37_s8 = smov 32   ;;  %s38_s9 = smov 64   ;;  %vm13_vm1 = vcmask 1048320   ;;  %vm19_vm2 = vcmask 785920   ;;  %vm25_vm3 = vcmask 523520   ;;  %s55_s0 = inlined_call_operand.vmem [shape: f32[4,32], index: 0, kind: input, shape index: {}]   ;;  %s56_s1 = inlined_call_operand.vmem [shape: f32[1,128], index: 1, kind: output, shape index: {}]  }
   0x1   :  { %v4_v0 = vld [vmem:[%s55_s0] sm:$0xf]  ;;  %s36_s0 = smov 96  }
   0x2   :  { %5 = vst [vmem:[#allocation1] sm:$0xf] %v4_v0 }
   0x9   :  { %v10_v1 = vld [vmem:[#allocation1 + $0x3] sm:$0x1]   ;;  %v22_v2 = vld [vmem:[#allocation1 + $0x1] sm:$0x1]   ;;  %v6_v3 = vld [vmem:[#allocation1] sm:$0x1]  }
   0xa   :  { %11 = vrot.lane.b32.xlu0 %v10_v1, %s36_s0  ;;  %23 = vrot.lane.b32.xlu1 %v22_v2, %s37_s8  ;;  %v16_v4 = vld [vmem:[#allocation1 + $0x2] sm:$0x1]   ;;  %8 = vst.msk [vmem:[#allocation0] sm:$0x1] %vm7_vm0, %v6_v3  }
   0xe   :  { %17 = vrot.lane.b32.xlu0 %v16_v4, %s38_s9 }
  0x7c   :  { %v12_v5 = vpop.permute.xlu0 %11   ;;  %v24_v6 = vpop.permute.xlu1 %23  }
  0x7d   :  { %14 = vst.msk [vmem:[#allocation0] sm:$0x1] %vm13_vm1, %v12_v5  }
  0x80   :  { %v18_v7 = vpop.permute.xlu0 %17  }
  0x81   :  { %20 = vst.msk [vmem:[#allocation0] sm:$0x1] %vm19_vm2, %v18_v7  }
  0x82   :  { %26 = vst.msk [vmem:[#allocation0] sm:$0x1] %vm25_vm3, %v24_v6  }
  0x89   :  { %v30_v8 = vld [vmem:[#allocation0] sm:$0x1] }
  0x8a   :  { %32 = vst [vmem:[%s56_s1] sm:$0x1] %v30_v8 }

// kernel: _lambda_.14
= control target key start
LH: loop header
LB: loop body
LE: loop exit
PB: predicated region body
PF: predicated region fallthrough
CT: control target
= control target key end

     0   :  { %s75_s0 = inlined_call_operand.vmem [shape: bf16[8,128], index: 0, kind: input, shape index: {}]   ;;  %s76_s1 = inlined_call_operand.vmem [shape: f32[1,128], index: 1, kind: input, shape index: {}]   ;;  %s77_s2 = inlined_call_operand.vmem [shape: f32[1,128], index: 2, kind: input, shape index: {}]   ;;  %s78_s3 = inlined_call_operand.vmem [shape: bf16[8,128], index: 3, kind: output, shape index: {}]  }
   0x1   :  { %v14_v0 = vld [vmem:[%s75_s0] sm:$0xf] }
   0x2   :  { %v41_v1 = vld [vmem:[%s76_s1] ss:$0 sm:$0xff]  ;;  %v15_v2 = vunpack.c.l.bf16 %v14_v0 }
   0x3   :  { %v42_v3 = vld [vmem:[%s77_s2] ss:$0 sm:$0xff] }
   0x4   :  { %v23_v4 = vmul.f32 %v41_v1, %v15_v2 }
   0x6   :  { %v31_v5 = vadd.f32 %v42_v3, %v23_v4 }
   0x8   :  { %vm32_vm0 = vcmp.ge.f32.partialorder %v31_v5, 0.0  ;;  %v33_v6 = vmul.f32 0.2, %v31_v5 }
   0xa   :  { %v34_v7 = vsel %vm32_vm0, %v31_v5, %v33_v6 }
   0xb   :  { %v35_v8 = vpack.c.bf16 %v34_v7, %v34_v7 }
   0xd   :  { %36 = vst [vmem:[%s78_s3] sm:$0xf] %v35_v8 }

// kernel: _lambda_.13
= control target key start
LH: loop header
LB: loop body
LE: loop exit
PB: predicated region body
PF: predicated region fallthrough
CT: control target
= control target key end

     0   :  { %s942_s15 = smov 0   ;;  %s944_s16 = smov 0   ;;  %s1104_s0 = inlined_call_operand.vmem [shape: bf16[2,5,5,64], index: 0, kind: input, shape index: {}]   ;;  %s1105_s1 = inlined_call_operand.vmem [shape: bf16[256,32], index: 1, kind: input, shape index: {}]   ;;  %s1106_s2 = inlined_call_operand.vmem [shape: bf16[2,16,32], index: 2, kind: output, shape index: {0}]   ;;  %s1107_s3 = inlined_call_operand.vmem [shape: f32[2,8,32], index: 3, kind: output, shape index: {1}]   ;;  %s1108_s4 = inlined_call_operand.vmem [shape: f32[2,8,32], index: 4, kind: output, shape index: {2}]  }
   0x1   :  { %s946_s17 = smov 0  }
   0x2 LB: > { %s27_s18 = sadd.s32 1, %s910_s16  ;;  %p779_p0 = scmp.ge.s32.totalorder %s914_s17, 1  ;;  %s914_s17 = sphi %s946_s17, %s15_s17   ;;  %s910_s16 = sphi %s944_s16, %s1110_s16   ;;  %s906_s15 = sphi %s942_s15, %s1109_s15  }
   0x3   : > { %p29_p1 = scmp.ge.s32.totalorder %s27_s18, 2  ;;  %p185_p2 = scmp.lt.s32.totalorder %s914_s17, 3 }
   0x5   : > { %s1112_s18 = smov (%p29_p1, %s27_s18), 0  ;;  %p186_p3 = pnand %p779_p0, %p185_p2 }
   0x6   : > { %p225_p4 = scmp.lt.s32.totalorder (!%p186_p3), %s906_s15, 1  ;;  %v876_v0 = vld [vmem:[%s1105_s1 + $0x40] sm:$0xff] (!%p186_p3)   ;;  %v878_v2 = vld [vmem:[%s1105_s1 + $0x48] sm:$0xff] (!%p186_p3)   ;;  %v880_v4 = vld [vmem:[%s1105_s1 + $0x50] sm:$0xff] (!%p186_p3)   ;;  %s916_s19 = smov (!%p186_p3), 64   ;;  %vm291_vm0 = vcmask (!%p186_p3), 523264  }
   0x7   : > { %189 = sbr.rel (%p186_p3) target bundleno = 393 (0x189), region = 28  ;;  %v877_v1 = vld [vmem:[%s1105_s1] sm:$0xff] (!%p186_p3)   ;;  %820 = vmatprep.subr.bf16.mxu0 (!%p186_p3), %v876_v0  ;;  %v879_v3 = vld [vmem:[%s1105_s1 + $0x8] sm:$0xff] (!%p186_p3)   ;;  %v881_v5 = vld [vmem:[%s1105_s1 + $0x10] sm:$0xff] (!%p186_p3)   ;;  %vm400_vm1 = vcmask (!%p186_p3), 1041408   ;;  %vm405_vm2 = vcmask (!%p186_p3), 1043456  }
   0x8   : > { %821 = vmatpush3.bf16.msra.mxu0 (!%p186_p3), %v877_v1  ;;  %v882_v19 = vld [vmem:[%s1105_s1 + $0x58] sm:$0xff] (!%p186_p3)   ;;  %v884_v40 = vld [vmem:[%s1105_s1 + $0x60] sm:$0xff] (!%p186_p3)   ;;  %v886_v50 = vld [vmem:[%s1105_s1 + $0x68] sm:$0xff] (!%p186_p3)   ;;  %vm410_vm3 = vcmask (!%p186_p3), 1045504   ;;  %vm594_vm4 = vcmask (!%p186_p3), 257024   ;;  %vm597_vm5 = vcmask (!%p186_p3), 261120  }
   0x9   : > { %822 = vmatprep.subr.bf16.mxu0 (!%p186_p3), %v878_v2  ;;  %v883_v35 = vld [vmem:[%s1105_s1 + $0x18] sm:$0xff] (!%p186_p3)   ;;  %v885_v49 = vld [vmem:[%s1105_s1 + $0x20] sm:$0xff] (!%p186_p3)   ;;  %v887_v57 = vld [vmem:[%s1105_s1 + $0x28] sm:$0xff] (!%p186_p3)  }
   0xa   : > { %v888_v58 = vld [vmem:[%s1105_s1 + $0x70] sm:$0xff] (!%p186_p3)   ;;  %v890_v62 = vld [vmem:[%s1105_s1 + $0x78] sm:$0xff] (!%p186_p3)  }
   0xb   : > { %v889_v61 = vld [vmem:[%s1105_s1 + $0x30] sm:$0xff] (!%p186_p3)   ;;  %v891_v63 = vld [vmem:[%s1105_s1 + $0x38] sm:$0xff] (!%p186_p3)  }
   0xc   : > { %823 = vmatpush3.bf16.msra.mxu0 (!%p186_p3), %v879_v3 }
   0xd   : > { %824 = vmatprep.subr.bf16.mxu0 (!%p186_p3), %v880_v4 }
   0xe   : > { %s1114_s15 = smov (!%p225_p4, %s906_s15), 1 }
   0xf   : > { %s842_s25 = smul.u32 20, %s1114_s15  ;;  %s1075_s8 = sshll.u32 %s1114_s15, 3 }
  0x10   : > { %825 = vmatpush3.bf16.msra.mxu0 %v881_v5  ;;  %s238_s11 = scalar_lea.vmem %s1106_s2, %s1075_s8  ;;  %s244_s13 = scalar_lea.vmem %s1107_s3, %s1075_s8 }
  0x11   : > { %s229_s6 = scalar_lea.vmem %s1104_s0, %s842_s25  ;;  %826 = vmatprep.subr.bf16.mxu0 %v882_v19  ;;  %s250_s20 = scalar_lea.vmem %s1108_s4, %s1075_s8 }
  0x12   : > { %v984_v6 = vld [vmem:[%s229_s6 + $0xc] sm:$0x7]  ;;  %v986_v7 = vld [vmem:[%s229_s6 + $0x8] sm:$0x7]  ;;  %v988_v8 = vld [vmem:[%s229_s6 + $0x4] sm:$0x7] }
  0x13   : > { %v794_v9 = vcombine.low %v984_v6, %v984_v6  ;;  %v792_v10 = vcombine.low %v986_v7, %v986_v7  ;;  %v790_v11 = vcombine.low %v988_v8, %v988_v8  ;;  %v996_v12 = vld [vmem:[%s229_s6 + $0x4] sm:$0x7]  ;;  %v998_v13 = vld [vmem:[%s229_s6 + $0x10] sm:$0x7]  ;;  %v1000_v14 = vld [vmem:[%s229_s6 + $0x8] sm:$0x7] }
  0x14   : > { %v791_v15 = vcombine.low %v996_v12, %v996_v12  ;;  %v796_v16 = vcombine.low %v998_v13, %v998_v13  ;;  %v793_v17 = vcombine.low %v1000_v14, %v1000_v14  ;;  %v1008_v18 = vld [vmem:[%s229_s6 + $0xc] sm:$0x7]  ;;  %v1013_v31 = vld [vmem:[%s229_s6] sm:$0x7]  ;;  %827 = vmatpush3.bf16.msra.mxu0 %v883_v35 }
  0x15   : > { %v344_v20 = vshrl.u32 %v794_v9, 16  ;;  %v346_v21 = vshll.u32 %v794_v9, 16  ;;  %v314_v22 = vshrl.u32 %v792_v10, 16  ;;  %v316_v23 = vshll.u32 %v792_v10, 16  ;;  %828 = vmatprep.subr.bf16.mxu0 %v884_v40 }
  0x16   : > { %v283_v24 = vshrl.u32 %v790_v11, 16  ;;  %v285_v25 = vshll.u32 %v790_v11, 16  ;;  %v304_v26 = vshll.u32 %v791_v15, 16  ;;  %v302_v29 = vshrl.u32 %v791_v15, 16 }
  0x17   : > { %v348_v27 = vrot.slane %v346_v21, 1  ;;  %v318_v28 = vrot.slane %v316_v23, 1  ;;  %v376_v30 = vshll.u32 %v796_v16, 16  ;;  %v334_v34 = vshll.u32 %v793_v17, 16 }
  0x18   : > { %v287_v32 = vrot.slane %v285_v25, 1  ;;  %v306_v33 = vrot.slane %v304_v26, 1  ;;  %v374_v38 = vshrl.u32 %v796_v16, 16  ;;  %v795_v39 = vcombine.low %v1008_v18, %v1008_v18  ;;  %829 = vmatpush3.bf16.msra.mxu0 %v885_v49 }
  0x19   : > { %v349_v36 = vor.u32 %v348_v27, %v344_v20  ;;  %v319_v37 = vor.u32 %v318_v28, %v314_v22  ;;  %v378_v41 = vrot.slane %v376_v30, 1  ;;  %v332_v42 = vshrl.u32 %v793_v17, 16  ;;  %830 = vmatprep.subr.bf16.mxu0 %v886_v50 }
  0x1a   : > { %v789_v43 = vcombine.low %v1013_v31, %v1013_v31  ;;  %v288_v44 = vor.u32 %v287_v32, %v283_v24  ;;  %v307_v45 = vor.u32 %v306_v33, %v302_v29  ;;  %v336_v46 = vrot.slane %v334_v34, 1 }
  0x1b   : > { %350 = vrot.lane.b32.xlu1 %v349_v36, %s916_s19  ;;  %320 = vrot.lane.b32.xlu0 %v319_v37, %s916_s19  ;;  %v364_v47 = vshll.u32 %v795_v39, 16  ;;  %v362_v51 = vshrl.u32 %v795_v39, 16  ;;  %v379_v53 = vor.u32 %v378_v41, %v374_v38 }
  0x1c   : > { %v273_v48 = vshll.u32 %v789_v43, 16  ;;  %v271_v52 = vshrl.u32 %v789_v43, 16  ;;  %v337_v54 = vor.u32 %v336_v46, %v332_v42  ;;  %831 = vmatpush3.bf16.msra.mxu0 %v887_v57 }
  0x1d   : > { %v366_v55 = vrot.slane %v364_v47, 1  ;;  %832 = vmatprep.subr.bf16.mxu0 %v888_v58 }
  0x1e   : > { %v275_v56 = vrot.slane %v273_v48, 1 }
  0x1f   : > { %289 = vrot.lane.b32.xlu1 %v288_v44, %s916_s19  ;;  %308 = vrot.lane.b32.xlu0 %v307_v45, %s916_s19  ;;  %v367_v59 = vor.u32 %v366_v55, %v362_v51 }
  0x20   : > { %v276_v60 = vor.u32 %v275_v56, %v271_v52  ;;  %833 = vmatpush3.bf16.msra.mxu0 %v889_v61 }
  0x21   : > { %834 = vmatprep.subr.bf16.mxu0 %v890_v62 }
  0x23   : > { %380 = vrot.lane.b32.xlu1 %v379_v53, %s916_s19  ;;  %338 = vrot.lane.b32.xlu0 %v337_v54, %s916_s19 }
  0x24   : > { %835 = vmatpush3.bf16.msra.mxu0 %v891_v63 }
  0x27   : > { %368 = vrot.lane.b32.xlu1 %v367_v59, %s916_s19  ;;  %277 = vrot.lane.b32.xlu0 %v276_v60, %s916_s19 }
  0x8d   : > { %v351_v0 = vpop.permute.xlu1 %350  ;;  %v321_v1 = vpop.permute.xlu0 %320 }
  0x8e   : > { %v327_v2 = vsel %vm291_vm0, %v986_v7, %v321_v1  ;;  %v357_v9 = vsel %vm291_vm0, %v984_v6, %v351_v0 }
  0x8f   : > { %v391_v10 = vrot.slane %v327_v2, 6  ;;  %v395_v17 = vrot.slane %v357_v9, 4 }
  0x91   : > { %v290_v3 = vpop.permute.xlu1 %289  ;;  %v309_v4 = vpop.permute.xlu0 %308 }
  0x92   : > { %v297_v5 = vsel %vm291_vm0, %v988_v8, %v290_v3  ;;  %v324_v19 = vsel %vm291_vm0, %v996_v12, %v309_v4 }
  0x93   : > { %v404_v11 = vsel %vm400_vm1, %v297_v5, %v391_v10  ;;  %v390_v21 = vrot.slane %v324_v19, 6 }
  0x94   : > { %v409_v6 = vsel %vm405_vm2, %v404_v11, %v395_v17 }
  0x95   : > { %v381_v15 = vpop.permute.xlu1 %380  ;;  %v339_v16 = vpop.permute.xlu0 %338 }
  0x96   : > { %v387_v7 = vsel %vm291_vm0, %v998_v13, %v381_v15  ;;  %v354_v8 = vsel %vm291_vm0, %v1000_v14, %v339_v16 }
  0x97   : > { %v399_v20 = vrot.slane %v387_v7, 2  ;;  %v394_v25 = vrot.slane %v354_v8, 4 }
  0x99   : > { %v369_v22 = vpop.permute.xlu1 %368  ;;  %v278_v23 = vpop.permute.xlu0 %277  ;;  %v415_v24 = vsel %vm410_vm3, %v409_v6, %v399_v20 }
  0x9a   : > { %v384_v26 = vsel %vm291_vm0, %v1008_v18, %v369_v22  ;;  %v294_v12 = vsel %vm291_vm0, %v1013_v31, %v278_v23  ;;  %577 = vmatprep.mubr.bf16.mxu0 %v415_v24 }
  0x9b   : > { %v398_v13 = vrot.slane %v384_v26, 2  ;;  %v402_v27 = vsel %vm400_vm1, %v294_v12, %v390_v21 }
  0x9c   : > { %v407_v14 = vsel %vm405_vm2, %v402_v27, %v394_v25 }
  0x9d   : > { %v412_v28 = vsel %vm410_vm3, %v407_v14, %v398_v13 }
  0x9e   : > { %578 = vmatmul.mubr.bf16.vlgmr.msra.gmra.mrb[0].mxu0 %v412_v28 }
 0x171   : > { %v836_v29 = vpop.f32.mrb[0].mxu0 }
 0x172   : > { %v837_v30 = vpop.f32.mrb[1].mxu0 }
 0x173   : > { %v838_v32 = vadd.f32 %v837_v30, %v836_v29  ;;  %v839_v33 = vpop.f32.mrb[2].mxu0 }
 0x174   : > { %v840_v18 = vpop.f32.mrb[3].mxu0 }
 0x175   : > { %v818_v31 = vpack.c.bf16 %v838_v32, %v838_v32  ;;  %v607_v34 = vmul.f32 %v838_v32, %v838_v32  ;;  %v841_v35 = vadd.f32 %v840_v18, %v839_v33  ;;  %v598_v36 = vsel %vm597_vm5, %v838_v32, 0.0 }
 0x177   : > { %595 = vst.msk [vmem:[%s238_s11] sm:$0xf] %vm594_vm4, %v818_v31  ;;  %v819_v37 = vpack.c.bf16 %v841_v35, %v841_v35  ;;  %v599_v38 = vsel %vm597_vm5, %v841_v35, 0.0  ;;  %v608_v39 = vmul.f32 %v841_v35, %v841_v35  ;;  %v609_v41 = vsel %vm597_vm5, %v607_v34, 0.0 }
 0x178   : > { %v600_v40 = vadd.f32 %v599_v38, %v598_v36 }
 0x179   : > { %596 = vst.msk [vmem:[%s238_s11 + $0x4] sm:$0xf] %vm594_vm4, %v819_v37  ;;  %v610_v42 = vsel %vm597_vm5, %v608_v39, 0.0 }
 0x17a   : > { %v601_v43 = vrot.slane %v600_v40, 4  ;;  %v611_v44 = vadd.f32 %v610_v42, %v609_v41 }
 0x17c   : > { %v602_v45 = vadd.f32 %v601_v43, %v600_v40  ;;  %v612_v46 = vrot.slane %v611_v44, 4 }
 0x17e   : > { %v603_v47 = vrot.slane %v602_v45, 2  ;;  %v613_v48 = vadd.f32 %v612_v46, %v611_v44 }
 0x180   : > { %v604_v49 = vadd.f32 %v603_v47, %v602_v45  ;;  %v614_v50 = vrot.slane %v613_v48, 2 }
 0x182   : > { %v605_v51 = vrot.slane %v604_v49, 1  ;;  %v615_v52 = vadd.f32 %v614_v50, %v613_v48 }
 0x184   : > { %v606_v53 = vadd.f32 %v605_v51, %v604_v49  ;;  %v616_v54 = vrot.slane %v615_v52, 1 }
 0x186   : > { %v617_v55 = vadd.f32 %v616_v54, %v615_v52  ;;  %618 = vst.msk [vmem:[%s244_s13] sm:$0xff] %vm597_vm5, %v606_v53 }
 0x188   : > { %619 = vst.msk [vmem:[%s250_s20] sm:$0xff] %vm597_vm5, %v617_v55 }
 0x189 PF: > { %s15_s17 = sadd.s32 1, %s914_s17   ;;  %s1109_s15 = smov %s910_s16 }
 0x18a   : > { %p12_p5 = scmp.ge.s32.totalorder %s15_s17, 4   ;;  %s1110_s16 = smov %s1112_s18 }
 0x18c   :  { %14 = sbr.rel (!%p12_p5) target bundleno = 2 (0x2), region = 84 }

// kernel: tile.78
= control target key start
LH: loop header
LB: loop body
LE: loop exit
PB: predicated region body
PF: predicated region fallthrough
CT: control target
= control target key end

     0   :  { %s22_s0 = inlined_call_operand.vmem [shape: f32[64], index: 0, kind: input, shape index: {}]   ;;  %s23_s1 = inlined_call_operand.vmem [shape: f32[3,64], index: 1, kind: output, shape index: {}]  }
   0x1   :  { %v4_v0 = vld [vmem:[%s22_s0] ss:$0 sm:$0xff] }
   0x2   :  { %5 = vst [vmem:[%s23_s1] sm:$0xf] %v4_v0 }

// kernel: tile.79
= control target key start
LH: loop header
LB: loop body
LE: loop exit
PB: predicated region body
PF: predicated region fallthrough
CT: control target
= control target key end

     0   :  { %vm8_vm0 = vcmask 523264   ;;  %s29_s8 = smov 64   ;;  %vm14_vm1 = vcmask 1048064   ;;  %s49_s0 = inlined_call_operand.vmem [shape: f32[3,64], index: 0, kind: input, shape index: {}]   ;;  %s50_s1 = inlined_call_operand.vmem [shape: f32[1,192], index: 1, kind: output, shape index: {}]  }
   0x1   :  { %v4_v0 = vld [vmem:[%s49_s0] sm:$0xf]  ;;  %s6_s0 = smov 3 }
   0x2   :  { %5 = vst [vmem:[#allocation1] sm:$0xf] %v4_v0 }
   0x9   :  { %v11_v1 = vld [vmem:[#allocation1 + $0x1] sm:$0x1]   ;;  %v7_v2 = vld [vmem:[#allocation1] ss:$2 sm:%s6_s0]  }
   0xa   :  { %12 = vrot.lane.b32.xlu0 %v11_v1, %s29_s8  ;;  %9 = vst.msk [vmem:[#allocation0] ss:$8 sm:$0x3] %vm8_vm0, %v7_v2  }
  0x11   :  { %v23_v3 = vld [vmem:[#allocation0 + $0x8] sm:$0x1] }
  0x12   :  { %27 = vst [vmem:[%s50_s1 + $0x1] sm:$0x1] %v23_v3 }
  0x7c   :  { %v13_v4 = vpop.permute.xlu0 %12  }
  0x7d   :  { %15 = vst.msk [vmem:[#allocation0] sm:$0x1] %vm14_vm1, %v13_v4  }
  0x84   :  { %v19_v5 = vld [vmem:[#allocation0] sm:$0x1] }
  0x85   :  { %21 = vst [vmem:[%s50_s1] sm:$0x1] %v19_v5 }

// kernel: _lambda_.16
= control target key start
LH: loop header
LB: loop body
LE: loop exit
PB: predicated region body
PF: predicated region fallthrough
CT: control target
= control target key end

     0   :  { %v19_v0 = vlaneseq  ;;  %vm59_vm0 = vcmask 1042432   ;;  %vm60_vm1 = vcmask 522244   ;;  %s101_s0 = inlined_call_operand.vmem [shape: bf16[6,192], index: 0, kind: input, shape index: {}]   ;;  %s102_s1 = inlined_call_operand.vmem [shape: f32[1,192], index: 1, kind: input, shape index: {}]   ;;  %s103_s2 = inlined_call_operand.vmem [shape: f32[1,192], index: 2, kind: input, shape index: {}]   ;;  %s104_s3 = inlined_call_operand.vmem [shape: bf16[6,192], index: 3, kind: output, shape index: {}]  }
   0x1   :  { %v14_v1 = vld [vmem:[%s101_s0] sm:$0x77]  ;;  %vm61_vm4 = vmor %vm60_vm1, %vm59_vm0 }
   0x2   :  { %v20_v2 = vshrl.u32 %v19_v0, 7  ;;  %v17_v3 = vld [vmem:[%s102_s1] sm:$0x3]  ;;  %v15_v5 = vunpack.c.l.bf16 %v14_v1  ;;  %v16_v6 = vunpack.c.h.bf16 %v14_v1 }
   0x3   :  { %v31_v4 = vld [vmem:[%s103_s2] sm:$0x3] }
   0x4   :  { %v21_v7 = vsub.s32 0, %v20_v2  ;;  %v25_v8 = vsub.s32 1, %v20_v2 }
   0x6   :  { %v22_v9 = vrot.slane %v17_v3, %v21_v7  ;;  %v26_v10 = vrot.slane %v17_v3, %v25_v8  ;;  %v36_v11 = vrot.slane %v31_v4, %v21_v7  ;;  %v40_v12 = vrot.slane %v31_v4, %v25_v8 }
   0x8   :  { %v29_v13 = vmul.f32 %v22_v9, %v15_v5  ;;  %v30_v14 = vmul.f32 %v26_v10, %v16_v6 }
   0xa   :  { %v43_v15 = vadd.f32 %v36_v11, %v29_v13  ;;  %v44_v16 = vadd.f32 %v40_v12, %v30_v14 }
   0xc   :  { %vm45_vm2 = vcmp.ge.f32.partialorder %v43_v15, 0.0  ;;  %vm46_vm3 = vcmp.ge.f32.partialorder %v44_v16, 0.0  ;;  %v47_v17 = vmul.f32 0.2, %v43_v15  ;;  %v48_v18 = vmul.f32 0.2, %v44_v16 }
   0xe   :  { %v49_v19 = vsel %vm45_vm2, %v43_v15, %v47_v17  ;;  %v50_v20 = vsel %vm46_vm3, %v44_v16, %v48_v18 }
   0xf   :  { %v68_v21 = vpack.c.bf16 %v50_v20, %v49_v19 }
  0x11   :  { %62 = vst.msk [vmem:[%s104_s3] sm:$0x77] %vm61_vm4, %v68_v21 }

// kernel: _lambda_.17
= control target key start
LH: loop header
LB: loop body
LE: loop exit
PB: predicated region body
PF: predicated region fallthrough
CT: control target
= control target key end

     0   :  { %s676_s9 = smov 0   ;;  %s678_s10 = smov 0   ;;  %s874_s0 = inlined_call_operand.vmem [shape: bf16[2,5,5,64], index: 0, kind: input, shape index: {}]   ;;  %s875_s1 = inlined_call_operand.vmem [shape: f32[1,1024], index: 1, kind: input, shape index: {}]   ;;  %s876_s2 = inlined_call_operand.vmem [shape: f32[2,4,1], index: 2, kind: output, shape index: {}]  }
   0x1   :  { %s680_s11 = smov 0  }
   0x2 LB: > { %s24_s12 = sadd.s32 1, %s654_s10  ;;  %p583_p0 = scmp.ge.s32.totalorder %s658_s11, 1  ;;  %s658_s11 = sphi %s680_s11, %s12_s11   ;;  %s654_s10 = sphi %s678_s10, %s878_s10   ;;  %s650_s9 = sphi %s676_s9, %s877_s9  }
   0x3   : > { %p26_p1 = scmp.ge.s32.totalorder %s24_s12, 2  ;;  %p126_p2 = scmp.lt.s32.totalorder %s658_s11, 3 }
   0x5   : > { %s880_s12 = smov (%p26_p1, %s24_s12), 0  ;;  %p127_p3 = pnand %p583_p0, %p126_p2 }
   0x6   : > { %p150_p4 = scmp.lt.s32.totalorder (!%p127_p3), %s650_s9, 1  ;;  %s660_s17 = smov (!%p127_p3), 64   ;;  %vm254_vm0 = vcmask (!%p127_p3), 523264   ;;  %vm391_vm1 = vcmask (!%p127_p3), 1040384   ;;  %vm474_vm2 = vcmask (!%p127_p3), 1043456   ;;  %vm492_vm3 = vcmask (!%p127_p3), 3072  }
   0x7   : > { %130 = sbr.rel (%p127_p3) target bundleno = 324 (0x144), region = 28 }
   0xe   : > { %s882_s9 = smov (!%p150_p4, %s650_s9), 1 }
   0xf   : > { %s602_s13 = smul.u32 20, %s882_s9  ;;  %s585_s20 = sshll.u32 %s882_s9, 2 }
  0x10   : > { %s161_s23 = scalar_lea.vmem %s876_s2, %s585_s20 }
  0x11   : > { %s700_s16 = scalar_lea.vmem %s874_s0, %s602_s13 }
  0x12   : > { %v703_v0 = vld [vmem:[%s700_s16 + $0x4] sm:$0x7]  ;;  %v706_v1 = vld [vmem:[%s700_s16] sm:$0x7]  ;;  %v709_v2 = vld [vmem:[%s700_s16 + $0x8] sm:$0x7] }
  0x13   : > { %v713_v3 = vcombine.low %v703_v0, %v703_v0  ;;  %v717_v4 = vcombine.low %v706_v1, %v706_v1  ;;  %v721_v5 = vcombine.low %v709_v2, %v709_v2  ;;  %v724_v6 = vld [vmem:[%s700_s16 + $0x4] sm:$0x7]  ;;  %v737_v14 = vld [vmem:[%s700_s16 + $0xc] sm:$0x7]  ;;  %v740_v21 = vld [vmem:[%s700_s16 + $0x8] sm:$0x7] }
  0x14   : > { %v728_v7 = vcombine.low %v724_v6, %v724_v6  ;;  %v744_v24 = vcombine.low %v737_v14, %v737_v14  ;;  %v752_v31 = vcombine.low %v740_v21, %v740_v21  ;;  %v759_v40 = vld [vmem:[%s700_s16 + $0x10] sm:$0x7]  ;;  %v762_v41 = vld [vmem:[%s700_s16 + $0xc] sm:$0x7] }
  0x15   : > { %v283_v8 = vshrl.u32 %v713_v3, 16  ;;  %v285_v9 = vshll.u32 %v713_v3, 16  ;;  %v186_v10 = vshrl.u32 %v717_v4, 16  ;;  %v188_v11 = vshll.u32 %v717_v4, 16 }
  0x16   : > { %v303_v12 = vshll.u32 %v721_v5, 16  ;;  %v206_v13 = vshll.u32 %v728_v7, 16  ;;  %v301_v25 = vshrl.u32 %v721_v5, 16  ;;  %v204_v27 = vshrl.u32 %v728_v7, 16 }
  0x17   : > { %v287_v15 = vrot.slane %v285_v9, 1  ;;  %v292_v16 = vrot.slane %v283_v8, 1  ;;  %v190_v17 = vrot.slane %v188_v11, 1  ;;  %v195_v18 = vrot.slane %v186_v10, 1 }
  0x18   : > { %v293_v19 = vrot.slane %v285_v9, 2  ;;  %v196_v20 = vrot.slane %v188_v11, 2  ;;  %v305_v26 = vrot.slane %v303_v12, 1  ;;  %v208_v28 = vrot.slane %v206_v13, 1 }
  0x19   : > { %v288_v22 = vor.u32 %v287_v15, %v283_v8  ;;  %v191_v23 = vor.u32 %v190_v17, %v186_v10  ;;  %v310_v34 = vrot.slane %v301_v25, 1  ;;  %v311_v35 = vrot.slane %v303_v12, 2 }
  0x1a   : > { %v294_v29 = vor.u32 %v293_v19, %v292_v16  ;;  %v197_v30 = vor.u32 %v196_v20, %v195_v18  ;;  %v306_v32 = vor.u32 %v305_v26, %v301_v25  ;;  %v209_v33 = vor.u32 %v208_v28, %v204_v27 }
  0x1b   : > { %289 = vrot.lane.b32.xlu0 %v288_v22, %s660_s17  ;;  %192 = vrot.lane.b32.xlu1 %v191_v23, %s660_s17  ;;  %v213_v36 = vrot.slane %v204_v27, 1  ;;  %v214_v37 = vrot.slane %v206_v13, 2  ;;  %v321_v38 = vshll.u32 %v744_v24, 16  ;;  %v224_v39 = vshll.u32 %v752_v31, 16 }
  0x1c   : > { %v312_v42 = vor.u32 %v311_v35, %v310_v34  ;;  %v319_v43 = vshrl.u32 %v744_v24, 16  ;;  %v222_v44 = vshrl.u32 %v752_v31, 16  ;;  %v768_v45 = vcombine.low %v759_v40, %v759_v40 }
  0x1d   : > { %v215_v46 = vor.u32 %v214_v37, %v213_v36  ;;  %v323_v47 = vrot.slane %v321_v38, 1  ;;  %v226_v48 = vrot.slane %v224_v39, 1  ;;  %v774_v49 = vcombine.low %v762_v41, %v762_v41 }
  0x1e   : > { %v328_v50 = vrot.slane %v319_v43, 1  ;;  %v329_v51 = vrot.slane %v321_v38, 2  ;;  %v231_v52 = vrot.slane %v222_v44, 1  ;;  %v232_v53 = vrot.slane %v224_v39, 2 }
  0x1f   : > { %295 = vrot.lane.b32.xlu0 %v294_v29, %s660_s17  ;;  %198 = vrot.lane.b32.xlu1 %v197_v30, %s660_s17  ;;  %v324_v54 = vor.u32 %v323_v47, %v319_v43  ;;  %v227_v55 = vor.u32 %v226_v48, %v222_v44  ;;  %v339_v56 = vshll.u32 %v768_v45, 16  ;;  %v242_v57 = vshll.u32 %v774_v49, 16 }
  0x20   : > { %v337_v58 = vshrl.u32 %v768_v45, 16  ;;  %v240_v59 = vshrl.u32 %v774_v49, 16  ;;  %v330_v60 = vor.u32 %v329_v51, %v328_v50  ;;  %v233_v61 = vor.u32 %v232_v53, %v231_v52 }
  0x21   : > { %v341_v62 = vrot.slane %v339_v56, 1  ;;  %v244_v63 = vrot.slane %v242_v57, 1  ;;  %v347_v9 = vrot.slane %v339_v56, 2  ;;  %v250_v13 = vrot.slane %v242_v57, 2 }
  0x22   : > { %v346_v8 = vrot.slane %v337_v58, 1  ;;  %v249_v12 = vrot.slane %v240_v59, 1  ;;  %v426_v17 = vlaneseq  ;;  %v291_v23 = vrot.slane %v713_v3, 1 }
  0x23   : > { %307 = vrot.lane.b32.xlu0 %v306_v32, %s660_s17  ;;  %210 = vrot.lane.b32.xlu1 %v209_v33, %s660_s17  ;;  %v342_v10 = vor.u32 %v341_v62, %v337_v58  ;;  %v245_v11 = vor.u32 %v244_v63, %v240_v59  ;;  %v194_v25 = vrot.slane %v717_v4, 1  ;;  %v803_v33 = vld [vmem:[%s875_s1] sm:$0xff]  ;;  %v309_v43 = vrot.slane %v721_v5, 1 }
  0x24   : > { %v348_v15 = vor.u32 %v347_v9, %v346_v8  ;;  %v251_v16 = vor.u32 %v250_v13, %v249_v12  ;;  %v790_v19 = vshrl.u32 %v426_v17, 7  ;;  %v212_v48 = vrot.slane %v728_v7, 1 }
  0x26   : > { %v432_v28 = vsub.s32 1, %v790_v19  ;;  %v428_v29 = vsub.s32 0, %v790_v19  ;;  %v436_v35 = vsub.s32 2, %v790_v19  ;;  %v440_v53 = vsub.s32 3, %v790_v19 }
  0x27   : > { %313 = vrot.lane.b32.xlu0 %v312_v42, %s660_s17  ;;  %216 = vrot.lane.b32.xlu1 %v215_v46, %s660_s17 }
  0x28   : > { %v429_v36 = vrot.slane %v803_v33, %v428_v29  ;;  %v437_v52 = vrot.slane %v803_v33, %v436_v35  ;;  %v345_v35 = vrot.slane %v768_v45, 1 }
  0x2b   : > { %325 = vrot.lane.b32.xlu0 %v324_v54, %s660_s17  ;;  %228 = vrot.lane.b32.xlu1 %v227_v55, %s660_s17 }
  0x2f   : > { %331 = vrot.lane.b32.xlu0 %v330_v60, %s660_s17  ;;  %234 = vrot.lane.b32.xlu1 %v233_v61, %s660_s17  ;;  %v441_v60 = vrot.slane %v803_v33, %v440_v53  ;;  %v444_v61 = vsub.s32 4, %v790_v19 }
  0x33   : > { %343 = vrot.lane.b32.xlu0 %v342_v10, %s660_s17  ;;  %246 = vrot.lane.b32.xlu1 %v245_v11, %s660_s17  ;;  %v327_v10 = vrot.slane %v744_v24, 1  ;;  %v230_v11 = vrot.slane %v752_v31, 1 }
  0x37   : > { %349 = vrot.lane.b32.xlu0 %v348_v15, %s660_s17  ;;  %252 = vrot.lane.b32.xlu1 %v251_v16, %s660_s17 }
  0x8d   : > { %v290_v18 = vpop.permute.xlu0 %289  ;;  %v193_v20 = vpop.permute.xlu1 %192 }
  0x8e   : > { %v353_v22 = vsel %vm254_vm0, %v703_v0, %v290_v18  ;;  %v257_v27 = vsel %vm254_vm0, %v706_v1, %v193_v20  ;;  %v433_v1 = vrot.slane %v803_v33, %v432_v28 }
  0x8f   : > { %v383_v26 = vrot.slane %v353_v22, 7  ;;  %v445_v22 = vrot.slane %v803_v33, %v444_v61 }
  0x91   : > { %v296_v30 = vpop.permute.xlu0 %295  ;;  %v199_v32 = vpop.permute.xlu1 %198  ;;  %v393_v0 = vsel %vm391_vm1, %v257_v27, %v383_v26 }
  0x92   : > { %v356_v3 = vsel %vm254_vm0, %v291_v23, %v296_v30  ;;  %v260_v4 = vsel %vm254_vm0, %v194_v25, %v199_v32  ;;  %v416_v37 = vunpack.c.l.bf16 %v393_v0  ;;  %v448_v23 = vsub.s32 5, %v790_v19 }
  0x93   : > { %v384_v34 = vrot.slane %v356_v3, 7  ;;  %v452_v3 = vsub.s32 6, %v790_v19 }
  0x94   : > { %v466_v54 = vmul.f32 %v429_v36, %v416_v37  ;;  %v449_v0 = vrot.slane %v803_v33, %v448_v23  ;;  %v248_v36 = vrot.slane %v774_v49, 1 }
  0x95   : > { %v396_v38 = vsel %vm391_vm1, %v260_v4, %v384_v34  ;;  %v308_v39 = vpop.permute.xlu0 %307  ;;  %v211_v42 = vpop.permute.xlu1 %210 }
  0x96   : > { %v417_v44 = vunpack.c.l.bf16 %v396_v38  ;;  %v359_v46 = vsel %vm254_vm0, %v709_v2, %v308_v39  ;;  %v263_v47 = vsel %vm254_vm0, %v724_v6, %v211_v42  ;;  %v475_v62 = vsel %vm474_vm2, %v466_v54, 0.0 }
  0x97   : > { %v385_v50 = vrot.slane %v359_v46, 7  ;;  %v453_v46 = vrot.slane %v803_v33, %v452_v3 }
  0x98   : > { %v467_v51 = vmul.f32 %v433_v1, %v417_v44 }
  0x99   : > { %v399_v55 = vsel %vm391_vm1, %v263_v47, %v385_v50  ;;  %v314_v56 = vpop.permute.xlu0 %313  ;;  %v217_v5 = vpop.permute.xlu1 %216  ;;  %v456_v47 = vsub.s32 7, %v790_v19 }
  0x9a   : > { %v418_v57 = vunpack.c.l.bf16 %v399_v55  ;;  %v362_v2 = vsel %vm254_vm0, %v309_v43, %v314_v56  ;;  %v266_v58 = vsel %vm254_vm0, %v212_v48, %v217_v5  ;;  %v476_v7 = vsel %vm474_vm2, %v467_v51, 0.0 }
  0x9b   : > { %v386_v6 = vrot.slane %v362_v2, 7  ;;  %v477_v17 = vadd.f32 %v476_v7, %v475_v62  ;;  %v457_v56 = vrot.slane %v803_v33, %v456_v47 }
  0x9c   : > { %v468_v59 = vmul.f32 %v437_v52, %v418_v57 }
  0x9d   : > { %v402_v63 = vsel %vm391_vm1, %v266_v58, %v386_v6  ;;  %v326_v8 = vpop.permute.xlu0 %325  ;;  %v229_v9 = vpop.permute.xlu1 %228 }
  0x9e   : > { %v478_v12 = vsel %vm474_vm2, %v468_v59, 0.0  ;;  %v419_v13 = vunpack.c.l.bf16 %v402_v63  ;;  %v365_v15 = vsel %vm254_vm0, %v737_v14, %v326_v8  ;;  %v269_v16 = vsel %vm254_vm0, %v740_v21, %v229_v9 }
  0x9f   : > { %v387_v18 = vrot.slane %v365_v15, 7  ;;  %v479_v25 = vadd.f32 %v478_v12, %v477_v17 }
  0xa0   : > { %v469_v20 = vmul.f32 %v441_v60, %v419_v13 }
  0xa1   : > { %v405_v24 = vsel %vm391_vm1, %v269_v16, %v387_v18  ;;  %v332_v31 = vpop.permute.xlu0 %331  ;;  %v235_v26 = vpop.permute.xlu1 %234 }
  0xa2   : > { %v480_v27 = vsel %vm474_vm2, %v469_v20, 0.0  ;;  %v420_v28 = vunpack.c.l.bf16 %v405_v24  ;;  %v368_v14 = vsel %vm254_vm0, %v327_v10, %v332_v31  ;;  %v272_v29 = vsel %vm254_vm0, %v230_v11, %v235_v26 }
  0xa3   : > { %v481_v21 = vadd.f32 %v480_v27, %v479_v25  ;;  %v388_v30 = vrot.slane %v368_v14, 7 }
  0xa4   : > { %v470_v32 = vmul.f32 %v445_v22, %v420_v28 }
  0xa5   : > { %v408_v4 = vsel %vm391_vm1, %v272_v29, %v388_v30  ;;  %v344_v34 = vpop.permute.xlu0 %343  ;;  %v247_v1 = vpop.permute.xlu1 %246 }
  0xa6   : > { %v482_v37 = vsel %vm474_vm2, %v470_v32, 0.0  ;;  %v421_v38 = vunpack.c.l.bf16 %v408_v4  ;;  %v371_v39 = vsel %vm254_vm0, %v759_v40, %v344_v34  ;;  %v275_v42 = vsel %vm254_vm0, %v762_v41, %v247_v1 }
  0xa7   : > { %v389_v43 = vrot.slane %v371_v39, 7  ;;  %v483_v49 = vadd.f32 %v482_v37, %v481_v21 }
  0xa8   : > { %v471_v44 = vmul.f32 %v449_v0, %v421_v38 }
  0xa9   : > { %v411_v48 = vsel %vm391_vm1, %v275_v42, %v389_v43  ;;  %v350_v45 = vpop.permute.xlu0 %349  ;;  %v253_v50 = vpop.permute.xlu1 %252 }
  0xaa   : > { %v422_v51 = vunpack.c.l.bf16 %v411_v48  ;;  %v374_v52 = vsel %vm254_vm0, %v345_v35, %v350_v45  ;;  %v278_v40 = vsel %vm254_vm0, %v248_v36, %v253_v50  ;;  %v484_v53 = vsel %vm474_vm2, %v471_v44, 0.0 }
  0xab   : > { %v390_v41 = vrot.slane %v374_v52, 7  ;;  %v485_v54 = vadd.f32 %v484_v53, %v483_v49 }
  0xac   : > { %v472_v55 = vmul.f32 %v453_v46, %v422_v51 }
  0xad   : > { %v414_v19 = vsel %vm391_vm1, %v278_v40, %v390_v41 }
  0xae   : > { %v423_v5 = vunpack.c.l.bf16 %v414_v19  ;;  %v486_v57 = vsel %vm474_vm2, %v472_v55, 0.0 }
  0xaf   : > { %v487_v58 = vadd.f32 %v486_v57, %v485_v54 }
  0xb0   : > { %v473_v2 = vmul.f32 %v457_v56, %v423_v5 }
  0xb2   : > { %v488_v6 = vsel %vm474_vm2, %v473_v2, 0.0 }
  0xb3   : > { %v489_v7 = vadd.f32 %v488_v6, %v487_v58 }
  0xb5   : > { %490 = vadd.xlane.f32.xlu0 %v489_v7 }
 0x142   : > { %v491_v59 = vpop.xlane.xlu0 %490 }
 0x143   : > { %493 = vst.msk [vmem:[%s161_s23] sm:$0xf] %vm492_vm3, %v491_v59 }
 0x144 PF: > { %s12_s11 = sadd.s32 1, %s658_s11   ;;  %s877_s9 = smov %s654_s10 }
 0x145   : > { %p9_p5 = scmp.ge.s32.totalorder %s12_s11, 4   ;;  %s878_s10 = smov %s880_s12 }
 0x147   :  { %11 = sbr.rel (!%p9_p5) target bundleno = 2 (0x2), region = 62 }

// kernel: _lambda_.15
= control target key start
LH: loop header
LB: loop body
LE: loop exit
PB: predicated region body
PF: predicated region fallthrough
CT: control target
= control target key end

     0   :  { %s1450_s15 = smov 0   ;;  %s1452_s16 = smov 0   ;;  %s1880_s0 = inlined_call_operand.vmem [shape: bf16[2,6,6,32], index: 0, kind: input, shape index: {}]   ;;  %s1881_s1 = inlined_call_operand.vmem [shape: bf16[512,64], index: 1, kind: input, shape index: {}]   ;;  %s1882_s2 = inlined_call_operand.vmem [shape: bf16[2,9,64], index: 2, kind: output, shape index: {0}]   ;;  %s1883_s3 = inlined_call_operand.vmem [shape: f32[2,8,64], index: 3, kind: output, shape index: {1}]   ;;  %s1884_s4 = inlined_call_operand.vmem [shape: f32[2,8,64], index: 4, kind: output, shape index: {2}]  }
   0x1   :  { %s1454_s17 = smov 0  }
   0x2 LB: > { %s27_s18 = sadd.s32 1, %s1416_s16  ;;  %p1216_p0 = scmp.ge.s32.totalorder %s1420_s17, 1  ;;  %s1420_s17 = sphi %s1454_s17, %s15_s17   ;;  %s1416_s16 = sphi %s1452_s16, %s1888_s16   ;;  %s1412_s15 = sphi %s1450_s15, %s1887_s15  }
   0x3   : > { %p29_p1 = scmp.ge.s32.totalorder %s27_s18, 2  ;;  %p185_p2 = scmp.lt.s32.totalorder %s1420_s17, 3 }
   0x5   : > { %s1890_s18 = smov (%p29_p1, %s27_s18), 0  ;;  %p186_p3 = pnand %p1216_p0, %p185_p2 }
   0x6   : > { %p225_p4 = scmp.lt.s32.totalorder (!%p186_p3), %s1412_s15, 1  ;;  %s1422_s23 = smov (!%p186_p3), 64   ;;  %vm357_vm0 = vcmask (!%p186_p3), 261120   ;;  %vm361_vm1 = vcmask (!%p186_p3), 523264   ;;  %vm364_vm2 = vcmask (!%p186_p3), 785408   ;;  %vm648_vm3 = vcmask (!%p186_p3), 1041408  }
   0x7   : > { %189 = sbr.rel (%p186_p3) target bundleno = 446 (0x1be), region = 28  ;;  %s1423_s24 = smov (!%p186_p3), 32   ;;  %vm649_vm4 = vsmask.f32 (!%p186_p3), 1280  ;;  %vm655_vm5 = vcmask (!%p186_p3), 1042432   ;;  %vm1020_vm7 = vcmask (!%p186_p3), 516096  }
   0x8   : > { %s1424_s25 = smov (!%p186_p3), 96   ;;  %vm1801_vm6 = vmand (!%p186_p3), %vm648_vm3, %vm649_vm4  ;;  %vm1021_vm8 = vsmask.f32 (!%p186_p3), 256  ;;  %vm1018_vm9 = vcmask (!%p186_p3), 519168  }
   0x9   : > { %vm1022_vm10 = vmand (!%p186_p3), %vm1020_vm7, %vm1021_vm8 }
   0xe   : > { %s1892_s15 = smov (!%p225_p4, %s1412_s15), 1 }
   0xf   : > { %s1326_s19 = smul.u32 24, %s1892_s15 }
  0x11   : > { %s1474_s22 = scalar_lea.vmem %s1880_s0, %s1326_s19 }
  0x12   : > { %v1477_v0 = vld [vmem:[%s1474_s22 + $0x8] sm:$0x7]  ;;  %v1480_v1 = vld [vmem:[%s1474_s22 + $0x4] sm:$0x7]  ;;  %v1483_v2 = vld [vmem:[%s1474_s22 + $0x10] sm:$0x7] }
  0x13   : > { %v1236_v3 = vcombine.low %v1477_v0, %v1477_v0  ;;  %v1235_v4 = vcombine.low %v1480_v1, %v1480_v1  ;;  %v1238_v5 = vcombine.low %v1483_v2, %v1483_v2  ;;  %v1492_v6 = vld [vmem:[%s1474_s22 + $0xc] sm:$0x7]  ;;  %v1502_v21 = vld [vmem:[%s1474_s22 + $0x14] sm:$0x7]  ;;  %v1517_v36 = vld [vmem:[%s1474_s22 + $0x4] sm:$0x7] }
  0x14   : > { %v1237_v7 = vcombine.low %v1492_v6, %v1492_v6  ;;  %v1499_v20 = vld [vmem:[%s1474_s22 + $0xc] sm:$0x7]  ;;  %v1512_v31 = vcombine.low %v1502_v21, %v1502_v21  ;;  %v1525_v43 = vcombine.low %v1517_v36, %v1517_v36  ;;  %v1535_v48 = vld [vmem:[%s1474_s22 + $0x8] sm:$0x7]  ;;  %v1552_v58 = vld [vmem:[%s1474_s22 + $0x10] sm:$0x7] }
  0x15   : > { %v424_v8 = vrot.slane %v1236_v3, 1  ;;  %v404_v9 = vrot.slane %v1235_v4, 1  ;;  %v464_v10 = vrot.slane %v1238_v5, 1  ;;  %v418_v11 = vshll.u32 %v1236_v3, 16  ;;  %v1520_v37 = vld [vmem:[%s1474_s22 + $0xc] sm:$0x7] }
  0x16   : > { %v398_v12 = vshll.u32 %v1235_v4, 16  ;;  %v444_v13 = vrot.slane %v1237_v7, 1  ;;  %v416_v14 = vshrl.u32 %v1236_v3, 16  ;;  %v396_v15 = vshrl.u32 %v1235_v4, 16  ;;  %v1555_v59 = vld [vmem:[%s1474_s22] sm:$0x7] }
  0x17   : > { %425 = vrot.lane.b32.xlu1 %v424_v8, %s1422_s23  ;;  %405 = vrot.lane.b32.xlu0 %v404_v9, %s1422_s23  ;;  %v458_v16 = vshll.u32 %v1238_v5, 16  ;;  %v420_v17 = vrot.slane %v418_v11, 1  ;;  %v456_v19 = vshrl.u32 %v1238_v5, 16  ;;  %v428_v23 = vrot.slane %v418_v11, 2  ;;  %v1366_v11 = vld [vmem:[%s1881_s1 + $0x40] sm:$0xff]  }
  0x18   : > { %v400_v18 = vrot.slane %v398_v12, 1  ;;  %v427_v22 = vrot.slane %v416_v14, 1  ;;  %v438_v27 = vshll.u32 %v1237_v7, 16  ;;  %v1508_v30 = vcombine.low %v1499_v20, %v1499_v20  ;;  %1282 = vmatprep.subr.bf16.mxu0 %v1366_v11 }
  0x19   : > { %v421_v24 = vor.u32 %v420_v17, %v416_v14  ;;  %v460_v26 = vrot.slane %v458_v16, 1  ;;  %v467_v28 = vrot.slane %v456_v19, 1  ;;  %v468_v29 = vrot.slane %v458_v16, 2  ;;  %v1368_v17 = vld [vmem:[%s1881_s1] sm:$0xff]  }
  0x1a   : > { %v401_v25 = vor.u32 %v400_v18, %v396_v15  ;;  %v429_v33 = vor.u32 %v428_v23, %v427_v22  ;;  %v436_v34 = vshrl.u32 %v1237_v7, 16  ;;  %v440_v35 = vrot.slane %v438_v27, 1  ;;  %v1369_v18 = vld [vmem:[%s1881_s1 + $0x80] sm:$0xff]   ;;  %v1370_v23 = vld [vmem:[%s1881_s1 + $0x48] sm:$0xff]   ;;  %1283 = vmatpush3.bf16.msra.mxu0 %v1368_v17 }
  0x1b   : > { %465 = vrot.lane.b32.xlu1 %v464_v10, %s1422_s23  ;;  %445 = vrot.lane.b32.xlu0 %v444_v13, %s1422_s23  ;;  %v461_v32 = vor.u32 %v460_v26, %v456_v19  ;;  %v469_v38 = vor.u32 %v468_v29, %v467_v28  ;;  %v407_v39 = vrot.slane %v396_v15, 1  ;;  %v408_v40 = vrot.slane %v398_v12, 2  ;;  %v1580_v10 = vld [vmem:[%s1474_s22 + $0x8] sm:$0x7]  ;;  %v1367_v12 = vld [vmem:[%s1881_s1 + $0xc0] sm:$0xff]  }
  0x1c   : > { %v447_v41 = vrot.slane %v436_v34, 1  ;;  %v526_v42 = vshll.u32 %v1508_v30, 16  ;;  %v441_v44 = vor.u32 %v440_v35, %v436_v34  ;;  %v448_v45 = vrot.slane %v438_v27, 2  ;;  %1304 = vmatprep.subr.bf16.mxu1 %v1367_v12  ;;  %1284 = vmatprep.subr.bf16.mxu0 %v1370_v23  ;;  %v1372_v29 = vld [vmem:[%s1881_s1 + $0x8] sm:$0xff]   ;;  %v1374_v35 = vld [vmem:[%s1881_s1 + $0x50] sm:$0xff]   ;;  %v1383_v17 = vld [vmem:[%s1881_s1 + $0xe0] sm:$0xff]  }
  0x1d   : > { %v566_v46 = vshll.u32 %v1512_v31, 16  ;;  %v1532_v47 = vcombine.low %v1520_v37, %v1520_v37  ;;  %v524_v49 = vshrl.u32 %v1508_v30, 16  ;;  %v409_v50 = vor.u32 %v408_v40, %v407_v39  ;;  %1305 = vmatpush3.bf16.msra.mxu1 %v1369_v18  ;;  %v1384_v18 = vld [vmem:[%s1881_s1 + $0x20] sm:$0xff]  }
  0x1e   : > { %v528_v51 = vrot.slane %v526_v42, 1  ;;  %v564_v52 = vshrl.u32 %v1512_v31, 16  ;;  %v303_v53 = vshll.u32 %v1525_v43, 16  ;;  %v449_v54 = vor.u32 %v448_v45, %v447_v41  ;;  %1285 = vmatpush3.bf16.msra.mxu0 %v1372_v29  ;;  %v1377_v45 = vld [vmem:[%s1881_s1 + $0x90] sm:$0xff]   ;;  %v1389_v29 = vld [vmem:[%s1881_s1 + $0xa8] sm:$0xff]  }
  0x1f   : > { %422 = vrot.lane.b32.xlu0 %v421_v24, %s1423_s24  ;;  %402 = vrot.lane.b32.xlu1 %v401_v25, %s1423_s24  ;;  %v568_v55 = vrot.slane %v566_v46, 1  ;;  %v343_v56 = vshll.u32 %v1532_v47, 16  ;;  %v1549_v57 = vcombine.low %v1535_v48, %v1535_v48  ;;  %v301_v61 = vshrl.u32 %v1525_v43, 16  ;;  %v1371_v24 = vld [vmem:[%s1881_s1 + $0xc8] sm:$0xff]  }
  0x20   : > { %v529_v60 = vor.u32 %v528_v51, %v524_v49  ;;  %v305_v62 = vrot.slane %v303_v53, 1  ;;  %v341_v63 = vshrl.u32 %v1532_v47, 16  ;;  %v1572_v7 = vcombine.low %v1552_v58, %v1552_v58  ;;  %1306 = vmatprep.subr.bf16.mxu1 %v1371_v24  ;;  %1286 = vmatprep.subr.bf16.mxu0 %v1374_v35 }
  0x21   : > { %v569_v3 = vor.u32 %v568_v55, %v564_v52  ;;  %v345_v4 = vrot.slane %v343_v56, 1  ;;  %v506_v5 = vshll.u32 %v1549_v57, 16  ;;  %v504_v8 = vshrl.u32 %v1549_v57, 16 }
  0x22   : > { %v1577_v9 = vcombine.low %v1555_v59, %v1555_v59  ;;  %v306_v13 = vor.u32 %v305_v62, %v301_v61  ;;  %v546_v16 = vshll.u32 %v1572_v7, 16  ;;  %v532_v19 = vrot.slane %v1508_v30, 1  ;;  %v1379_v62 = vld [vmem:[%s1881_s1 + $0xd8] sm:$0xff]   ;;  %v1385_v30 = vld [vmem:[%s1881_s1 + $0xa0] sm:$0xff]  }
  0x23   : > { %462 = vrot.lane.b32.xlu0 %v461_v32, %s1423_s24  ;;  %430 = vrot.lane.b32.xlu1 %v429_v33, %s1424_s25  ;;  %v346_v14 = vor.u32 %v345_v4, %v341_v63  ;;  %v508_v15 = vrot.slane %v506_v5, 1  ;;  %v544_v22 = vshrl.u32 %v1572_v7, 16  ;;  %v1620_v28 = vcombine.low %v1580_v10, %v1580_v10  ;;  %v1373_v32 = vld [vmem:[%s1881_s1 + $0x88] sm:$0xff]   ;;  %v1381_v4 = vld [vmem:[%s1881_s1 + $0x98] sm:$0xff]  }
  0x24   : > { %v548_v26 = vrot.slane %v546_v16, 1  ;;  %v283_v27 = vshll.u32 %v1577_v9, 16  ;;  %v572_v33 = vrot.slane %v1512_v31, 1  ;;  %v281_v34 = vshrl.u32 %v1577_v9, 16  ;;  %1307 = vmatpush3.bf16.msra.mxu1 %v1373_v32  ;;  %v1390_v31 = vld [vmem:[%s1881_s1 + $0x70] sm:$0xff]  }
  0x25   : > { %v509_v25 = vor.u32 %v508_v15, %v504_v8  ;;  %v323_v41 = vshll.u32 %v1620_v28, 16  ;;  %v349_v11 = vrot.slane %v1532_v47, 1  ;;  %v1382_v15 = vld [vmem:[%s1881_s1 + $0x60] sm:$0xff]   ;;  %v575_v23 = vrot.slane %v564_v52, 1  ;;  %v1397_v47 = vld [vmem:[%s1881_s1 + $0xb8] sm:$0xff]  }
  0x26   : > { %v549_v39 = vor.u32 %v548_v26, %v544_v22  ;;  %v285_v40 = vrot.slane %v283_v27, 1  ;;  %v576_v24 = vrot.slane %v566_v46, 2  ;;  %v1388_v26 = vld [vmem:[%s1881_s1 + $0x28] sm:$0xff]   ;;  %v1391_v46 = vld [vmem:[%s1881_s1 + $0xf0] sm:$0xff]   ;;  %v552_v32 = vrot.slane %v1572_v7, 1 }
  0x27   : > { %442 = vrot.lane.b32.xlu0 %v441_v44, %s1423_s24  ;;  %470 = vrot.lane.b32.xlu1 %v469_v38, %s1424_s25  ;;  %v1375_v38 = vld [vmem:[%s1881_s1 + $0xd0] sm:$0xff]   ;;  %v325_v55 = vrot.slane %v323_v41, 1  ;;  %v313_v35 = vrot.slane %v303_v53, 2  ;;  %v352_v53 = vrot.slane %v341_v63, 1  ;;  %v555_v63 = vrot.slane %v544_v22, 1 }
  0x28   : > { %1308 = vmatprep.subr.bf16.mxu1 %v1375_v38  ;;  %v1376_v44 = vld [vmem:[%s1881_s1 + $0x10] sm:$0xff]   ;;  %v286_v51 = vor.u32 %v285_v40, %v281_v34  ;;  %v577_v52 = vor.u32 %v576_v24, %v575_v23  ;;  %v353_v40 = vrot.slane %v343_v56, 2  ;;  %v329_v56 = vrot.slane %v1620_v28, 1 }
  0x29   : > { %1287 = vmatpush3.bf16.msra.mxu0 %v1376_v44  ;;  %1309 = vmatpush3.bf16.msra.mxu1 %v1377_v45  ;;  %v1392_v38 = vld [vmem:[%s1881_s1 + $0x30] sm:$0xff]   ;;  %v1394_v44 = vld [vmem:[%s1881_s1 + $0x78] sm:$0xff]   ;;  %v333_v22 = vrot.slane %v323_v41, 2 }
  0x2a   : > { %1310 = vmatprep.subr.bf16.mxu1 %v1379_v62  ;;  %v1395_v45 = vld [vmem:[%s1881_s1 + $0xf8] sm:$0xff]   ;;  %v516_v62 = vrot.slane %v506_v5, 2 }
  0x2b   : > { %410 = vrot.lane.b32.xlu0 %v409_v50, %s1424_s25  ;;  %450 = vrot.lane.b32.xlu1 %v449_v54, %s1424_s25  ;;  %v309_v50 = vrot.slane %v1525_v43, 1  ;;  %v321_v54 = vshrl.u32 %v1620_v28, 16  ;;  %v289_v43 = vrot.slane %v1577_v9, 1 }
  0x2d   : > { %v326_v12 = vor.u32 %v325_v55, %v321_v54  ;;  %1311 = vmatpush3.bf16.msra.mxu1 %v1381_v4  ;;  %v556_v55 = vrot.slane %v546_v16, 2 }
  0x2e   : > { %1312 = vmatprep.subr.bf16.mxu1 %v1383_v17 }
  0x2f   : > { %530 = vrot.lane.b32.xlu0 %v529_v60, %s1423_s24  ;;  %570 = vrot.lane.b32.xlu1 %v569_v3, %s1423_s24  ;;  %v1378_v60 = vld [vmem:[%s1881_s1 + $0x58] sm:$0xff]   ;;  %v557_v7 = vor.u32 %v556_v55, %v555_v63 }
  0x30   : > { %1288 = vmatprep.subr.bf16.mxu0 %v1378_v60  ;;  %v1380_v3 = vld [vmem:[%s1881_s1 + $0x18] sm:$0xff]   ;;  %v515_v60 = vrot.slane %v504_v8, 1  ;;  %v292_v8 = vrot.slane %v281_v34, 1 }
  0x31   : > { %1289 = vmatpush3.bf16.msra.mxu0 %v1380_v3  ;;  %1313 = vmatpush3.bf16.msra.mxu1 %v1385_v30  ;;  %v332_v3 = vrot.slane %v321_v54, 1 }
  0x32   : > { %1290 = vmatprep.subr.bf16.mxu0 %v1382_v15  ;;  %v517_v16 = vor.u32 %v516_v62, %v515_v60 }
  0x33   : > { %307 = vrot.lane.b32.xlu0 %v306_v13, %s1423_s24  ;;  %347 = vrot.lane.b32.xlu1 %v346_v14, %s1423_s24  ;;  %v535_v13 = vrot.slane %v524_v49, 1  ;;  %v536_v14 = vrot.slane %v526_v42, 2  ;;  %v1386_v42 = vld [vmem:[%s1881_s1 + $0x68] sm:$0xff]   ;;  %v334_v5 = vor.u32 %v333_v22, %v332_v3 }
  0x35   : > { %v537_v49 = vor.u32 %v536_v14, %v535_v13  ;;  %1291 = vmatpush3.bf16.msra.mxu0 %v1384_v18 }
  0x36   : > { %1292 = vmatprep.subr.bf16.mxu0 %v1386_v42 }
  0x37   : > { %510 = vrot.lane.b32.xlu0 %v509_v25, %s1423_s24  ;;  %533 = vrot.lane.b32.xlu1 %v532_v19, %s1422_s23  ;;  %v512_v19 = vrot.slane %v1549_v57, 1  ;;  %v1387_v25 = vld [vmem:[%s1881_s1 + $0xe8] sm:$0xff]   ;;  %v293_v57 = vrot.slane %v283_v27, 2 }
  0x38   : > { %1314 = vmatprep.subr.bf16.mxu1 %v1387_v25 }
  0x39   : > { %1293 = vmatpush3.bf16.msra.mxu0 %v1388_v26  ;;  %1315 = vmatpush3.bf16.msra.mxu1 %v1389_v29  ;;  %v294_v54 = vor.u32 %v293_v57, %v292_v8 }
  0x3a   : > { %1294 = vmatprep.subr.bf16.mxu0 %v1390_v31  ;;  %1316 = vmatprep.subr.bf16.mxu1 %v1391_v46 }
  0x3b   : > { %550 = vrot.lane.b32.xlu0 %v549_v39, %s1423_s24  ;;  %573 = vrot.lane.b32.xlu1 %v572_v33, %s1422_s23  ;;  %v312_v33 = vrot.slane %v301_v61, 1  ;;  %v1393_v39 = vld [vmem:[%s1881_s1 + $0xb0] sm:$0xff]  }
  0x3d   : > { %v314_v61 = vor.u32 %v313_v35, %v312_v33  ;;  %1295 = vmatpush3.bf16.msra.mxu0 %v1392_v38  ;;  %1317 = vmatpush3.bf16.msra.mxu1 %v1393_v39 }
  0x3e   : > { %1296 = vmatprep.subr.bf16.mxu0 %v1394_v44  ;;  %1318 = vmatprep.subr.bf16.mxu1 %v1395_v45 }
  0x3f   : > { %310 = vrot.lane.b32.xlu1 %v309_v50, %s1422_s23  ;;  %287 = vrot.lane.b32.xlu0 %v286_v51, %s1423_s24  ;;  %v1396_v50 = vld [vmem:[%s1881_s1 + $0x38] sm:$0xff]   ;;  %v354_v51 = vor.u32 %v353_v40, %v352_v53 }
  0x41   : > { %1297 = vmatpush3.bf16.msra.mxu0 %v1396_v50  ;;  %1319 = vmatpush3.bf16.msra.mxu1 %v1397_v47 }
  0x43   : > { %350 = vrot.lane.b32.xlu1 %v349_v11, %s1422_s23  ;;  %327 = vrot.lane.b32.xlu0 %v326_v12, %s1423_s24 }
  0x47   : > { %538 = vrot.lane.b32.xlu1 %v537_v49, %s1424_s25  ;;  %513 = vrot.lane.b32.xlu0 %v512_v19, %s1422_s23 }
  0x4b   : > { %578 = vrot.lane.b32.xlu1 %v577_v52, %s1424_s25  ;;  %553 = vrot.lane.b32.xlu0 %v552_v32, %s1422_s23 }
  0x4f   : > { %315 = vrot.lane.b32.xlu1 %v314_v61, %s1424_s25  ;;  %290 = vrot.lane.b32.xlu0 %v289_v43, %s1422_s23 }
  0x53   : > { %355 = vrot.lane.b32.xlu1 %v354_v51, %s1424_s25  ;;  %330 = vrot.lane.b32.xlu0 %v329_v56, %s1422_s23  ;;  %s1850_s23 = sshll.u32 %s1892_s15, 3 }
  0x54   : > { %s238_s7 = scalar_lea.vmem %s1882_s2, %s1850_s23  ;;  %s244_s8 = scalar_lea.vmem %s1883_s3, %s1850_s23 }
  0x55   : > { %s250_s11 = scalar_lea.vmem %s1884_s4, %s1850_s23 }
  0x57   : > { %558 = vrot.lane.b32.xlu1 %v557_v7, %s1424_s25  ;;  %518 = vrot.lane.b32.xlu0 %v517_v16, %s1424_s25 }
  0x5b   : > { %335 = vrot.lane.b32.xlu1 %v334_v5, %s1424_s25  ;;  %295 = vrot.lane.b32.xlu0 %v294_v54, %s1424_s25 }
  0x89   : > { %v426_v28 = vpop.permute.xlu1 %425  ;;  %v406_v41 = vpop.permute.xlu0 %405 }
  0x8d   : > { %v466_v4 = vpop.permute.xlu1 %465  ;;  %v446_v11 = vpop.permute.xlu0 %445 }
  0x91   : > { %v423_v12 = vpop.permute.xlu0 %422  ;;  %v403_v13 = vpop.permute.xlu1 %402 }
  0x92   : > { %v481_v26 = vsel %vm357_vm0, %v1477_v0, %v423_v12  ;;  %v474_v40 = vsel %vm357_vm0, %v1480_v1, %v403_v13 }
  0x93   : > { %v483_v46 = vsel %vm361_vm1, %v481_v26, %v426_v28  ;;  %v476_v60 = vsel %vm361_vm1, %v474_v40, %v406_v41 }
  0x95   : > { %v463_v34 = vpop.permute.xlu0 %462  ;;  %v431_v14 = vpop.permute.xlu1 %430 }
  0x96   : > { %v495_v52 = vsel %vm357_vm0, %v1483_v2, %v463_v34  ;;  %v485_v32 = vsel %vm364_vm2, %v483_v46, %v431_v14 }
  0x97   : > { %v615_v38 = vshrl.u32 %v485_v32, 16  ;;  %v618_v39 = vshll.u32 %v485_v32, 16  ;;  %v497_v61 = vsel %vm361_vm1, %v495_v52, %v466_v4 }
  0x99   : > { %v443_v9 = vpop.permute.xlu0 %442  ;;  %v471_v27 = vpop.permute.xlu1 %470  ;;  %v617_v44 = vrot.slane %v615_v38, 6  ;;  %v620_v45 = vrot.slane %v618_v39, 7 }
  0x9a   : > { %v499_v0 = vsel %vm364_vm2, %v497_v61, %v471_v27  ;;  %v488_v50 = vsel %vm357_vm0, %v1492_v6, %v443_v9 }
  0x9b   : > { %v629_v2 = vshrl.u32 %v499_v0, 16  ;;  %v632_v47 = vshll.u32 %v499_v0, 16  ;;  %v621_v1 = vor.u32 %v620_v45, %v617_v44  ;;  %v490_v22 = vsel %vm361_vm1, %v488_v50, %v446_v11 }
  0x9d   : > { %v411_v15 = vpop.permute.xlu0 %410  ;;  %v451_v17 = vpop.permute.xlu1 %450  ;;  %v631_v3 = vrot.slane %v629_v2, 6  ;;  %v634_v7 = vrot.slane %v632_v47, 7 }
  0x9e   : > { %v478_v16 = vsel %vm364_vm2, %v476_v60, %v411_v15  ;;  %v492_v28 = vsel %vm364_vm2, %v490_v22, %v451_v17 }
  0x9f   : > { %v608_v13 = vshrl.u32 %v478_v16, 16  ;;  %v611_v34 = vshll.u32 %v478_v16, 16  ;;  %v635_v9 = vor.u32 %v634_v7, %v631_v3  ;;  %v622_v27 = vshrl.u32 %v492_v28, 16 }
  0xa0   : > { %v625_v15 = vshll.u32 %v492_v28, 16  ;;  %v1023_v28 = vld [vmem:[%s238_s7 + $0x4] sm:$0x1] }
  0xa1   : > { %v531_v18 = vpop.permute.xlu0 %530  ;;  %v571_v30 = vpop.permute.xlu1 %570  ;;  %v610_v26 = vrot.slane %v608_v13, 6 }
  0xa2   : > { %v589_v56 = vsel %vm357_vm0, %v1499_v20, %v531_v18  ;;  %v603_v8 = vsel %vm357_vm0, %v1502_v21, %v571_v30  ;;  %v627_v46 = vrot.slane %v625_v15, 7 }
  0xa5   : > { %v308_v42 = vpop.permute.xlu0 %307  ;;  %v348_v49 = vpop.permute.xlu1 %347 }
  0xa6   : > { %v370_v6 = vsel %vm357_vm0, %v1517_v36, %v308_v42  ;;  %v386_v21 = vsel %vm357_vm0, %v1520_v37, %v348_v49  ;;  %v624_v49 = vrot.slane %v622_v27, 6 }
  0xa9   : > { %v1772_v19 = vpop.permute.xlu0 %510  ;;  %v534_v23 = vpop.permute.xlu1 %533 }
  0xaa   : > { %v591_v55 = vsel %vm361_vm1, %v589_v56, %v534_v23  ;;  %v582_v52 = vsel %vm357_vm0, %v1535_v48, %v1772_v19  ;;  %v628_v19 = vor.u32 %v627_v46, %v624_v49 }
  0xad   : > { %v1774_v24 = vpop.permute.xlu0 %550  ;;  %v574_v25 = vpop.permute.xlu1 %573 }
  0xae   : > { %v605_v41 = vsel %vm361_vm1, %v603_v8, %v574_v25  ;;  %v596_v32 = vsel %vm357_vm0, %v1552_v58, %v1774_v24 }
  0xb1   : > { %v311_v29 = vpop.permute.xlu1 %310  ;;  %v1778_v31 = vpop.permute.xlu0 %287 }
  0xb2   : > { %v372_v57 = vsel %vm361_vm1, %v370_v6, %v311_v29  ;;  %v613_v29 = vrot.slane %v611_v34, 7  ;;  %v360_v40 = vsel %vm357_vm0, %v1555_v59, %v1778_v31 }
  0xb4   : > { %v614_v58 = vor.u32 %v613_v29, %v610_v26 }
  0xb5   : > { %v351_v33 = vpop.permute.xlu1 %350  ;;  %v1784_v35 = vpop.permute.xlu0 %327 }
  0xb6   : > { %v388_v17 = vsel %vm361_vm1, %v386_v21, %v351_v33  ;;  %v378_v48 = vsel %vm357_vm0, %v1580_v10, %v1784_v35 }
  0xb9   : > { %v539_v43 = vpop.permute.xlu1 %538  ;;  %v514_v53 = vpop.permute.xlu0 %513 }
  0xba   : > { %v593_v62 = vsel %vm364_vm2, %v591_v55, %v539_v43  ;;  %v584_v39 = vsel %vm361_vm1, %v582_v52, %v514_v53 }
  0xbb   : > { %v645_v36 = vrot.slane %v593_v62, 5 }
  0xbd   : > { %v579_v63 = vpop.permute.xlu1 %578  ;;  %v554_v51 = vpop.permute.xlu0 %553 }
  0xbe   : > { %v607_v11 = vsel %vm364_vm2, %v605_v41, %v579_v63  ;;  %v598_v61 = vsel %vm361_vm1, %v596_v32, %v554_v51 }
  0xbf   : > { %v647_v42 = vrot.slane %v607_v11, 5 }
  0xc1   : > { %v316_v5 = vpop.permute.xlu1 %315  ;;  %v291_v54 = vpop.permute.xlu0 %290 }
  0xc2   : > { %v374_v4 = vsel %vm364_vm2, %v372_v57, %v316_v5  ;;  %v363_v24 = vsel %vm361_vm1, %v360_v40, %v291_v54 }
  0xc3   : > { %v652_v12 = vsel %vm1801_vm6, %v374_v4, %v621_v1 }
  0xc4   : > { %v662_v14 = vsel %vm655_vm5, %v652_v12, %v645_v36 }
  0xc5   : > { %960 = vmatprep.mubr.bf16.mxu0 %v662_v14  ;;  %v356_v18 = vpop.permute.xlu1 %355  ;;  %v331_v30 = vpop.permute.xlu0 %330 }
  0xc6   : > { %v390_v23 = vsel %vm364_vm2, %v388_v17, %v356_v18  ;;  %v380_v53 = vsel %vm361_vm1, %v378_v48, %v331_v30 }
  0xc7   : > { %v654_v25 = vsel %vm1801_vm6, %v390_v23, %v635_v9 }
  0xc8   : > { %v670_v37 = vsel %vm655_vm5, %v654_v25, %v647_v42 }
  0xc9   : > { %1001 = vmatprep.mubr.bf16.mxu1 %v670_v37  ;;  %v559_v33 = vpop.permute.xlu1 %558  ;;  %v519_v38 = vpop.permute.xlu0 %518 }
  0xca   : > { %v600_v0 = vsel %vm364_vm2, %v598_v61, %v559_v33  ;;  %v586_v43 = vsel %vm364_vm2, %v584_v39, %v519_v38 }
  0xcb   : > { %v646_v2 = vrot.slane %v600_v0, 5  ;;  %v644_v50 = vrot.slane %v586_v43, 5 }
  0xcd   : > { %v336_v44 = vpop.permute.xlu1 %335  ;;  %v296_v45 = vpop.permute.xlu0 %295 }
  0xce   : > { %v382_v47 = vsel %vm364_vm2, %v380_v53, %v336_v44  ;;  %v366_v56 = vsel %vm364_vm2, %v363_v24, %v296_v45 }
  0xcf   : > { %v651_v59 = vsel %vm1801_vm6, %v366_v56, %v614_v58  ;;  %v653_v10 = vsel %vm1801_vm6, %v382_v47, %v628_v19 }
  0xd0   : > { %v658_v31 = vsel %vm655_vm5, %v651_v59, %v644_v50  ;;  %v666_v35 = vsel %vm655_vm5, %v653_v10, %v646_v2 }
  0xd1   : > { %961 = vmatmul.mubr.bf16.vlgmr.msra.gmra.mrb[0].mxu0 %v658_v31  ;;  %1002 = vmatmul.mubr.bf16.vlgmr.msra.gmra.mrb[0].mxu1 %v666_v35 }
 0x1a4   : > { %v1298_v63 = vpop.f32.mrb[0].mxu0  ;;  %v1320_v51 = vpop.f32.mrb[0].mxu1 }
 0x1a5   : > { %v1299_v55 = vpop.f32.mrb[1].mxu0  ;;  %v1321_v60 = vpop.f32.mrb[1].mxu1 }
 0x1a6   : > { %v1300_v62 = vadd.f32 %v1299_v55, %v1298_v63  ;;  %v1322_v1 = vadd.f32 %v1321_v60, %v1320_v51  ;;  %v1301_v3 = vpop.f32.mrb[2].mxu0  ;;  %v1323_v22 = vpop.f32.mrb[2].mxu1 }
 0x1a7   : > { %v1302_v6 = vpop.f32.mrb[3].mxu0  ;;  %v1324_v20 = vpop.f32.mrb[3].mxu1 }
 0x1a8   : > { %v1004_v7 = vadd.f32 %v1322_v1, %v1300_v62  ;;  %v1303_v16 = vadd.f32 %v1302_v6, %v1301_v3  ;;  %v1325_v8 = vadd.f32 %v1324_v20, %v1323_v22 }
 0x1aa   : > { %v1280_v57 = vpack.c.bf16 %v1004_v7, %v1004_v7  ;;  %v1036_v5 = vmul.f32 %v1004_v7, %v1004_v7  ;;  %v1007_v54 = vadd.f32 %v1325_v8, %v1303_v16  ;;  %v1026_v41 = vsel %vm361_vm1, %v1004_v7, 0.0 }
 0x1ac   : > { %1019 = vst.msk [vmem:[%s238_s7] sm:$0xf] %vm1018_vm9, %v1280_v57  ;;  %v1281_v36 = vpack.c.bf16 %v1007_v54, %v1007_v54  ;;  %v1028_v4 = vsel %vm1020_vm7, %v1007_v54, 0.0  ;;  %v1037_v11 = vmul.f32 %v1007_v54, %v1007_v54  ;;  %v1038_v13 = vsel %vm361_vm1, %v1036_v5, 0.0 }
 0x1ad   : > { %v1029_v12 = vadd.f32 %v1028_v4, %v1026_v41 }
 0x1ae   : > { %v1024_v34 = vsel %vm1022_vm10, %v1281_v36, %v1023_v28  ;;  %v1039_v21 = vsel %vm1020_vm7, %v1037_v11, 0.0 }
 0x1af   : > { %1025 = vst [vmem:[%s238_s7 + $0x4] sm:$0x1] %v1024_v34  ;;  %v1030_v14 = vrot.slane %v1029_v12, 4  ;;  %v1040_v9 = vadd.f32 %v1039_v21, %v1038_v13 }
 0x1b1   : > { %v1031_v27 = vadd.f32 %v1030_v14, %v1029_v12  ;;  %v1041_v15 = vrot.slane %v1040_v9, 4 }
 0x1b3   : > { %v1032_v17 = vrot.slane %v1031_v27, 2  ;;  %v1042_v18 = vadd.f32 %v1041_v15, %v1040_v9 }
 0x1b5   : > { %v1033_v30 = vadd.f32 %v1032_v17, %v1031_v27  ;;  %v1043_v42 = vrot.slane %v1042_v18, 2 }
 0x1b7   : > { %v1034_v23 = vrot.slane %v1033_v30, 1  ;;  %v1044_v25 = vadd.f32 %v1043_v42, %v1042_v18 }
 0x1b9   : > { %v1035_v26 = vadd.f32 %v1034_v23, %v1033_v30  ;;  %v1045_v29 = vrot.slane %v1044_v25, 1 }
 0x1bb   : > { %v1046_v37 = vadd.f32 %v1045_v29, %v1044_v25  ;;  %1047 = vst.msk [vmem:[%s244_s8] sm:$0xff] %vm361_vm1, %v1035_v26 }
 0x1bd   : > { %1048 = vst.msk [vmem:[%s250_s11] sm:$0xff] %vm361_vm1, %v1046_v37 }
 0x1be PF: > { %s15_s17 = sadd.s32 1, %s1420_s17   ;;  %s1887_s15 = smov %s1416_s16 }
 0x1bf   : > { %p12_p5 = scmp.ge.s32.totalorder %s15_s17, 4   ;;  %s1888_s16 = smov %s1890_s18 }
 0x1c1   :  { %14 = sbr.rel (!%p12_p5) target bundleno = 2 (0x2), region = 86 }

</bundles_post_ra>
